<compile_context>
chip_gen: v7x
topology: tpu7x:2x2x1
jax: 0.10.0
libtpu: 0.0.40
codegen_flags: <defaults>
</compile_context>

<pallas_src>
import functools
import math

import jax
import jax.numpy as jnp
from jax.experimental import pallas as pl
from jax.experimental.pallas import tpu as pltpu

EPS = 1e-6
NEG_INF = -1e9


# ------------------------------------------------------------------- kernel --

def _layer_norm(x, gamma, beta):
    # x: (S, H) f32 ; gamma/beta: (1, H) f32
    mean = jnp.mean(x, axis=-1, keepdims=True)
    var = jnp.mean((x - mean) ** 2, axis=-1, keepdims=True)
    return (x - mean) * jax.lax.rsqrt(var + EPS) * gamma + beta


def decoder_stack_kernel(
        x_ref, mem_ref,
        sa_lng, sa_lnb, sa_wq, sa_bq, sa_wk, sa_bk, sa_wv, sa_bv, sa_wo, sa_bo,
        ca_lng, ca_lnb, ca_wq, ca_bq, ca_wk, ca_bk, ca_wv, ca_bv, ca_wo, ca_bo,
        ff_lng, ff_lnb, ff_w1, ff_b1, ff_w2, ff_b2,
        fin_g, fin_b,
        out_ref, *, num_head, num_layer):
    """Full decoder stack for ONE batch element; activation stays on-chip."""
    Sq = x_ref.shape[1]
    H = x_ref.shape[2]

    x = x_ref[0].astype(jnp.float32)            # (Sq, H) residual stream (f32)
    mem_bf = mem_ref[0].astype(jnp.bfloat16)    # (Sk, H) only ever an MXU operand

    # Causal mask built ONCE (hoisted), as an additive bias reused by all layers.
    row = jax.lax.broadcasted_iota(jnp.int32, (Sq, Sq), 0)
    col = jax.lax.broadcasted_iota(jnp.int32, (Sq, Sq), 1)
    causal_bias = jnp.where(col <= row, 0.0, NEG_INF).astype(jnp.float32)  # (Sq, Sq)

    def mha(x_res, kv_bf, lng, lnb, wq, bq, wk, bk, wv, bv, wo, bo, mask_bias):
        # Pre-LN (f32 elementwise); bf16 only at MXU inputs.
        xn = _layer_norm(x_res, lng, lnb)
        xn_bf = xn.astype(jnp.bfloat16)
        kvb = xn_bf if kv_bf is None else kv_bf        # self-attn: reuse xn (no 2nd DMA)
        Skv = kvb.shape[0]

        # Per-head batched projections. Weights are pre-split to (nh, H, dh) and
        # 1/sqrt(dh) is pre-folded into wq/bq on the host.
        xb = jnp.broadcast_to(xn_bf[None], (num_head, Sq, H))
        kb = jnp.broadcast_to(kvb[None], (num_head, Skv, H))
        proj = (((2,), (1,)), ((0,), (0,)))            # contract H, batch over heads
        q = jax.lax.dot_general(xb, wq, proj, preferred_element_type=jnp.float32) + bq
        k = jax.lax.dot_general(kb, wk, proj, preferred_element_type=jnp.float32) + bk
        v = jax.lax.dot_general(kb, wv, proj, preferred_element_type=jnp.float32) + bv

        # Scores for all heads at once: (nh, Sq, Skv).
        s = jax.lax.dot_general(q.astype(jnp.bfloat16), k.astype(jnp.bfloat16),
                                (((2,), (2,)), ((0,), (0,))),
                                preferred_element_type=jnp.float32)
        if mask_bias is not None:
            s = s + mask_bias                          # broadcast over head axis
        s = s - jnp.max(s, axis=-1, keepdims=True)
        p = jnp.exp(s)
        p = p * pl.reciprocal(jnp.sum(p, axis=-1, keepdims=True), approx=True)

        ctx = jax.lax.dot_general(p.astype(jnp.bfloat16), v.astype(jnp.bfloat16),
                                  (((2,), (1,)), ((0,), (0,))),
                                  preferred_element_type=jnp.float32)   # (nh, Sq, dh)

        # Output projection via per-head slices of W_o, reduced over heads
        # (no lane-axis concatenate).
        o = jax.lax.dot_general(ctx.astype(jnp.bfloat16), wo,
                                (((2,), (1,)), ((0,), (0,))),
                                preferred_element_type=jnp.float32)     # (nh, Sq, H)
        return x_res + (jnp.sum(o, axis=0) + bo)

    def ffn(x_res, lng, lnb, w1, b1, w2, b2):
        xn = _layer_norm(x_res, lng, lnb)
        h = jnp.dot(xn.astype(jnp.bfloat16), w1,
                    preferred_element_type=jnp.float32) + b1
        h = jnp.maximum(h, 0.0)
        y = jnp.dot(h.astype(jnp.bfloat16), w2,
                    preferred_element_type=jnp.float32) + b2
        return x_res + y

    for li in range(num_layer):                        # static unroll (num_layer small)
        x = mha(x, None, sa_lng[li], sa_lnb[li], sa_wq[li], sa_bq[li],
                sa_wk[li], sa_bk[li], sa_wv[li], sa_bv[li],
                sa_wo[li], sa_bo[li], causal_bias)
        x = mha(x, mem_bf, ca_lng[li], ca_lnb[li], ca_wq[li], ca_bq[li],
                ca_wk[li], ca_bk[li], ca_wv[li], ca_bv[li],
                ca_wo[li], ca_bo[li], None)
        x = ffn(x, ff_lng[li], ff_lnb[li], ff_w1[li], ff_b1[li],
                ff_w2[li], ff_b2[li])

    out_ref[0] = _layer_norm(x, fin_g[...], fin_b[...]).astype(out_ref.dtype)


# ------------------------------------------------------------------ wrappers --

def pack_params(params, num_head):
    """Host-side re-layout: split heads, fold 1/sqrt(dh), stack layers, cast to bf16."""
    H = params["emb"].shape[1]
    dh = H // num_head
    scale = 1.0 / math.sqrt(dh)

    def split_in(w, b, s):
        # w: (H, H) -> (nh, H, dh) ; b: (1, H) -> (nh, 1, dh)
        w_h = (w * s).reshape(H, num_head, dh).transpose(1, 0, 2).astype(jnp.bfloat16)
        b_h = (b * s).reshape(1, num_head, dh).transpose(1, 0, 2).astype(jnp.float32)
        return w_h, b_h

    def pack_attn(p):
        lng, lnb, wq, bq, wk, bk, wv, bv, wo, bo = p
        wq_h, bq_h = split_in(wq, bq, scale)           # scale folded into Q proj
        wk_h, bk_h = split_in(wk, bk, 1.0)
        wv_h, bv_h = split_in(wv, bv, 1.0)
        wo_h = wo.reshape(num_head, dh, H).astype(jnp.bfloat16)
        return (lng, lnb, wq_h, bq_h, wk_h, bk_h, wv_h, bv_h, wo_h, bo)

    def pack_ffn(p):
        lng, lnb, w1, b1, w2, b2 = p
        return (lng, lnb, w1.astype(jnp.bfloat16), b1, w2.astype(jnp.bfloat16), b2)

    per_layer = []
    for lp in params["layers"]:
        per_layer.append(pack_attn(lp["self_attn"]) + pack_attn(lp["cross_attn"])
                         + pack_ffn(lp["ffn"]))
    stacked = tuple(jnp.stack(vals) for vals in zip(*per_layer))   # 26 stacked arrays
    g, b = params["final_ln"]
    return stacked + (g, b)


def decoder_forward(params, packed, mem, tokens, num_head):
    B, Sd = tokens.shape
    H = params["emb"].shape[1]
    num_layer = len(params["layers"])
    Se = mem.shape[1]

    # TODO(synk): `embeddings` module is unspecified in the reference; using the
    # standard lookup * sqrt(d_model) convention (Annotated-Transformer style).
    x = params["emb"][tokens] * math.sqrt(H)            # (B, Sd, H)
    x = (x + params["pe"][:Sd][None]).astype(jnp.float32)

    kernel = functools.partial(decoder_stack_kernel, num_head=num_head,
                               num_layer=num_layer)

    in_specs = [pl.BlockSpec((1, Sd, H), lambda b: (b, 0, 0)),
                pl.BlockSpec((1, Se, H), lambda b: (b, 0, 0))]
    for p in packed:                                     # grid-invariant weights
        in_specs.append(pl.BlockSpec(p.shape, lambda b, _n=p.ndim: (0,) * _n))

    return pl.pallas_call(
        kernel,
        out_shape=jax.ShapeDtypeStruct((B, Sd, H), jnp.float32),
        grid=(B,),
        in_specs=in_specs,
        out_specs=pl.BlockSpec((1, Sd, H), lambda b: (b, 0, 0)),
        compiler_params=pltpu.CompilerParams(dimension_semantics=("parallel",)),
    )(x, mem, *packed)


# ---------------------------------------------------------------- model glue --

def sinusoidal_pe(max_len, d_model):
    pos = jnp.arange(max_len, dtype=jnp.float32)[:, None]
    div = jnp.exp(jnp.arange(0, d_model, 2, dtype=jnp.float32)
                  * (-math.log(10000.0) / d_model))
    pe = jnp.zeros((max_len, d_model), jnp.float32)
    pe = pe.at[:, 0::2].set(jnp.sin(pos * div))
    pe = pe.at[:, 1::2].set(jnp.cos(pos * div))
    return pe


def init_params(key, vocab, num_head, hidden, mid_dim, num_layer, max_seq_len):
    def dense(k, fan_in, fan_out):
        return jax.random.normal(k, (fan_in, fan_out), jnp.float32) * 0.05

    keys = jax.random.split(key, 1 + num_layer)
    params = {
        "emb": jax.random.normal(keys[0], (vocab, hidden), jnp.float32) * 0.05,
        "pe": sinusoidal_pe(max_seq_len, hidden),
        "final_ln": (jnp.ones((1, hidden), jnp.float32),
                     jnp.zeros((1, hidden), jnp.float32)),
        "layers": [],
    }
    for li in range(num_layer):
        lk = jax.random.split(keys[1 + li], 10)

        def mha(k0, k1, k2, k3):
            return (jnp.ones((1, hidden), jnp.float32),      # ln gamma
                    jnp.zeros((1, hidden), jnp.float32),      # ln beta
                    dense(k0, hidden, hidden), jnp.zeros((1, hidden), jnp.float32),
                    dense(k1, hidden, hidden), jnp.zeros((1, hidden), jnp.float32),
                    dense(k2, hidden, hidden), jnp.zeros((1, hidden), jnp.float32),
                    dense(k3, hidden, hidden), jnp.zeros((1, hidden), jnp.float32))

        layer = {
            "self_attn": mha(lk[0], lk[1], lk[2], lk[3]),
            "cross_attn": mha(lk[4], lk[5], lk[6], lk[7]),
            "ffn": (jnp.ones((1, hidden), jnp.float32),
                    jnp.zeros((1, hidden), jnp.float32),
                    dense(lk[8], hidden, mid_dim), jnp.zeros((1, mid_dim), jnp.float32),
                    dense(lk[9], mid_dim, hidden), jnp.zeros((1, hidden), jnp.float32)),
        }
        params["layers"].append(layer)
    return params


# -------------------------------------------------------- pure-JAX reference --

def decoder_reference(params, mem, tokens, num_head):
    H = params["emb"].shape[1]
    dh = H // num_head
    x = params["emb"][tokens] * math.sqrt(H)
    x = x + params["pe"][: tokens.shape[1]][None]

    def ln(z, g, b):
        m = jnp.mean(z, -1, keepdims=True)
        v = jnp.mean((z - m) ** 2, -1, keepdims=True)
        return (z - m) * jax.lax.rsqrt(v + EPS) * g + b

    def mha(xq, kv, p, causal):
        lng, lnb, wq, bq, wk, bk, wv, bv, wo, bo = p
        xn = ln(xq, lng, lnb)
        kvin = xn if kv is None else kv
        q = xn @ wq + bq
        k = kvin @ wk + bk
        v = kvin @ wv + bv
        Bn, Sq, _ = q.shape
        Sk = k.shape[1]
        qh = q.reshape(Bn, Sq, num_head, dh).transpose(0, 2, 1, 3)
        kh = k.reshape(Bn, Sk, num_head, dh).transpose(0, 2, 1, 3)
        vh = v.reshape(Bn, Sk, num_head, dh).transpose(0, 2, 1, 3)
        s = jnp.einsum('bhqd,bhkd->bhqk', qh, kh) / math.sqrt(dh)
        if causal:
            m = jnp.tril(jnp.ones((Sq, Sk), bool))
            s = jnp.where(m, s, NEG_INF)
        pr = jax.nn.softmax(s, axis=-1)
        ctx = jnp.einsum('bhqk,bhkd->bhqd', pr, vh)
        ctx = ctx.transpose(0, 2, 1, 3).reshape(Bn, Sq, H)
        return xq + ctx @ wo + bo

    def ffn(xq, p):
        lng, lnb, w1, b1, w2, b2 = p
        xn = ln(xq, lng, lnb)
        return xq + jnp.maximum(xn @ w1 + b1, 0.0) @ w2 + b2

    for lp in params["layers"]:
        x = mha(x, None, lp["self_attn"], True)
        x = mha(x, mem, lp["cross_attn"], False)
        x = ffn(x, lp["ffn"])
    g, b = params["final_ln"]
    return ln(x, g, b)


# ---------------------------------------------------------------------- main --

if __name__ == "__main__":
    B = 2            # batch
    DEC_LEN = 8      # decoder (query) sequence length
    ENC_LEN = 8      # encoder memory sequence length
    HIDDEN = 32
    NUM_HEAD = 4
    MID_DIM = 64
    NUM_LAYER = 2
    MAX_SEQ_LEN = 16
    VOCAB = 50

    key = jax.random.PRNGKey(0)
    k_params, k_mem, k_tok = jax.random.split(key, 3)

    params = init_params(k_params, VOCAB, NUM_HEAD, HIDDEN, MID_DIM,
                         NUM_LAYER, MAX_SEQ_LEN)
    mem = jax.random.normal(k_mem, (B, ENC_LEN, HIDDEN), jnp.float32)
    tokens = jax.random.randint(k_tok, (B, DEC_LEN), 0, VOCAB)

    packed = pack_params(params, NUM_HEAD)
    out = decoder_forward(params, packed, mem, tokens, NUM_HEAD)
    out = jax.block_until_ready(out)

    assert out.shape == (B, DEC_LEN, HIDDEN), out.shape
    assert bool(jnp.all(jnp.isfinite(out)))

    # Loose tolerance: kernel uses bf16 MXU inputs + approx reciprocal.
    ref = decoder_reference(params, mem, tokens, NUM_HEAD)
    max_diff = float(jnp.max(jnp.abs(out - ref)))
    assert max_diff < 0.15, f"max abs diff vs reference = {max_diff}"

    print("KERNEL_OK")
</pallas_src>

<mosaic_0001>
module attributes {stable_mosaic.version = 11 : i64} {
  func.func @decoder_stack_kernel(%arg0: i32, %arg1: memref<1x8x32xf32, #tpu.memory_space<vmem>>, %arg2: memref<1x8x32xf32, #tpu.memory_space<vmem>>, %arg3: memref<2x1x32xf32, #tpu.memory_space<vmem>>, %arg4: memref<2x1x32xf32, #tpu.memory_space<vmem>>, %arg5: memref<2x4x32x8xbf16, #tpu.memory_space<vmem>>, %arg6: memref<2x4x1x8xf32, #tpu.memory_space<vmem>>, %arg7: memref<2x4x32x8xbf16, #tpu.memory_space<vmem>>, %arg8: memref<2x4x1x8xf32, #tpu.memory_space<vmem>>, %arg9: memref<2x4x32x8xbf16, #tpu.memory_space<vmem>>, %arg10: memref<2x4x1x8xf32, #tpu.memory_space<vmem>>, %arg11: memref<2x4x8x32xbf16, #tpu.memory_space<vmem>>, %arg12: memref<2x1x32xf32, #tpu.memory_space<vmem>>, %arg13: memref<2x1x32xf32, #tpu.memory_space<vmem>>, %arg14: memref<2x1x32xf32, #tpu.memory_space<vmem>>, %arg15: memref<2x4x32x8xbf16, #tpu.memory_space<vmem>>, %arg16: memref<2x4x1x8xf32, #tpu.memory_space<vmem>>, %arg17: memref<2x4x32x8xbf16, #tpu.memory_space<vmem>>, %arg18: memref<2x4x1x8xf32, #tpu.memory_space<vmem>>, %arg19: memref<2x4x32x8xbf16, #tpu.memory_space<vmem>>, %arg20: memref<2x4x1x8xf32, #tpu.memory_space<vmem>>, %arg21: memref<2x4x8x32xbf16, #tpu.memory_space<vmem>>, %arg22: memref<2x1x32xf32, #tpu.memory_space<vmem>>, %arg23: memref<2x1x32xf32, #tpu.memory_space<vmem>>, %arg24: memref<2x1x32xf32, #tpu.memory_space<vmem>>, %arg25: memref<2x32x64xbf16, #tpu.memory_space<vmem>>, %arg26: memref<2x1x64xf32, #tpu.memory_space<vmem>>, %arg27: memref<2x64x32xbf16, #tpu.memory_space<vmem>>, %arg28: memref<2x1x32xf32, #tpu.memory_space<vmem>>, %arg29: memref<1x32xf32, #tpu.memory_space<vmem>>, %arg30: memref<1x32xf32, #tpu.memory_space<vmem>>, %arg31: memref<1x8x32xf32, #tpu.memory_space<vmem>>) attributes {dimension_semantics = [#tpu.dimension_semantics<parallel>], iteration_bounds = array<i64: 2>, scalar_prefetch = 0 : i64, scratch_operands = 0 : i64, tpu.core_type = #tpu.core_type<tc>, window_params = [{transform_indices = @transform_0, window_bounds = array<i64: 1, 8, 32>}, {transform_indices = @transform_1, window_bounds = array<i64: 1, 8, 32>}, {pipeline_mode = #tpu.pipeline_mode<synchronous>, transform_indices = @transform_2, window_bounds = array<i64: 2, 1, 32>}, {pipeline_mode = #tpu.pipeline_mode<synchronous>, transform_indices = @transform_3, window_bounds = array<i64: 2, 1, 32>}, {pipeline_mode = #tpu.pipeline_mode<synchronous>, transform_indices = @transform_4, window_bounds = array<i64: 2, 4, 32, 8>}, {pipeline_mode = #tpu.pipeline_mode<synchronous>, transform_indices = @transform_5, window_bounds = array<i64: 2, 4, 1, 8>}, {pipeline_mode = #tpu.pipeline_mode<synchronous>, transform_indices = @transform_6, window_bounds = array<i64: 2, 4, 32, 8>}, {pipeline_mode = #tpu.pipeline_mode<synchronous>, transform_indices = @transform_7, window_bounds = array<i64: 2, 4, 1, 8>}, {pipeline_mode = #tpu.pipeline_mode<synchronous>, transform_indices = @transform_8, window_bounds = array<i64: 2, 4, 32, 8>}, {pipeline_mode = #tpu.pipeline_mode<synchronous>, transform_indices = @transform_9, window_bounds = array<i64: 2, 4, 1, 8>}, {pipeline_mode = #tpu.pipeline_mode<synchronous>, transform_indices = @transform_10, window_bounds = array<i64: 2, 4, 8, 32>}, {pipeline_mode = #tpu.pipeline_mode<synchronous>, transform_indices = @transform_11, window_bounds = array<i64: 2, 1, 32>}, {pipeline_mode = #tpu.pipeline_mode<synchronous>, transform_indices = @transform_12, window_bounds = array<i64: 2, 1, 32>}, {pipeline_mode = #tpu.pipeline_mode<synchronous>, transform_indices = @transform_13, window_bounds = array<i64: 2, 1, 32>}, {pipeline_mode = #tpu.pipeline_mode<synchronous>, transform_indices = @transform_14, window_bounds = array<i64: 2, 4, 32, 8>}, {pipeline_mode = #tpu.pipeline_mode<synchronous>, transform_indices = @transform_15, window_bounds = array<i64: 2, 4, 1, 8>}, {pipeline_mode = #tpu.pipeline_mode<synchronous>, transform_indices = @transform_16, window_bounds = array<i64: 2, 4, 32, 8>}, {pipeline_mode = #tpu.pipeline_mode<synchronous>, transform_indices = @transform_17, window_bounds = array<i64: 2, 4, 1, 8>}, {pipeline_mode = #tpu.pipeline_mode<synchronous>, transform_indices = @transform_18, window_bounds = array<i64: 2, 4, 32, 8>}, {pipeline_mode = #tpu.pipeline_mode<synchronous>, transform_indices = @transform_19, window_bounds = array<i64: 2, 4, 1, 8>}, {pipeline_mode = #tpu.pipeline_mode<synchronous>, transform_indices = @transform_20, window_bounds = array<i64: 2, 4, 8, 32>}, {pipeline_mode = #tpu.pipeline_mode<synchronous>, transform_indices = @transform_21, window_bounds = array<i64: 2, 1, 32>}, {pipeline_mode = #tpu.pipeline_mode<synchronous>, transform_indices = @transform_22, window_bounds = array<i64: 2, 1, 32>}, {pipeline_mode = #tpu.pipeline_mode<synchronous>, transform_indices = @transform_23, window_bounds = array<i64: 2, 1, 32>}, {pipeline_mode = #tpu.pipeline_mode<synchronous>, transform_indices = @transform_24, window_bounds = array<i64: 2, 32, 64>}, {pipeline_mode = #tpu.pipeline_mode<synchronous>, transform_indices = @transform_25, window_bounds = array<i64: 2, 1, 64>}, {pipeline_mode = #tpu.pipeline_mode<synchronous>, transform_indices = @transform_26, window_bounds = array<i64: 2, 64, 32>}, {pipeline_mode = #tpu.pipeline_mode<synchronous>, transform_indices = @transform_27, window_bounds = array<i64: 2, 1, 32>}, {pipeline_mode = #tpu.pipeline_mode<synchronous>, transform_indices = @transform_28, window_bounds = array<i64: 1, 32>}, {pipeline_mode = #tpu.pipeline_mode<synchronous>, transform_indices = @transform_29, window_bounds = array<i64: 1, 32>}, {transform_indices = @transform_30, window_bounds = array<i64: 1, 8, 32>}]} {
    %c0 = arith.constant 0 : index
    %c0_0 = arith.constant 0 : index
    %c0_1 = arith.constant 0 : index
    %0 = vector.load %arg1[%c0, %c0_0, %c0_1] : memref<1x8x32xf32, #tpu.memory_space<vmem>>, vector<1x8x32xf32>
    %1 = vector.shape_cast %0 : vector<1x8x32xf32> to vector<8x32xf32>
    %c0_2 = arith.constant 0 : index
    %c0_3 = arith.constant 0 : index
    %c0_4 = arith.constant 0 : index
    %2 = vector.load %arg2[%c0_2, %c0_3, %c0_4] : memref<1x8x32xf32, #tpu.memory_space<vmem>>, vector<1x8x32xf32>
    %3 = vector.shape_cast %2 : vector<1x8x32xf32> to vector<8x32xf32>
    %4 = arith.truncf %3 : vector<8x32xf32> to vector<8x32xbf16>
    %5 = tpu.iota {dimensions = array<i32: 0>} : vector<8x8xi32>
    %6 = tpu.iota {dimensions = array<i32: 1>} : vector<8x8xi32>
    %7 = arith.cmpi sle, %6, %5 : vector<8x8xi32>
    %cst = arith.constant 0.000000e+00 : f32
    %cst_5 = arith.constant -1.000000e+09 : f32
    %8 = vector.broadcast %cst : f32 to vector<8x8xf32>
    %9 = vector.broadcast %cst_5 : f32 to vector<8x8xf32>
    %10 = arith.select %7, %8, %9 : vector<8x8xi1>, vector<8x8xf32>
    %c0_6 = arith.constant 0 : index
    %c0_7 = arith.constant 0 : index
    %c0_8 = arith.constant 0 : index
    %11 = vector.load %arg3[%c0_6, %c0_7, %c0_8] : memref<2x1x32xf32, #tpu.memory_space<vmem>>, vector<1x1x32xf32>
    %12 = vector.shape_cast %11 : vector<1x1x32xf32> to vector<1x32xf32>
    %c0_9 = arith.constant 0 : index
    %c0_10 = arith.constant 0 : index
    %c0_11 = arith.constant 0 : index
    %13 = vector.load %arg4[%c0_9, %c0_10, %c0_11] : memref<2x1x32xf32, #tpu.memory_space<vmem>>, vector<1x1x32xf32>
    %14 = vector.shape_cast %13 : vector<1x1x32xf32> to vector<1x32xf32>
    %c0_12 = arith.constant 0 : index
    %c0_13 = arith.constant 0 : index
    %c0_14 = arith.constant 0 : index
    %c0_15 = arith.constant 0 : index
    %15 = vector.load %arg5[%c0_12, %c0_13, %c0_14, %c0_15] : memref<2x4x32x8xbf16, #tpu.memory_space<vmem>>, vector<1x4x32x8xbf16>
    %16 = vector.shape_cast %15 : vector<1x4x32x8xbf16> to vector<4x32x8xbf16>
    %c0_16 = arith.constant 0 : index
    %c0_17 = arith.constant 0 : index
    %c0_18 = arith.constant 0 : index
    %c0_19 = arith.constant 0 : index
    %17 = vector.load %arg6[%c0_16, %c0_17, %c0_18, %c0_19] : memref<2x4x1x8xf32, #tpu.memory_space<vmem>>, vector<1x4x1x8xf32>
    %18 = vector.shape_cast %17 : vector<1x4x1x8xf32> to vector<4x1x8xf32>
    %c0_20 = arith.constant 0 : index
    %c0_21 = arith.constant 0 : index
    %c0_22 = arith.constant 0 : index
    %c0_23 = arith.constant 0 : index
    %19 = vector.load %arg7[%c0_20, %c0_21, %c0_22, %c0_23] : memref<2x4x32x8xbf16, #tpu.memory_space<vmem>>, vector<1x4x32x8xbf16>
    %20 = vector.shape_cast %19 : vector<1x4x32x8xbf16> to vector<4x32x8xbf16>
    %c0_24 = arith.constant 0 : index
    %c0_25 = arith.constant 0 : index
    %c0_26 = arith.constant 0 : index
    %c0_27 = arith.constant 0 : index
    %21 = vector.load %arg8[%c0_24, %c0_25, %c0_26, %c0_27] : memref<2x4x1x8xf32, #tpu.memory_space<vmem>>, vector<1x4x1x8xf32>
    %22 = vector.shape_cast %21 : vector<1x4x1x8xf32> to vector<4x1x8xf32>
    %c0_28 = arith.constant 0 : index
    %c0_29 = arith.constant 0 : index
    %c0_30 = arith.constant 0 : index
    %c0_31 = arith.constant 0 : index
    %23 = vector.load %arg9[%c0_28, %c0_29, %c0_30, %c0_31] : memref<2x4x32x8xbf16, #tpu.memory_space<vmem>>, vector<1x4x32x8xbf16>
    %24 = vector.shape_cast %23 : vector<1x4x32x8xbf16> to vector<4x32x8xbf16>
    %c0_32 = arith.constant 0 : index
    %c0_33 = arith.constant 0 : index
    %c0_34 = arith.constant 0 : index
    %c0_35 = arith.constant 0 : index
    %25 = vector.load %arg10[%c0_32, %c0_33, %c0_34, %c0_35] : memref<2x4x1x8xf32, #tpu.memory_space<vmem>>, vector<1x4x1x8xf32>
    %26 = vector.shape_cast %25 : vector<1x4x1x8xf32> to vector<4x1x8xf32>
    %c0_36 = arith.constant 0 : index
    %c0_37 = arith.constant 0 : index
    %c0_38 = arith.constant 0 : index
    %c0_39 = arith.constant 0 : index
    %27 = vector.load %arg11[%c0_36, %c0_37, %c0_38, %c0_39] : memref<2x4x8x32xbf16, #tpu.memory_space<vmem>>, vector<1x4x8x32xbf16>
    %28 = vector.shape_cast %27 : vector<1x4x8x32xbf16> to vector<4x8x32xbf16>
    %c0_40 = arith.constant 0 : index
    %c0_41 = arith.constant 0 : index
    %c0_42 = arith.constant 0 : index
    %29 = vector.load %arg12[%c0_40, %c0_41, %c0_42] : memref<2x1x32xf32, #tpu.memory_space<vmem>>, vector<1x1x32xf32>
    %30 = vector.shape_cast %29 : vector<1x1x32xf32> to vector<1x32xf32>
    %cst_43 = arith.constant dense<0.000000e+00> : vector<8xf32>
    %31 = vector.multi_reduction <add>, %1, %cst_43 [1] : vector<8x32xf32> to vector<8xf32>
    %32 = vector.shape_cast %31 : vector<8xf32> to vector<8x1xf32>
    %cst_44 = arith.constant 3.200000e+01 : f32
    %33 = vector.broadcast %cst_44 : f32 to vector<8x1xf32>
    %34 = arith.divf %32, %33 : vector<8x1xf32>
    %35 = vector.broadcast %34 : vector<8x1xf32> to vector<8x32xf32>
    %36 = arith.subf %1, %35 : vector<8x32xf32>
    %37 = arith.mulf %36, %36 : vector<8x32xf32>
    %cst_45 = arith.constant dense<0.000000e+00> : vector<8xf32>
    %38 = vector.multi_reduction <add>, %37, %cst_45 [1] : vector<8x32xf32> to vector<8xf32>
    %39 = vector.shape_cast %38 : vector<8xf32> to vector<8x1xf32>
    %cst_46 = arith.constant 3.200000e+01 : f32
    %40 = vector.broadcast %cst_46 : f32 to vector<8x1xf32>
    %41 = arith.divf %39, %40 : vector<8x1xf32>
    %42 = vector.broadcast %34 : vector<8x1xf32> to vector<8x32xf32>
    %43 = arith.subf %1, %42 : vector<8x32xf32>
    %cst_47 = arith.constant 9.99999997E-7 : f32
    %44 = vector.broadcast %cst_47 : f32 to vector<8x1xf32>
    %45 = arith.addf %41, %44 : vector<8x1xf32>
    %46 = math.rsqrt %45 : vector<8x1xf32>
    %47 = vector.broadcast %46 : vector<8x1xf32> to vector<8x32xf32>
    %48 = arith.mulf %43, %47 : vector<8x32xf32>
    %49 = vector.broadcast %12 : vector<1x32xf32> to vector<8x32xf32>
    %50 = arith.mulf %48, %49 : vector<8x32xf32>
    %51 = vector.broadcast %14 : vector<1x32xf32> to vector<8x32xf32>
    %52 = arith.addf %50, %51 : vector<8x32xf32>
    %53 = arith.truncf %52 : vector<8x32xf32> to vector<8x32xbf16>
    %54 = vector.shape_cast %53 : vector<8x32xbf16> to vector<1x8x32xbf16>
    %55 = vector.shape_cast %54 : vector<1x8x32xbf16> to vector<1x8x32xbf16>
    %56 = vector.broadcast %55 : vector<1x8x32xbf16> to vector<4x8x32xbf16>
    %57 = vector.shape_cast %53 : vector<8x32xbf16> to vector<1x8x32xbf16>
    %58 = vector.shape_cast %57 : vector<1x8x32xbf16> to vector<1x8x32xbf16>
    %59 = vector.broadcast %58 : vector<1x8x32xbf16> to vector<4x8x32xbf16>
    %cst_48 = arith.constant dense<0.000000e+00> : vector<4x8x8xf32>
    %60 = tpu.matmul %56, %16, %cst_48 {dimension_numbers = #tpu.dot_dimension_numbers<[2], [1], [1], [2], [0, 0, 0, 1, 1, 2], [0], [0]>} : vector<4x8x32xbf16>, vector<4x32x8xbf16>, vector<4x8x8xf32> -> vector<4x8x8xf32>
    %61 = vector.broadcast %18 : vector<4x1x8xf32> to vector<4x8x8xf32>
    %62 = arith.addf %60, %61 : vector<4x8x8xf32>
    %cst_49 = arith.constant dense<0.000000e+00> : vector<4x8x8xf32>
    %63 = tpu.matmul %59, %20, %cst_49 {dimension_numbers = #tpu.dot_dimension_numbers<[2], [1], [1], [2], [0, 0, 0, 1, 1, 2], [0], [0]>} : vector<4x8x32xbf16>, vector<4x32x8xbf16>, vector<4x8x8xf32> -> vector<4x8x8xf32>
    %64 = vector.broadcast %22 : vector<4x1x8xf32> to vector<4x8x8xf32>
    %65 = arith.addf %63, %64 : vector<4x8x8xf32>
    %cst_50 = arith.constant dense<0.000000e+00> : vector<4x8x8xf32>
    %66 = tpu.matmul %59, %24, %cst_50 {dimension_numbers = #tpu.dot_dimension_numbers<[2], [1], [1], [2], [0, 0, 0, 1, 1, 2], [0], [0]>} : vector<4x8x32xbf16>, vector<4x32x8xbf16>, vector<4x8x8xf32> -> vector<4x8x8xf32>
    %67 = vector.broadcast %26 : vector<4x1x8xf32> to vector<4x8x8xf32>
    %68 = arith.addf %66, %67 : vector<4x8x8xf32>
    %69 = arith.truncf %62 : vector<4x8x8xf32> to vector<4x8x8xbf16>
    %70 = arith.truncf %65 : vector<4x8x8xf32> to vector<4x8x8xbf16>
    %cst_51 = arith.constant dense<0.000000e+00> : vector<4x8x8xf32>
    %71 = tpu.matmul %69, %70, %cst_51 {dimension_numbers = #tpu.dot_dimension_numbers<[2], [2], [1], [1], [0, 0, 0, 1, 1, 1], [0], [0]>} : vector<4x8x8xbf16>, vector<4x8x8xbf16>, vector<4x8x8xf32> -> vector<4x8x8xf32>
    %72 = vector.shape_cast %10 : vector<8x8xf32> to vector<1x8x8xf32>
    %73 = vector.broadcast %72 : vector<1x8x8xf32> to vector<4x8x8xf32>
    %74 = arith.addf %71, %73 : vector<4x8x8xf32>
    %cst_52 = arith.constant dense<0xFF800000> : vector<4x8xf32>
    %75 = vector.multi_reduction <maximumf>, %74, %cst_52 [2] : vector<4x8x8xf32> to vector<4x8xf32>
    %76 = vector.shape_cast %75 : vector<4x8xf32> to vector<4x8x1xf32>
    %77 = vector.broadcast %76 : vector<4x8x1xf32> to vector<4x8x8xf32>
    %78 = arith.subf %74, %77 : vector<4x8x8xf32>
    %79 = math.exp %78 : vector<4x8x8xf32>
    %cst_53 = arith.constant dense<0.000000e+00> : vector<4x8xf32>
    %80 = vector.multi_reduction <add>, %79, %cst_53 [2] : vector<4x8x8xf32> to vector<4x8xf32>
    %81 = vector.shape_cast %80 : vector<4x8xf32> to vector<4x8x1xf32>
    %82 = tpu.reciprocal %81 {approx = true} : vector<4x8x1xf32> -> vector<4x8x1xf32>
    %83 = vector.broadcast %82 : vector<4x8x1xf32> to vector<4x8x8xf32>
    %84 = arith.mulf %79, %83 : vector<4x8x8xf32>
    %85 = arith.truncf %84 : vector<4x8x8xf32> to vector<4x8x8xbf16>
    %86 = arith.truncf %68 : vector<4x8x8xf32> to vector<4x8x8xbf16>
    %cst_54 = arith.constant dense<0.000000e+00> : vector<4x8x8xf32>
    %87 = tpu.matmul %85, %86, %cst_54 {dimension_numbers = #tpu.dot_dimension_numbers<[2], [1], [1], [2], [0, 0, 0, 1, 1, 2], [0], [0]>} : vector<4x8x8xbf16>, vector<4x8x8xbf16>, vector<4x8x8xf32> -> vector<4x8x8xf32>
    %88 = arith.truncf %87 : vector<4x8x8xf32> to vector<4x8x8xbf16>
    %cst_55 = arith.constant dense<0.000000e+00> : vector<4x8x32xf32>
    %89 = tpu.matmul %88, %28, %cst_55 {dimension_numbers = #tpu.dot_dimension_numbers<[2], [1], [1], [2], [0, 0, 0, 1, 1, 2], [0], [0]>} : vector<4x8x8xbf16>, vector<4x8x32xbf16>, vector<4x8x32xf32> -> vector<4x8x32xf32>
    %cst_56 = arith.constant dense<0.000000e+00> : vector<8x32xf32>
    %90 = vector.multi_reduction <add>, %89, %cst_56 [0] : vector<4x8x32xf32> to vector<8x32xf32>
    %91 = vector.broadcast %30 : vector<1x32xf32> to vector<8x32xf32>
    %92 = arith.addf %90, %91 : vector<8x32xf32>
    %93 = arith.addf %1, %92 : vector<8x32xf32>
    %c0_57 = arith.constant 0 : index
    %c0_58 = arith.constant 0 : index
    %c0_59 = arith.constant 0 : index
    %94 = vector.load %arg13[%c0_57, %c0_58, %c0_59] : memref<2x1x32xf32, #tpu.memory_space<vmem>>, vector<1x1x32xf32>
    %95 = vector.shape_cast %94 : vector<1x1x32xf32> to vector<1x32xf32>
    %c0_60 = arith.constant 0 : index
    %c0_61 = arith.constant 0 : index
    %c0_62 = arith.constant 0 : index
    %96 = vector.load %arg14[%c0_60, %c0_61, %c0_62] : memref<2x1x32xf32, #tpu.memory_space<vmem>>, vector<1x1x32xf32>
    %97 = vector.shape_cast %96 : vector<1x1x32xf32> to vector<1x32xf32>
    %c0_63 = arith.constant 0 : index
    %c0_64 = arith.constant 0 : index
    %c0_65 = arith.constant 0 : index
    %c0_66 = arith.constant 0 : index
    %98 = vector.load %arg15[%c0_63, %c0_64, %c0_65, %c0_66] : memref<2x4x32x8xbf16, #tpu.memory_space<vmem>>, vector<1x4x32x8xbf16>
    %99 = vector.shape_cast %98 : vector<1x4x32x8xbf16> to vector<4x32x8xbf16>
    %c0_67 = arith.constant 0 : index
    %c0_68 = arith.constant 0 : index
    %c0_69 = arith.constant 0 : index
    %c0_70 = arith.constant 0 : index
    %100 = vector.load %arg16[%c0_67, %c0_68, %c0_69, %c0_70] : memref<2x4x1x8xf32, #tpu.memory_space<vmem>>, vector<1x4x1x8xf32>
    %101 = vector.shape_cast %100 : vector<1x4x1x8xf32> to vector<4x1x8xf32>
    %c0_71 = arith.constant 0 : index
    %c0_72 = arith.constant 0 : index
    %c0_73 = arith.constant 0 : index
    %c0_74 = arith.constant 0 : index
    %102 = vector.load %arg17[%c0_71, %c0_72, %c0_73, %c0_74] : memref<2x4x32x8xbf16, #tpu.memory_space<vmem>>, vector<1x4x32x8xbf16>
    %103 = vector.shape_cast %102 : vector<1x4x32x8xbf16> to vector<4x32x8xbf16>
    %c0_75 = arith.constant 0 : index
    %c0_76 = arith.constant 0 : index
    %c0_77 = arith.constant 0 : index
    %c0_78 = arith.constant 0 : index
    %104 = vector.load %arg18[%c0_75, %c0_76, %c0_77, %c0_78] : memref<2x4x1x8xf32, #tpu.memory_space<vmem>>, vector<1x4x1x8xf32>
    %105 = vector.shape_cast %104 : vector<1x4x1x8xf32> to vector<4x1x8xf32>
    %c0_79 = arith.constant 0 : index
    %c0_80 = arith.constant 0 : index
    %c0_81 = arith.constant 0 : index
    %c0_82 = arith.constant 0 : index
    %106 = vector.load %arg19[%c0_79, %c0_80, %c0_81, %c0_82] : memref<2x4x32x8xbf16, #tpu.memory_space<vmem>>, vector<1x4x32x8xbf16>
    %107 = vector.shape_cast %106 : vector<1x4x32x8xbf16> to vector<4x32x8xbf16>
    %c0_83 = arith.constant 0 : index
    %c0_84 = arith.constant 0 : index
    %c0_85 = arith.constant 0 : index
    %c0_86 = arith.constant 0 : index
    %108 = vector.load %arg20[%c0_83, %c0_84, %c0_85, %c0_86] : memref<2x4x1x8xf32, #tpu.memory_space<vmem>>, vector<1x4x1x8xf32>
    %109 = vector.shape_cast %108 : vector<1x4x1x8xf32> to vector<4x1x8xf32>
    %c0_87 = arith.constant 0 : index
    %c0_88 = arith.constant 0 : index
    %c0_89 = arith.constant 0 : index
    %c0_90 = arith.constant 0 : index
    %110 = vector.load %arg21[%c0_87, %c0_88, %c0_89, %c0_90] : memref<2x4x8x32xbf16, #tpu.memory_space<vmem>>, vector<1x4x8x32xbf16>
    %111 = vector.shape_cast %110 : vector<1x4x8x32xbf16> to vector<4x8x32xbf16>
    %c0_91 = arith.constant 0 : index
    %c0_92 = arith.constant 0 : index
    %c0_93 = arith.constant 0 : index
    %112 = vector.load %arg22[%c0_91, %c0_92, %c0_93] : memref<2x1x32xf32, #tpu.memory_space<vmem>>, vector<1x1x32xf32>
    %113 = vector.shape_cast %112 : vector<1x1x32xf32> to vector<1x32xf32>
    %cst_94 = arith.constant dense<0.000000e+00> : vector<8xf32>
    %114 = vector.multi_reduction <add>, %93, %cst_94 [1] : vector<8x32xf32> to vector<8xf32>
    %115 = vector.shape_cast %114 : vector<8xf32> to vector<8x1xf32>
    %cst_95 = arith.constant 3.200000e+01 : f32
    %116 = vector.broadcast %cst_95 : f32 to vector<8x1xf32>
    %117 = arith.divf %115, %116 : vector<8x1xf32>
    %118 = vector.broadcast %117 : vector<8x1xf32> to vector<8x32xf32>
    %119 = arith.subf %93, %118 : vector<8x32xf32>
    %120 = arith.mulf %119, %119 : vector<8x32xf32>
    %cst_96 = arith.constant dense<0.000000e+00> : vector<8xf32>
    %121 = vector.multi_reduction <add>, %120, %cst_96 [1] : vector<8x32xf32> to vector<8xf32>
    %122 = vector.shape_cast %121 : vector<8xf32> to vector<8x1xf32>
    %cst_97 = arith.constant 3.200000e+01 : f32
    %123 = vector.broadcast %cst_97 : f32 to vector<8x1xf32>
    %124 = arith.divf %122, %123 : vector<8x1xf32>
    %125 = vector.broadcast %117 : vector<8x1xf32> to vector<8x32xf32>
    %126 = arith.subf %93, %125 : vector<8x32xf32>
    %cst_98 = arith.constant 9.99999997E-7 : f32
    %127 = vector.broadcast %cst_98 : f32 to vector<8x1xf32>
    %128 = arith.addf %124, %127 : vector<8x1xf32>
    %129 = math.rsqrt %128 : vector<8x1xf32>
    %130 = vector.broadcast %129 : vector<8x1xf32> to vector<8x32xf32>
    %131 = arith.mulf %126, %130 : vector<8x32xf32>
    %132 = vector.broadcast %95 : vector<1x32xf32> to vector<8x32xf32>
    %133 = arith.mulf %131, %132 : vector<8x32xf32>
    %134 = vector.broadcast %97 : vector<1x32xf32> to vector<8x32xf32>
    %135 = arith.addf %133, %134 : vector<8x32xf32>
    %136 = arith.truncf %135 : vector<8x32xf32> to vector<8x32xbf16>
    %137 = vector.shape_cast %136 : vector<8x32xbf16> to vector<1x8x32xbf16>
    %138 = vector.shape_cast %137 : vector<1x8x32xbf16> to vector<1x8x32xbf16>
    %139 = vector.broadcast %138 : vector<1x8x32xbf16> to vector<4x8x32xbf16>
    %140 = vector.shape_cast %4 : vector<8x32xbf16> to vector<1x8x32xbf16>
    %141 = vector.shape_cast %140 : vector<1x8x32xbf16> to vector<1x8x32xbf16>
    %142 = vector.broadcast %141 : vector<1x8x32xbf16> to vector<4x8x32xbf16>
    %cst_99 = arith.constant dense<0.000000e+00> : vector<4x8x8xf32>
    %143 = tpu.matmul %139, %99, %cst_99 {dimension_numbers = #tpu.dot_dimension_numbers<[2], [1], [1], [2], [0, 0, 0, 1, 1, 2], [0], [0]>} : vector<4x8x32xbf16>, vector<4x32x8xbf16>, vector<4x8x8xf32> -> vector<4x8x8xf32>
    %144 = vector.broadcast %101 : vector<4x1x8xf32> to vector<4x8x8xf32>
    %145 = arith.addf %143, %144 : vector<4x8x8xf32>
    %cst_100 = arith.constant dense<0.000000e+00> : vector<4x8x8xf32>
    %146 = tpu.matmul %142, %103, %cst_100 {dimension_numbers = #tpu.dot_dimension_numbers<[2], [1], [1], [2], [0, 0, 0, 1, 1, 2], [0], [0]>} : vector<4x8x32xbf16>, vector<4x32x8xbf16>, vector<4x8x8xf32> -> vector<4x8x8xf32>
    %147 = vector.broadcast %105 : vector<4x1x8xf32> to vector<4x8x8xf32>
    %148 = arith.addf %146, %147 : vector<4x8x8xf32>
    %cst_101 = arith.constant dense<0.000000e+00> : vector<4x8x8xf32>
    %149 = tpu.matmul %142, %107, %cst_101 {dimension_numbers = #tpu.dot_dimension_numbers<[2], [1], [1], [2], [0, 0, 0, 1, 1, 2], [0], [0]>} : vector<4x8x32xbf16>, vector<4x32x8xbf16>, vector<4x8x8xf32> -> vector<4x8x8xf32>
    %150 = vector.broadcast %109 : vector<4x1x8xf32> to vector<4x8x8xf32>
    %151 = arith.addf %149, %150 : vector<4x8x8xf32>
    %152 = arith.truncf %145 : vector<4x8x8xf32> to vector<4x8x8xbf16>
    %153 = arith.truncf %148 : vector<4x8x8xf32> to vector<4x8x8xbf16>
    %cst_102 = arith.constant dense<0.000000e+00> : vector<4x8x8xf32>
    %154 = tpu.matmul %152, %153, %cst_102 {dimension_numbers = #tpu.dot_dimension_numbers<[2], [2], [1], [1], [0, 0, 0, 1, 1, 1], [0], [0]>} : vector<4x8x8xbf16>, vector<4x8x8xbf16>, vector<4x8x8xf32> -> vector<4x8x8xf32>
    %cst_103 = arith.constant dense<0xFF800000> : vector<4x8xf32>
    %155 = vector.multi_reduction <maximumf>, %154, %cst_103 [2] : vector<4x8x8xf32> to vector<4x8xf32>
    %156 = vector.shape_cast %155 : vector<4x8xf32> to vector<4x8x1xf32>
    %157 = vector.broadcast %156 : vector<4x8x1xf32> to vector<4x8x8xf32>
    %158 = arith.subf %154, %157 : vector<4x8x8xf32>
    %159 = math.exp %158 : vector<4x8x8xf32>
    %cst_104 = arith.constant dense<0.000000e+00> : vector<4x8xf32>
    %160 = vector.multi_reduction <add>, %159, %cst_104 [2] : vector<4x8x8xf32> to vector<4x8xf32>
    %161 = vector.shape_cast %160 : vector<4x8xf32> to vector<4x8x1xf32>
    %162 = tpu.reciprocal %161 {approx = true} : vector<4x8x1xf32> -> vector<4x8x1xf32>
    %163 = vector.broadcast %162 : vector<4x8x1xf32> to vector<4x8x8xf32>
    %164 = arith.mulf %159, %163 : vector<4x8x8xf32>
    %165 = arith.truncf %164 : vector<4x8x8xf32> to vector<4x8x8xbf16>
    %166 = arith.truncf %151 : vector<4x8x8xf32> to vector<4x8x8xbf16>
    %cst_105 = arith.constant dense<0.000000e+00> : vector<4x8x8xf32>
    %167 = tpu.matmul %165, %166, %cst_105 {dimension_numbers = #tpu.dot_dimension_numbers<[2], [1], [1], [2], [0, 0, 0, 1, 1, 2], [0], [0]>} : vector<4x8x8xbf16>, vector<4x8x8xbf16>, vector<4x8x8xf32> -> vector<4x8x8xf32>
    %168 = arith.truncf %167 : vector<4x8x8xf32> to vector<4x8x8xbf16>
    %cst_106 = arith.constant dense<0.000000e+00> : vector<4x8x32xf32>
    %169 = tpu.matmul %168, %111, %cst_106 {dimension_numbers = #tpu.dot_dimension_numbers<[2], [1], [1], [2], [0, 0, 0, 1, 1, 2], [0], [0]>} : vector<4x8x8xbf16>, vector<4x8x32xbf16>, vector<4x8x32xf32> -> vector<4x8x32xf32>
    %cst_107 = arith.constant dense<0.000000e+00> : vector<8x32xf32>
    %170 = vector.multi_reduction <add>, %169, %cst_107 [0] : vector<4x8x32xf32> to vector<8x32xf32>
    %171 = vector.broadcast %113 : vector<1x32xf32> to vector<8x32xf32>
    %172 = arith.addf %170, %171 : vector<8x32xf32>
    %173 = arith.addf %93, %172 : vector<8x32xf32>
    %c0_108 = arith.constant 0 : index
    %c0_109 = arith.constant 0 : index
    %c0_110 = arith.constant 0 : index
    %174 = vector.load %arg23[%c0_108, %c0_109, %c0_110] : memref<2x1x32xf32, #tpu.memory_space<vmem>>, vector<1x1x32xf32>
    %175 = vector.shape_cast %174 : vector<1x1x32xf32> to vector<1x32xf32>
    %c0_111 = arith.constant 0 : index
    %c0_112 = arith.constant 0 : index
    %c0_113 = arith.constant 0 : index
    %176 = vector.load %arg24[%c0_111, %c0_112, %c0_113] : memref<2x1x32xf32, #tpu.memory_space<vmem>>, vector<1x1x32xf32>
    %177 = vector.shape_cast %176 : vector<1x1x32xf32> to vector<1x32xf32>
    %c0_114 = arith.constant 0 : index
    %c0_115 = arith.constant 0 : index
    %c0_116 = arith.constant 0 : index
    %178 = vector.load %arg25[%c0_114, %c0_115, %c0_116] : memref<2x32x64xbf16, #tpu.memory_space<vmem>>, vector<1x32x64xbf16>
    %179 = vector.shape_cast %178 : vector<1x32x64xbf16> to vector<32x64xbf16>
    %c0_117 = arith.constant 0 : index
    %c0_118 = arith.constant 0 : index
    %c0_119 = arith.constant 0 : index
    %180 = vector.load %arg26[%c0_117, %c0_118, %c0_119] : memref<2x1x64xf32, #tpu.memory_space<vmem>>, vector<1x1x64xf32>
    %181 = vector.shape_cast %180 : vector<1x1x64xf32> to vector<1x64xf32>
    %c0_120 = arith.constant 0 : index
    %c0_121 = arith.constant 0 : index
    %c0_122 = arith.constant 0 : index
    %182 = vector.load %arg27[%c0_120, %c0_121, %c0_122] : memref<2x64x32xbf16, #tpu.memory_space<vmem>>, vector<1x64x32xbf16>
    %183 = vector.shape_cast %182 : vector<1x64x32xbf16> to vector<64x32xbf16>
    %c0_123 = arith.constant 0 : index
    %c0_124 = arith.constant 0 : index
    %c0_125 = arith.constant 0 : index
    %184 = vector.load %arg28[%c0_123, %c0_124, %c0_125] : memref<2x1x32xf32, #tpu.memory_space<vmem>>, vector<1x1x32xf32>
    %185 = vector.shape_cast %184 : vector<1x1x32xf32> to vector<1x32xf32>
    %cst_126 = arith.constant dense<0.000000e+00> : vector<8xf32>
    %186 = vector.multi_reduction <add>, %173, %cst_126 [1] : vector<8x32xf32> to vector<8xf32>
    %187 = vector.shape_cast %186 : vector<8xf32> to vector<8x1xf32>
    %cst_127 = arith.constant 3.200000e+01 : f32
    %188 = vector.broadcast %cst_127 : f32 to vector<8x1xf32>
    %189 = arith.divf %187, %188 : vector<8x1xf32>
    %190 = vector.broadcast %189 : vector<8x1xf32> to vector<8x32xf32>
    %191 = arith.subf %173, %190 : vector<8x32xf32>
    %192 = arith.mulf %191, %191 : vector<8x32xf32>
    %cst_128 = arith.constant dense<0.000000e+00> : vector<8xf32>
    %193 = vector.multi_reduction <add>, %192, %cst_128 [1] : vector<8x32xf32> to vector<8xf32>
    %194 = vector.shape_cast %193 : vector<8xf32> to vector<8x1xf32>
    %cst_129 = arith.constant 3.200000e+01 : f32
    %195 = vector.broadcast %cst_129 : f32 to vector<8x1xf32>
    %196 = arith.divf %194, %195 : vector<8x1xf32>
    %197 = vector.broadcast %189 : vector<8x1xf32> to vector<8x32xf32>
    %198 = arith.subf %173, %197 : vector<8x32xf32>
    %cst_130 = arith.constant 9.99999997E-7 : f32
    %199 = vector.broadcast %cst_130 : f32 to vector<8x1xf32>
    %200 = arith.addf %196, %199 : vector<8x1xf32>
    %201 = math.rsqrt %200 : vector<8x1xf32>
    %202 = vector.broadcast %201 : vector<8x1xf32> to vector<8x32xf32>
    %203 = arith.mulf %198, %202 : vector<8x32xf32>
    %204 = vector.broadcast %175 : vector<1x32xf32> to vector<8x32xf32>
    %205 = arith.mulf %203, %204 : vector<8x32xf32>
    %206 = vector.broadcast %177 : vector<1x32xf32> to vector<8x32xf32>
    %207 = arith.addf %205, %206 : vector<8x32xf32>
    %208 = arith.truncf %207 : vector<8x32xf32> to vector<8x32xbf16>
    %cst_131 = arith.constant dense<0.000000e+00> : vector<8x64xf32>
    %209 = tpu.matmul %208, %179, %cst_131 {dimension_numbers = #tpu.dot_dimension_numbers<[1], [0], [0], [1], [0, 0, 1, 1], [], []>} : vector<8x32xbf16>, vector<32x64xbf16>, vector<8x64xf32> -> vector<8x64xf32>
    %210 = vector.broadcast %181 : vector<1x64xf32> to vector<8x64xf32>
    %211 = arith.addf %209, %210 : vector<8x64xf32>
    %cst_132 = arith.constant 0.000000e+00 : f32
    %212 = vector.broadcast %cst_132 : f32 to vector<8x64xf32>
    %213 = arith.maximumf %211, %212 : vector<8x64xf32>
    %214 = arith.truncf %213 : vector<8x64xf32> to vector<8x64xbf16>
    %cst_133 = arith.constant dense<0.000000e+00> : vector<8x32xf32>
    %215 = tpu.matmul %214, %183, %cst_133 {dimension_numbers = #tpu.dot_dimension_numbers<[1], [0], [0], [1], [0, 0, 1, 1], [], []>} : vector<8x64xbf16>, vector<64x32xbf16>, vector<8x32xf32> -> vector<8x32xf32>
    %216 = vector.broadcast %185 : vector<1x32xf32> to vector<8x32xf32>
    %217 = arith.addf %215, %216 : vector<8x32xf32>
    %218 = arith.addf %173, %217 : vector<8x32xf32>
    %c1 = arith.constant 1 : index
    %c0_134 = arith.constant 0 : index
    %c0_135 = arith.constant 0 : index
    %219 = vector.load %arg3[%c1, %c0_134, %c0_135] : memref<2x1x32xf32, #tpu.memory_space<vmem>>, vector<1x1x32xf32>
    %220 = vector.shape_cast %219 : vector<1x1x32xf32> to vector<1x32xf32>
    %c1_136 = arith.constant 1 : index
    %c0_137 = arith.constant 0 : index
    %c0_138 = arith.constant 0 : index
    %221 = vector.load %arg4[%c1_136, %c0_137, %c0_138] : memref<2x1x32xf32, #tpu.memory_space<vmem>>, vector<1x1x32xf32>
    %222 = vector.shape_cast %221 : vector<1x1x32xf32> to vector<1x32xf32>
    %c1_139 = arith.constant 1 : index
    %c0_140 = arith.constant 0 : index
    %c0_141 = arith.constant 0 : index
    %c0_142 = arith.constant 0 : index
    %223 = vector.load %arg5[%c1_139, %c0_140, %c0_141, %c0_142] : memref<2x4x32x8xbf16, #tpu.memory_space<vmem>>, vector<1x4x32x8xbf16>
    %224 = vector.shape_cast %223 : vector<1x4x32x8xbf16> to vector<4x32x8xbf16>
    %c1_143 = arith.constant 1 : index
    %c0_144 = arith.constant 0 : index
    %c0_145 = arith.constant 0 : index
    %c0_146 = arith.constant 0 : index
    %225 = vector.load %arg6[%c1_143, %c0_144, %c0_145, %c0_146] : memref<2x4x1x8xf32, #tpu.memory_space<vmem>>, vector<1x4x1x8xf32>
    %226 = vector.shape_cast %225 : vector<1x4x1x8xf32> to vector<4x1x8xf32>
    %c1_147 = arith.constant 1 : index
    %c0_148 = arith.constant 0 : index
    %c0_149 = arith.constant 0 : index
    %c0_150 = arith.constant 0 : index
    %227 = vector.load %arg7[%c1_147, %c0_148, %c0_149, %c0_150] : memref<2x4x32x8xbf16, #tpu.memory_space<vmem>>, vector<1x4x32x8xbf16>
    %228 = vector.shape_cast %227 : vector<1x4x32x8xbf16> to vector<4x32x8xbf16>
    %c1_151 = arith.constant 1 : index
    %c0_152 = arith.constant 0 : index
    %c0_153 = arith.constant 0 : index
    %c0_154 = arith.constant 0 : index
    %229 = vector.load %arg8[%c1_151, %c0_152, %c0_153, %c0_154] : memref<2x4x1x8xf32, #tpu.memory_space<vmem>>, vector<1x4x1x8xf32>
    %230 = vector.shape_cast %229 : vector<1x4x1x8xf32> to vector<4x1x8xf32>
    %c1_155 = arith.constant 1 : index
    %c0_156 = arith.constant 0 : index
    %c0_157 = arith.constant 0 : index
    %c0_158 = arith.constant 0 : index
    %231 = vector.load %arg9[%c1_155, %c0_156, %c0_157, %c0_158] : memref<2x4x32x8xbf16, #tpu.memory_space<vmem>>, vector<1x4x32x8xbf16>
    %232 = vector.shape_cast %231 : vector<1x4x32x8xbf16> to vector<4x32x8xbf16>
    %c1_159 = arith.constant 1 : index
    %c0_160 = arith.constant 0 : index
    %c0_161 = arith.constant 0 : index
    %c0_162 = arith.constant 0 : index
    %233 = vector.load %arg10[%c1_159, %c0_160, %c0_161, %c0_162] : memref<2x4x1x8xf32, #tpu.memory_space<vmem>>, vector<1x4x1x8xf32>
    %234 = vector.shape_cast %233 : vector<1x4x1x8xf32> to vector<4x1x8xf32>
    %c1_163 = arith.constant 1 : index
    %c0_164 = arith.constant 0 : index
    %c0_165 = arith.constant 0 : index
    %c0_166 = arith.constant 0 : index
    %235 = vector.load %arg11[%c1_163, %c0_164, %c0_165, %c0_166] : memref<2x4x8x32xbf16, #tpu.memory_space<vmem>>, vector<1x4x8x32xbf16>
    %236 = vector.shape_cast %235 : vector<1x4x8x32xbf16> to vector<4x8x32xbf16>
    %c1_167 = arith.constant 1 : index
    %c0_168 = arith.constant 0 : index
    %c0_169 = arith.constant 0 : index
    %237 = vector.load %arg12[%c1_167, %c0_168, %c0_169] : memref<2x1x32xf32, #tpu.memory_space<vmem>>, vector<1x1x32xf32>
    %238 = vector.shape_cast %237 : vector<1x1x32xf32> to vector<1x32xf32>
    %cst_170 = arith.constant dense<0.000000e+00> : vector<8xf32>
    %239 = vector.multi_reduction <add>, %218, %cst_170 [1] : vector<8x32xf32> to vector<8xf32>
    %240 = vector.shape_cast %239 : vector<8xf32> to vector<8x1xf32>
    %cst_171 = arith.constant 3.200000e+01 : f32
    %241 = vector.broadcast %cst_171 : f32 to vector<8x1xf32>
    %242 = arith.divf %240, %241 : vector<8x1xf32>
    %243 = vector.broadcast %242 : vector<8x1xf32> to vector<8x32xf32>
    %244 = arith.subf %218, %243 : vector<8x32xf32>
    %245 = arith.mulf %244, %244 : vector<8x32xf32>
    %cst_172 = arith.constant dense<0.000000e+00> : vector<8xf32>
    %246 = vector.multi_reduction <add>, %245, %cst_172 [1] : vector<8x32xf32> to vector<8xf32>
    %247 = vector.shape_cast %246 : vector<8xf32> to vector<8x1xf32>
    %cst_173 = arith.constant 3.200000e+01 : f32
    %248 = vector.broadcast %cst_173 : f32 to vector<8x1xf32>
    %249 = arith.divf %247, %248 : vector<8x1xf32>
    %250 = vector.broadcast %242 : vector<8x1xf32> to vector<8x32xf32>
    %251 = arith.subf %218, %250 : vector<8x32xf32>
    %cst_174 = arith.constant 9.99999997E-7 : f32
    %252 = vector.broadcast %cst_174 : f32 to vector<8x1xf32>
    %253 = arith.addf %249, %252 : vector<8x1xf32>
    %254 = math.rsqrt %253 : vector<8x1xf32>
    %255 = vector.broadcast %254 : vector<8x1xf32> to vector<8x32xf32>
    %256 = arith.mulf %251, %255 : vector<8x32xf32>
    %257 = vector.broadcast %220 : vector<1x32xf32> to vector<8x32xf32>
    %258 = arith.mulf %256, %257 : vector<8x32xf32>
    %259 = vector.broadcast %222 : vector<1x32xf32> to vector<8x32xf32>
    %260 = arith.addf %258, %259 : vector<8x32xf32>
    %261 = arith.truncf %260 : vector<8x32xf32> to vector<8x32xbf16>
    %262 = vector.shape_cast %261 : vector<8x32xbf16> to vector<1x8x32xbf16>
    %263 = vector.shape_cast %262 : vector<1x8x32xbf16> to vector<1x8x32xbf16>
    %264 = vector.broadcast %263 : vector<1x8x32xbf16> to vector<4x8x32xbf16>
    %265 = vector.shape_cast %261 : vector<8x32xbf16> to vector<1x8x32xbf16>
    %266 = vector.shape_cast %265 : vector<1x8x32xbf16> to vector<1x8x32xbf16>
    %267 = vector.broadcast %266 : vector<1x8x32xbf16> to vector<4x8x32xbf16>
    %cst_175 = arith.constant dense<0.000000e+00> : vector<4x8x8xf32>
    %268 = tpu.matmul %264, %224, %cst_175 {dimension_numbers = #tpu.dot_dimension_numbers<[2], [1], [1], [2], [0, 0, 0, 1, 1, 2], [0], [0]>} : vector<4x8x32xbf16>, vector<4x32x8xbf16>, vector<4x8x8xf32> -> vector<4x8x8xf32>
    %269 = vector.broadcast %226 : vector<4x1x8xf32> to vector<4x8x8xf32>
    %270 = arith.addf %268, %269 : vector<4x8x8xf32>
    %cst_176 = arith.constant dense<0.000000e+00> : vector<4x8x8xf32>
    %271 = tpu.matmul %267, %228, %cst_176 {dimension_numbers = #tpu.dot_dimension_numbers<[2], [1], [1], [2], [0, 0, 0, 1, 1, 2], [0], [0]>} : vector<4x8x32xbf16>, vector<4x32x8xbf16>, vector<4x8x8xf32> -> vector<4x8x8xf32>
    %272 = vector.broadcast %230 : vector<4x1x8xf32> to vector<4x8x8xf32>
    %273 = arith.addf %271, %272 : vector<4x8x8xf32>
    %cst_177 = arith.constant dense<0.000000e+00> : vector<4x8x8xf32>
    %274 = tpu.matmul %267, %232, %cst_177 {dimension_numbers = #tpu.dot_dimension_numbers<[2], [1], [1], [2], [0, 0, 0, 1, 1, 2], [0], [0]>} : vector<4x8x32xbf16>, vector<4x32x8xbf16>, vector<4x8x8xf32> -> vector<4x8x8xf32>
    %275 = vector.broadcast %234 : vector<4x1x8xf32> to vector<4x8x8xf32>
    %276 = arith.addf %274, %275 : vector<4x8x8xf32>
    %277 = arith.truncf %270 : vector<4x8x8xf32> to vector<4x8x8xbf16>
    %278 = arith.truncf %273 : vector<4x8x8xf32> to vector<4x8x8xbf16>
    %cst_178 = arith.constant dense<0.000000e+00> : vector<4x8x8xf32>
    %279 = tpu.matmul %277, %278, %cst_178 {dimension_numbers = #tpu.dot_dimension_numbers<[2], [2], [1], [1], [0, 0, 0, 1, 1, 1], [0], [0]>} : vector<4x8x8xbf16>, vector<4x8x8xbf16>, vector<4x8x8xf32> -> vector<4x8x8xf32>
    %280 = vector.shape_cast %10 : vector<8x8xf32> to vector<1x8x8xf32>
    %281 = vector.broadcast %280 : vector<1x8x8xf32> to vector<4x8x8xf32>
    %282 = arith.addf %279, %281 : vector<4x8x8xf32>
    %cst_179 = arith.constant dense<0xFF800000> : vector<4x8xf32>
    %283 = vector.multi_reduction <maximumf>, %282, %cst_179 [2] : vector<4x8x8xf32> to vector<4x8xf32>
    %284 = vector.shape_cast %283 : vector<4x8xf32> to vector<4x8x1xf32>
    %285 = vector.broadcast %284 : vector<4x8x1xf32> to vector<4x8x8xf32>
    %286 = arith.subf %282, %285 : vector<4x8x8xf32>
    %287 = math.exp %286 : vector<4x8x8xf32>
    %cst_180 = arith.constant dense<0.000000e+00> : vector<4x8xf32>
    %288 = vector.multi_reduction <add>, %287, %cst_180 [2] : vector<4x8x8xf32> to vector<4x8xf32>
    %289 = vector.shape_cast %288 : vector<4x8xf32> to vector<4x8x1xf32>
    %290 = tpu.reciprocal %289 {approx = true} : vector<4x8x1xf32> -> vector<4x8x1xf32>
    %291 = vector.broadcast %290 : vector<4x8x1xf32> to vector<4x8x8xf32>
    %292 = arith.mulf %287, %291 : vector<4x8x8xf32>
    %293 = arith.truncf %292 : vector<4x8x8xf32> to vector<4x8x8xbf16>
    %294 = arith.truncf %276 : vector<4x8x8xf32> to vector<4x8x8xbf16>
    %cst_181 = arith.constant dense<0.000000e+00> : vector<4x8x8xf32>
    %295 = tpu.matmul %293, %294, %cst_181 {dimension_numbers = #tpu.dot_dimension_numbers<[2], [1], [1], [2], [0, 0, 0, 1, 1, 2], [0], [0]>} : vector<4x8x8xbf16>, vector<4x8x8xbf16>, vector<4x8x8xf32> -> vector<4x8x8xf32>
    %296 = arith.truncf %295 : vector<4x8x8xf32> to vector<4x8x8xbf16>
    %cst_182 = arith.constant dense<0.000000e+00> : vector<4x8x32xf32>
    %297 = tpu.matmul %296, %236, %cst_182 {dimension_numbers = #tpu.dot_dimension_numbers<[2], [1], [1], [2], [0, 0, 0, 1, 1, 2], [0], [0]>} : vector<4x8x8xbf16>, vector<4x8x32xbf16>, vector<4x8x32xf32> -> vector<4x8x32xf32>
    %cst_183 = arith.constant dense<0.000000e+00> : vector<8x32xf32>
    %298 = vector.multi_reduction <add>, %297, %cst_183 [0] : vector<4x8x32xf32> to vector<8x32xf32>
    %299 = vector.broadcast %238 : vector<1x32xf32> to vector<8x32xf32>
    %300 = arith.addf %298, %299 : vector<8x32xf32>
    %301 = arith.addf %218, %300 : vector<8x32xf32>
    %c1_184 = arith.constant 1 : index
    %c0_185 = arith.constant 0 : index
    %c0_186 = arith.constant 0 : index
    %302 = vector.load %arg13[%c1_184, %c0_185, %c0_186] : memref<2x1x32xf32, #tpu.memory_space<vmem>>, vector<1x1x32xf32>
    %303 = vector.shape_cast %302 : vector<1x1x32xf32> to vector<1x32xf32>
    %c1_187 = arith.constant 1 : index
    %c0_188 = arith.constant 0 : index
    %c0_189 = arith.constant 0 : index
    %304 = vector.load %arg14[%c1_187, %c0_188, %c0_189] : memref<2x1x32xf32, #tpu.memory_space<vmem>>, vector<1x1x32xf32>
    %305 = vector.shape_cast %304 : vector<1x1x32xf32> to vector<1x32xf32>
    %c1_190 = arith.constant 1 : index
    %c0_191 = arith.constant 0 : index
    %c0_192 = arith.constant 0 : index
    %c0_193 = arith.constant 0 : index
    %306 = vector.load %arg15[%c1_190, %c0_191, %c0_192, %c0_193] : memref<2x4x32x8xbf16, #tpu.memory_space<vmem>>, vector<1x4x32x8xbf16>
    %307 = vector.shape_cast %306 : vector<1x4x32x8xbf16> to vector<4x32x8xbf16>
    %c1_194 = arith.constant 1 : index
    %c0_195 = arith.constant 0 : index
    %c0_196 = arith.constant 0 : index
    %c0_197 = arith.constant 0 : index
    %308 = vector.load %arg16[%c1_194, %c0_195, %c0_196, %c0_197] : memref<2x4x1x8xf32, #tpu.memory_space<vmem>>, vector<1x4x1x8xf32>
    %309 = vector.shape_cast %308 : vector<1x4x1x8xf32> to vector<4x1x8xf32>
    %c1_198 = arith.constant 1 : index
    %c0_199 = arith.constant 0 : index
    %c0_200 = arith.constant 0 : index
    %c0_201 = arith.constant 0 : index
    %310 = vector.load %arg17[%c1_198, %c0_199, %c0_200, %c0_201] : memref<2x4x32x8xbf16, #tpu.memory_space<vmem>>, vector<1x4x32x8xbf16>
    %311 = vector.shape_cast %310 : vector<1x4x32x8xbf16> to vector<4x32x8xbf16>
    %c1_202 = arith.constant 1 : index
    %c0_203 = arith.constant 0 : index
    %c0_204 = arith.constant 0 : index
    %c0_205 = arith.constant 0 : index
    %312 = vector.load %arg18[%c1_202, %c0_203, %c0_204, %c0_205] : memref<2x4x1x8xf32, #tpu.memory_space<vmem>>, vector<1x4x1x8xf32>
    %313 = vector.shape_cast %312 : vector<1x4x1x8xf32> to vector<4x1x8xf32>
    %c1_206 = arith.constant 1 : index
    %c0_207 = arith.constant 0 : index
    %c0_208 = arith.constant 0 : index
    %c0_209 = arith.constant 0 : index
    %314 = vector.load %arg19[%c1_206, %c0_207, %c0_208, %c0_209] : memref<2x4x32x8xbf16, #tpu.memory_space<vmem>>, vector<1x4x32x8xbf16>
    %315 = vector.shape_cast %314 : vector<1x4x32x8xbf16> to vector<4x32x8xbf16>
    %c1_210 = arith.constant 1 : index
    %c0_211 = arith.constant 0 : index
    %c0_212 = arith.constant 0 : index
    %c0_213 = arith.constant 0 : index
    %316 = vector.load %arg20[%c1_210, %c0_211, %c0_212, %c0_213] : memref<2x4x1x8xf32, #tpu.memory_space<vmem>>, vector<1x4x1x8xf32>
    %317 = vector.shape_cast %316 : vector<1x4x1x8xf32> to vector<4x1x8xf32>
    %c1_214 = arith.constant 1 : index
    %c0_215 = arith.constant 0 : index
    %c0_216 = arith.constant 0 : index
    %c0_217 = arith.constant 0 : index
    %318 = vector.load %arg21[%c1_214, %c0_215, %c0_216, %c0_217] : memref<2x4x8x32xbf16, #tpu.memory_space<vmem>>, vector<1x4x8x32xbf16>
    %319 = vector.shape_cast %318 : vector<1x4x8x32xbf16> to vector<4x8x32xbf16>
    %c1_218 = arith.constant 1 : index
    %c0_219 = arith.constant 0 : index
    %c0_220 = arith.constant 0 : index
    %320 = vector.load %arg22[%c1_218, %c0_219, %c0_220] : memref<2x1x32xf32, #tpu.memory_space<vmem>>, vector<1x1x32xf32>
    %321 = vector.shape_cast %320 : vector<1x1x32xf32> to vector<1x32xf32>
    %cst_221 = arith.constant dense<0.000000e+00> : vector<8xf32>
    %322 = vector.multi_reduction <add>, %301, %cst_221 [1] : vector<8x32xf32> to vector<8xf32>
    %323 = vector.shape_cast %322 : vector<8xf32> to vector<8x1xf32>
    %cst_222 = arith.constant 3.200000e+01 : f32
    %324 = vector.broadcast %cst_222 : f32 to vector<8x1xf32>
    %325 = arith.divf %323, %324 : vector<8x1xf32>
    %326 = vector.broadcast %325 : vector<8x1xf32> to vector<8x32xf32>
    %327 = arith.subf %301, %326 : vector<8x32xf32>
    %328 = arith.mulf %327, %327 : vector<8x32xf32>
    %cst_223 = arith.constant dense<0.000000e+00> : vector<8xf32>
    %329 = vector.multi_reduction <add>, %328, %cst_223 [1] : vector<8x32xf32> to vector<8xf32>
    %330 = vector.shape_cast %329 : vector<8xf32> to vector<8x1xf32>
    %cst_224 = arith.constant 3.200000e+01 : f32
    %331 = vector.broadcast %cst_224 : f32 to vector<8x1xf32>
    %332 = arith.divf %330, %331 : vector<8x1xf32>
    %333 = vector.broadcast %325 : vector<8x1xf32> to vector<8x32xf32>
    %334 = arith.subf %301, %333 : vector<8x32xf32>
    %cst_225 = arith.constant 9.99999997E-7 : f32
    %335 = vector.broadcast %cst_225 : f32 to vector<8x1xf32>
    %336 = arith.addf %332, %335 : vector<8x1xf32>
    %337 = math.rsqrt %336 : vector<8x1xf32>
    %338 = vector.broadcast %337 : vector<8x1xf32> to vector<8x32xf32>
    %339 = arith.mulf %334, %338 : vector<8x32xf32>
    %340 = vector.broadcast %303 : vector<1x32xf32> to vector<8x32xf32>
    %341 = arith.mulf %339, %340 : vector<8x32xf32>
    %342 = vector.broadcast %305 : vector<1x32xf32> to vector<8x32xf32>
    %343 = arith.addf %341, %342 : vector<8x32xf32>
    %344 = arith.truncf %343 : vector<8x32xf32> to vector<8x32xbf16>
    %345 = vector.shape_cast %344 : vector<8x32xbf16> to vector<1x8x32xbf16>
    %346 = vector.shape_cast %345 : vector<1x8x32xbf16> to vector<1x8x32xbf16>
    %347 = vector.broadcast %346 : vector<1x8x32xbf16> to vector<4x8x32xbf16>
    %348 = vector.shape_cast %4 : vector<8x32xbf16> to vector<1x8x32xbf16>
    %349 = vector.shape_cast %348 : vector<1x8x32xbf16> to vector<1x8x32xbf16>
    %350 = vector.broadcast %349 : vector<1x8x32xbf16> to vector<4x8x32xbf16>
    %cst_226 = arith.constant dense<0.000000e+00> : vector<4x8x8xf32>
    %351 = tpu.matmul %347, %307, %cst_226 {dimension_numbers = #tpu.dot_dimension_numbers<[2], [1], [1], [2], [0, 0, 0, 1, 1, 2], [0], [0]>} : vector<4x8x32xbf16>, vector<4x32x8xbf16>, vector<4x8x8xf32> -> vector<4x8x8xf32>
    %352 = vector.broadcast %309 : vector<4x1x8xf32> to vector<4x8x8xf32>
    %353 = arith.addf %351, %352 : vector<4x8x8xf32>
    %cst_227 = arith.constant dense<0.000000e+00> : vector<4x8x8xf32>
    %354 = tpu.matmul %350, %311, %cst_227 {dimension_numbers = #tpu.dot_dimension_numbers<[2], [1], [1], [2], [0, 0, 0, 1, 1, 2], [0], [0]>} : vector<4x8x32xbf16>, vector<4x32x8xbf16>, vector<4x8x8xf32> -> vector<4x8x8xf32>
    %355 = vector.broadcast %313 : vector<4x1x8xf32> to vector<4x8x8xf32>
    %356 = arith.addf %354, %355 : vector<4x8x8xf32>
    %cst_228 = arith.constant dense<0.000000e+00> : vector<4x8x8xf32>
    %357 = tpu.matmul %350, %315, %cst_228 {dimension_numbers = #tpu.dot_dimension_numbers<[2], [1], [1], [2], [0, 0, 0, 1, 1, 2], [0], [0]>} : vector<4x8x32xbf16>, vector<4x32x8xbf16>, vector<4x8x8xf32> -> vector<4x8x8xf32>
    %358 = vector.broadcast %317 : vector<4x1x8xf32> to vector<4x8x8xf32>
    %359 = arith.addf %357, %358 : vector<4x8x8xf32>
    %360 = arith.truncf %353 : vector<4x8x8xf32> to vector<4x8x8xbf16>
    %361 = arith.truncf %356 : vector<4x8x8xf32> to vector<4x8x8xbf16>
    %cst_229 = arith.constant dense<0.000000e+00> : vector<4x8x8xf32>
    %362 = tpu.matmul %360, %361, %cst_229 {dimension_numbers = #tpu.dot_dimension_numbers<[2], [2], [1], [1], [0, 0, 0, 1, 1, 1], [0], [0]>} : vector<4x8x8xbf16>, vector<4x8x8xbf16>, vector<4x8x8xf32> -> vector<4x8x8xf32>
    %cst_230 = arith.constant dense<0xFF800000> : vector<4x8xf32>
    %363 = vector.multi_reduction <maximumf>, %362, %cst_230 [2] : vector<4x8x8xf32> to vector<4x8xf32>
    %364 = vector.shape_cast %363 : vector<4x8xf32> to vector<4x8x1xf32>
    %365 = vector.broadcast %364 : vector<4x8x1xf32> to vector<4x8x8xf32>
    %366 = arith.subf %362, %365 : vector<4x8x8xf32>
    %367 = math.exp %366 : vector<4x8x8xf32>
    %cst_231 = arith.constant dense<0.000000e+00> : vector<4x8xf32>
    %368 = vector.multi_reduction <add>, %367, %cst_231 [2] : vector<4x8x8xf32> to vector<4x8xf32>
    %369 = vector.shape_cast %368 : vector<4x8xf32> to vector<4x8x1xf32>
    %370 = tpu.reciprocal %369 {approx = true} : vector<4x8x1xf32> -> vector<4x8x1xf32>
    %371 = vector.broadcast %370 : vector<4x8x1xf32> to vector<4x8x8xf32>
    %372 = arith.mulf %367, %371 : vector<4x8x8xf32>
    %373 = arith.truncf %372 : vector<4x8x8xf32> to vector<4x8x8xbf16>
    %374 = arith.truncf %359 : vector<4x8x8xf32> to vector<4x8x8xbf16>
    %cst_232 = arith.constant dense<0.000000e+00> : vector<4x8x8xf32>
    %375 = tpu.matmul %373, %374, %cst_232 {dimension_numbers = #tpu.dot_dimension_numbers<[2], [1], [1], [2], [0, 0, 0, 1, 1, 2], [0], [0]>} : vector<4x8x8xbf16>, vector<4x8x8xbf16>, vector<4x8x8xf32> -> vector<4x8x8xf32>
    %376 = arith.truncf %375 : vector<4x8x8xf32> to vector<4x8x8xbf16>
    %cst_233 = arith.constant dense<0.000000e+00> : vector<4x8x32xf32>
    %377 = tpu.matmul %376, %319, %cst_233 {dimension_numbers = #tpu.dot_dimension_numbers<[2], [1], [1], [2], [0, 0, 0, 1, 1, 2], [0], [0]>} : vector<4x8x8xbf16>, vector<4x8x32xbf16>, vector<4x8x32xf32> -> vector<4x8x32xf32>
    %cst_234 = arith.constant dense<0.000000e+00> : vector<8x32xf32>
    %378 = vector.multi_reduction <add>, %377, %cst_234 [0] : vector<4x8x32xf32> to vector<8x32xf32>
    %379 = vector.broadcast %321 : vector<1x32xf32> to vector<8x32xf32>
    %380 = arith.addf %378, %379 : vector<8x32xf32>
    %381 = arith.addf %301, %380 : vector<8x32xf32>
    %c1_235 = arith.constant 1 : index
    %c0_236 = arith.constant 0 : index
    %c0_237 = arith.constant 0 : index
    %382 = vector.load %arg23[%c1_235, %c0_236, %c0_237] : memref<2x1x32xf32, #tpu.memory_space<vmem>>, vector<1x1x32xf32>
    %383 = vector.shape_cast %382 : vector<1x1x32xf32> to vector<1x32xf32>
    %c1_238 = arith.constant 1 : index
    %c0_239 = arith.constant 0 : index
    %c0_240 = arith.constant 0 : index
    %384 = vector.load %arg24[%c1_238, %c0_239, %c0_240] : memref<2x1x32xf32, #tpu.memory_space<vmem>>, vector<1x1x32xf32>
    %385 = vector.shape_cast %384 : vector<1x1x32xf32> to vector<1x32xf32>
    %c1_241 = arith.constant 1 : index
    %c0_242 = arith.constant 0 : index
    %c0_243 = arith.constant 0 : index
    %386 = vector.load %arg25[%c1_241, %c0_242, %c0_243] : memref<2x32x64xbf16, #tpu.memory_space<vmem>>, vector<1x32x64xbf16>
    %387 = vector.shape_cast %386 : vector<1x32x64xbf16> to vector<32x64xbf16>
    %c1_244 = arith.constant 1 : index
    %c0_245 = arith.constant 0 : index
    %c0_246 = arith.constant 0 : index
    %388 = vector.load %arg26[%c1_244, %c0_245, %c0_246] : memref<2x1x64xf32, #tpu.memory_space<vmem>>, vector<1x1x64xf32>
    %389 = vector.shape_cast %388 : vector<1x1x64xf32> to vector<1x64xf32>
    %c1_247 = arith.constant 1 : index
    %c0_248 = arith.constant 0 : index
    %c0_249 = arith.constant 0 : index
    %390 = vector.load %arg27[%c1_247, %c0_248, %c0_249] : memref<2x64x32xbf16, #tpu.memory_space<vmem>>, vector<1x64x32xbf16>
    %391 = vector.shape_cast %390 : vector<1x64x32xbf16> to vector<64x32xbf16>
    %c1_250 = arith.constant 1 : index
    %c0_251 = arith.constant 0 : index
    %c0_252 = arith.constant 0 : index
    %392 = vector.load %arg28[%c1_250, %c0_251, %c0_252] : memref<2x1x32xf32, #tpu.memory_space<vmem>>, vector<1x1x32xf32>
    %393 = vector.shape_cast %392 : vector<1x1x32xf32> to vector<1x32xf32>
    %cst_253 = arith.constant dense<0.000000e+00> : vector<8xf32>
    %394 = vector.multi_reduction <add>, %381, %cst_253 [1] : vector<8x32xf32> to vector<8xf32>
    %395 = vector.shape_cast %394 : vector<8xf32> to vector<8x1xf32>
    %cst_254 = arith.constant 3.200000e+01 : f32
    %396 = vector.broadcast %cst_254 : f32 to vector<8x1xf32>
    %397 = arith.divf %395, %396 : vector<8x1xf32>
    %398 = vector.broadcast %397 : vector<8x1xf32> to vector<8x32xf32>
    %399 = arith.subf %381, %398 : vector<8x32xf32>
    %400 = arith.mulf %399, %399 : vector<8x32xf32>
    %cst_255 = arith.constant dense<0.000000e+00> : vector<8xf32>
    %401 = vector.multi_reduction <add>, %400, %cst_255 [1] : vector<8x32xf32> to vector<8xf32>
    %402 = vector.shape_cast %401 : vector<8xf32> to vector<8x1xf32>
    %cst_256 = arith.constant 3.200000e+01 : f32
    %403 = vector.broadcast %cst_256 : f32 to vector<8x1xf32>
    %404 = arith.divf %402, %403 : vector<8x1xf32>
    %405 = vector.broadcast %397 : vector<8x1xf32> to vector<8x32xf32>
    %406 = arith.subf %381, %405 : vector<8x32xf32>
    %cst_257 = arith.constant 9.99999997E-7 : f32
    %407 = vector.broadcast %cst_257 : f32 to vector<8x1xf32>
    %408 = arith.addf %404, %407 : vector<8x1xf32>
    %409 = math.rsqrt %408 : vector<8x1xf32>
    %410 = vector.broadcast %409 : vector<8x1xf32> to vector<8x32xf32>
    %411 = arith.mulf %406, %410 : vector<8x32xf32>
    %412 = vector.broadcast %383 : vector<1x32xf32> to vector<8x32xf32>
    %413 = arith.mulf %411, %412 : vector<8x32xf32>
    %414 = vector.broadcast %385 : vector<1x32xf32> to vector<8x32xf32>
    %415 = arith.addf %413, %414 : vector<8x32xf32>
    %416 = arith.truncf %415 : vector<8x32xf32> to vector<8x32xbf16>
    %cst_258 = arith.constant dense<0.000000e+00> : vector<8x64xf32>
    %417 = tpu.matmul %416, %387, %cst_258 {dimension_numbers = #tpu.dot_dimension_numbers<[1], [0], [0], [1], [0, 0, 1, 1], [], []>} : vector<8x32xbf16>, vector<32x64xbf16>, vector<8x64xf32> -> vector<8x64xf32>
    %418 = vector.broadcast %389 : vector<1x64xf32> to vector<8x64xf32>
    %419 = arith.addf %417, %418 : vector<8x64xf32>
    %cst_259 = arith.constant 0.000000e+00 : f32
    %420 = vector.broadcast %cst_259 : f32 to vector<8x64xf32>
    %421 = arith.maximumf %419, %420 : vector<8x64xf32>
    %422 = arith.truncf %421 : vector<8x64xf32> to vector<8x64xbf16>
    %cst_260 = arith.constant dense<0.000000e+00> : vector<8x32xf32>
    %423 = tpu.matmul %422, %391, %cst_260 {dimension_numbers = #tpu.dot_dimension_numbers<[1], [0], [0], [1], [0, 0, 1, 1], [], []>} : vector<8x64xbf16>, vector<64x32xbf16>, vector<8x32xf32> -> vector<8x32xf32>
    %424 = vector.broadcast %393 : vector<1x32xf32> to vector<8x32xf32>
    %425 = arith.addf %423, %424 : vector<8x32xf32>
    %426 = arith.addf %381, %425 : vector<8x32xf32>
    %c0_261 = arith.constant 0 : index
    %c0_262 = arith.constant 0 : index
    %427 = vector.load %arg29[%c0_261, %c0_262] : memref<1x32xf32, #tpu.memory_space<vmem>>, vector<1x32xf32>
    %c0_263 = arith.constant 0 : index
    %c0_264 = arith.constant 0 : index
    %428 = vector.load %arg30[%c0_263, %c0_264] : memref<1x32xf32, #tpu.memory_space<vmem>>, vector<1x32xf32>
    %cst_265 = arith.constant dense<0.000000e+00> : vector<8xf32>
    %429 = vector.multi_reduction <add>, %426, %cst_265 [1] : vector<8x32xf32> to vector<8xf32>
    %430 = vector.shape_cast %429 : vector<8xf32> to vector<8x1xf32>
    %cst_266 = arith.constant 3.200000e+01 : f32
    %431 = vector.broadcast %cst_266 : f32 to vector<8x1xf32>
    %432 = arith.divf %430, %431 : vector<8x1xf32>
    %433 = vector.broadcast %432 : vector<8x1xf32> to vector<8x32xf32>
    %434 = arith.subf %426, %433 : vector<8x32xf32>
    %435 = arith.mulf %434, %434 : vector<8x32xf32>
    %cst_267 = arith.constant dense<0.000000e+00> : vector<8xf32>
    %436 = vector.multi_reduction <add>, %435, %cst_267 [1] : vector<8x32xf32> to vector<8xf32>
    %437 = vector.shape_cast %436 : vector<8xf32> to vector<8x1xf32>
    %cst_268 = arith.constant 3.200000e+01 : f32
    %438 = vector.broadcast %cst_268 : f32 to vector<8x1xf32>
    %439 = arith.divf %437, %438 : vector<8x1xf32>
    %440 = vector.broadcast %432 : vector<8x1xf32> to vector<8x32xf32>
    %441 = arith.subf %426, %440 : vector<8x32xf32>
    %cst_269 = arith.constant 9.99999997E-7 : f32
    %442 = vector.broadcast %cst_269 : f32 to vector<8x1xf32>
    %443 = arith.addf %439, %442 : vector<8x1xf32>
    %444 = math.rsqrt %443 : vector<8x1xf32>
    %445 = vector.broadcast %444 : vector<8x1xf32> to vector<8x32xf32>
    %446 = arith.mulf %441, %445 : vector<8x32xf32>
    %447 = vector.broadcast %427 : vector<1x32xf32> to vector<8x32xf32>
    %448 = arith.mulf %446, %447 : vector<8x32xf32>
    %449 = vector.broadcast %428 : vector<1x32xf32> to vector<8x32xf32>
    %450 = arith.addf %448, %449 : vector<8x32xf32>
    %c0_270 = arith.constant 0 : index
    %c0_271 = arith.constant 0 : index
    %c0_272 = arith.constant 0 : index
    %451 = vector.load %arg31[%c0_270, %c0_271, %c0_272] : memref<1x8x32xf32, #tpu.memory_space<vmem>>, vector<1x8x32xf32>
    %452 = vector.shape_cast %451 : vector<1x8x32xf32> to vector<8x32xf32>
    %453 = vector.shape_cast %450 : vector<8x32xf32> to vector<1x8x32xf32>
    tpu.vector_store %arg31[%c0_270, %c0_271, %c0_272], %453 {strides = array<i32>} : memref<1x8x32xf32, #tpu.memory_space<vmem>>, vector<1x8x32xf32>,
    return
  }
  func.func @transform_0(%arg0: i32) -> (i32, i32, i32) {
    %c0_i32 = arith.constant 0 : i32
    %c0_i32_0 = arith.constant 0 : i32
    %c0_i32_1 = arith.constant 0 : i32
    return %arg0, %c0_i32, %c0_i32_0 : i32, i32, i32
  }
  func.func @transform_1(%arg0: i32) -> (i32, i32, i32) {
    %c0_i32 = arith.constant 0 : i32
    %c0_i32_0 = arith.constant 0 : i32
    %c0_i32_1 = arith.constant 0 : i32
    return %arg0, %c0_i32, %c0_i32_0 : i32, i32, i32
  }
  func.func @transform_2(%arg0: i32) -> (i32, i32, i32) {
    %c0_i32 = arith.constant 0 : i32
    %c0_i32_0 = arith.constant 0 : i32
    %c0_i32_1 = arith.constant 0 : i32
    %c0_i32_2 = arith.constant 0 : i32
    return %c0_i32, %c0_i32_0, %c0_i32_1 : i32, i32, i32
  }
  func.func @transform_3(%arg0: i32) -> (i32, i32, i32) {
    %c0_i32 = arith.constant 0 : i32
    %c0_i32_0 = arith.constant 0 : i32
    %c0_i32_1 = arith.constant 0 : i32
    %c0_i32_2 = arith.constant 0 : i32
    return %c0_i32, %c0_i32_0, %c0_i32_1 : i32, i32, i32
  }
  func.func @transform_4(%arg0: i32) -> (i32, i32, i32, i32) {
    %c0_i32 = arith.constant 0 : i32
    %c0_i32_0 = arith.constant 0 : i32
    %c0_i32_1 = arith.constant 0 : i32
    %c0_i32_2 = arith.constant 0 : i32
    %c0_i32_3 = arith.constant 0 : i32
    return %c0_i32, %c0_i32_0, %c0_i32_1, %c0_i32_2 : i32, i32, i32, i32
  }
  func.func @transform_5(%arg0: i32) -> (i32, i32, i32, i32) {
    %c0_i32 = arith.constant 0 : i32
    %c0_i32_0 = arith.constant 0 : i32
    %c0_i32_1 = arith.constant 0 : i32
    %c0_i32_2 = arith.constant 0 : i32
    %c0_i32_3 = arith.constant 0 : i32
    return %c0_i32, %c0_i32_0, %c0_i32_1, %c0_i32_2 : i32, i32, i32, i32
  }
  func.func @transform_6(%arg0: i32) -> (i32, i32, i32, i32) {
    %c0_i32 = arith.constant 0 : i32
    %c0_i32_0 = arith.constant 0 : i32
    %c0_i32_1 = arith.constant 0 : i32
    %c0_i32_2 = arith.constant 0 : i32
    %c0_i32_3 = arith.constant 0 : i32
    return %c0_i32, %c0_i32_0, %c0_i32_1, %c0_i32_2 : i32, i32, i32, i32
  }
  func.func @transform_7(%arg0: i32) -> (i32, i32, i32, i32) {
    %c0_i32 = arith.constant 0 : i32
    %c0_i32_0 = arith.constant 0 : i32
    %c0_i32_1 = arith.constant 0 : i32
    %c0_i32_2 = arith.constant 0 : i32
    %c0_i32_3 = arith.constant 0 : i32
    return %c0_i32, %c0_i32_0, %c0_i32_1, %c0_i32_2 : i32, i32, i32, i32
  }
  func.func @transform_8(%arg0: i32) -> (i32, i32, i32, i32) {
    %c0_i32 = arith.constant 0 : i32
    %c0_i32_0 = arith.constant 0 : i32
    %c0_i32_1 = arith.constant 0 : i32
    %c0_i32_2 = arith.constant 0 : i32
    %c0_i32_3 = arith.constant 0 : i32
    return %c0_i32, %c0_i32_0, %c0_i32_1, %c0_i32_2 : i32, i32, i32, i32
  }
  func.func @transform_9(%arg0: i32) -> (i32, i32, i32, i32) {
    %c0_i32 = arith.constant 0 : i32
    %c0_i32_0 = arith.constant 0 : i32
    %c0_i32_1 = arith.constant 0 : i32
    %c0_i32_2 = arith.constant 0 : i32
    %c0_i32_3 = arith.constant 0 : i32
    return %c0_i32, %c0_i32_0, %c0_i32_1, %c0_i32_2 : i32, i32, i32, i32
  }
  func.func @transform_10(%arg0: i32) -> (i32, i32, i32, i32) {
    %c0_i32 = arith.constant 0 : i32
    %c0_i32_0 = arith.constant 0 : i32
    %c0_i32_1 = arith.constant 0 : i32
    %c0_i32_2 = arith.constant 0 : i32
    %c0_i32_3 = arith.constant 0 : i32
    return %c0_i32, %c0_i32_0, %c0_i32_1, %c0_i32_2 : i32, i32, i32, i32
  }
  func.func @transform_11(%arg0: i32) -> (i32, i32, i32) {
    %c0_i32 = arith.constant 0 : i32
    %c0_i32_0 = arith.constant 0 : i32
    %c0_i32_1 = arith.constant 0 : i32
    %c0_i32_2 = arith.constant 0 : i32
    return %c0_i32, %c0_i32_0, %c0_i32_1 : i32, i32, i32
  }
  func.func @transform_12(%arg0: i32) -> (i32, i32, i32) {
    %c0_i32 = arith.constant 0 : i32
    %c0_i32_0 = arith.constant 0 : i32
    %c0_i32_1 = arith.constant 0 : i32
    %c0_i32_2 = arith.constant 0 : i32
    return %c0_i32, %c0_i32_0, %c0_i32_1 : i32, i32, i32
  }
  func.func @transform_13(%arg0: i32) -> (i32, i32, i32) {
    %c0_i32 = arith.constant 0 : i32
    %c0_i32_0 = arith.constant 0 : i32
    %c0_i32_1 = arith.constant 0 : i32
    %c0_i32_2 = arith.constant 0 : i32
    return %c0_i32, %c0_i32_0, %c0_i32_1 : i32, i32, i32
  }
  func.func @transform_14(%arg0: i32) -> (i32, i32, i32, i32) {
    %c0_i32 = arith.constant 0 : i32
    %c0_i32_0 = arith.constant 0 : i32
    %c0_i32_1 = arith.constant 0 : i32
    %c0_i32_2 = arith.constant 0 : i32
    %c0_i32_3 = arith.constant 0 : i32
    return %c0_i32, %c0_i32_0, %c0_i32_1, %c0_i32_2 : i32, i32, i32, i32
  }
  func.func @transform_15(%arg0: i32) -> (i32, i32, i32, i32) {
    %c0_i32 = arith.constant 0 : i32
    %c0_i32_0 = arith.constant 0 : i32
    %c0_i32_1 = arith.constant 0 : i32
    %c0_i32_2 = arith.constant 0 : i32
    %c0_i32_3 = arith.constant 0 : i32
    return %c0_i32, %c0_i32_0, %c0_i32_1, %c0_i32_2 : i32, i32, i32, i32
  }
  func.func @transform_16(%arg0: i32) -> (i32, i32, i32, i32) {
    %c0_i32 = arith.constant 0 : i32
    %c0_i32_0 = arith.constant 0 : i32
    %c0_i32_1 = arith.constant 0 : i32
    %c0_i32_2 = arith.constant 0 : i32
    %c0_i32_3 = arith.constant 0 : i32
    return %c0_i32, %c0_i32_0, %c0_i32_1, %c0_i32_2 : i32, i32, i32, i32
  }
  func.func @transform_17(%arg0: i32) -> (i32, i32, i32, i32) {
    %c0_i32 = arith.constant 0 : i32
    %c0_i32_0 = arith.constant 0 : i32
    %c0_i32_1 = arith.constant 0 : i32
    %c0_i32_2 = arith.constant 0 : i32
    %c0_i32_3 = arith.constant 0 : i32
    return %c0_i32, %c0_i32_0, %c0_i32_1, %c0_i32_2 : i32, i32, i32, i32
  }
  func.func @transform_18(%arg0: i32) -> (i32, i32, i32, i32) {
    %c0_i32 = arith.constant 0 : i32
    %c0_i32_0 = arith.constant 0 : i32
    %c0_i32_1 = arith.constant 0 : i32
    %c0_i32_2 = arith.constant 0 : i32
    %c0_i32_3 = arith.constant 0 : i32
    return %c0_i32, %c0_i32_0, %c0_i32_1, %c0_i32_2 : i32, i32, i32, i32
  }
  func.func @transform_19(%arg0: i32) -> (i32, i32, i32, i32) {
    %c0_i32 = arith.constant 0 : i32
    %c0_i32_0 = arith.constant 0 : i32
    %c0_i32_1 = arith.constant 0 : i32
    %c0_i32_2 = arith.constant 0 : i32
    %c0_i32_3 = arith.constant 0 : i32
    return %c0_i32, %c0_i32_0, %c0_i32_1, %c0_i32_2 : i32, i32, i32, i32
  }
  func.func @transform_20(%arg0: i32) -> (i32, i32, i32, i32) {
    %c0_i32 = arith.constant 0 : i32
    %c0_i32_0 = arith.constant 0 : i32
    %c0_i32_1 = arith.constant 0 : i32
    %c0_i32_2 = arith.constant 0 : i32
    %c0_i32_3 = arith.constant 0 : i32
    return %c0_i32, %c0_i32_0, %c0_i32_1, %c0_i32_2 : i32, i32, i32, i32
  }
  func.func @transform_21(%arg0: i32) -> (i32, i32, i32) {
    %c0_i32 = arith.constant 0 : i32
    %c0_i32_0 = arith.constant 0 : i32
    %c0_i32_1 = arith.constant 0 : i32
    %c0_i32_2 = arith.constant 0 : i32
    return %c0_i32, %c0_i32_0, %c0_i32_1 : i32, i32, i32
  }
  func.func @transform_22(%arg0: i32) -> (i32, i32, i32) {
    %c0_i32 = arith.constant 0 : i32
    %c0_i32_0 = arith.constant 0 : i32
    %c0_i32_1 = arith.constant 0 : i32
    %c0_i32_2 = arith.constant 0 : i32
    return %c0_i32, %c0_i32_0, %c0_i32_1 : i32, i32, i32
  }
  func.func @transform_23(%arg0: i32) -> (i32, i32, i32) {
    %c0_i32 = arith.constant 0 : i32
    %c0_i32_0 = arith.constant 0 : i32
    %c0_i32_1 = arith.constant 0 : i32
    %c0_i32_2 = arith.constant 0 : i32
    return %c0_i32, %c0_i32_0, %c0_i32_1 : i32, i32, i32
  }
  func.func @transform_24(%arg0: i32) -> (i32, i32, i32) {
    %c0_i32 = arith.constant 0 : i32
    %c0_i32_0 = arith.constant 0 : i32
    %c0_i32_1 = arith.constant 0 : i32
    %c0_i32_2 = arith.constant 0 : i32
    return %c0_i32, %c0_i32_0, %c0_i32_1 : i32, i32, i32
  }
  func.func @transform_25(%arg0: i32) -> (i32, i32, i32) {
    %c0_i32 = arith.constant 0 : i32
    %c0_i32_0 = arith.constant 0 : i32
    %c0_i32_1 = arith.constant 0 : i32
    %c0_i32_2 = arith.constant 0 : i32
    return %c0_i32, %c0_i32_0, %c0_i32_1 : i32, i32, i32
  }
  func.func @transform_26(%arg0: i32) -> (i32, i32, i32) {
    %c0_i32 = arith.constant 0 : i32
    %c0_i32_0 = arith.constant 0 : i32
    %c0_i32_1 = arith.constant 0 : i32
    %c0_i32_2 = arith.constant 0 : i32
    return %c0_i32, %c0_i32_0, %c0_i32_1 : i32, i32, i32
  }
  func.func @transform_27(%arg0: i32) -> (i32, i32, i32) {
    %c0_i32 = arith.constant 0 : i32
    %c0_i32_0 = arith.constant 0 : i32
    %c0_i32_1 = arith.constant 0 : i32
    %c0_i32_2 = arith.constant 0 : i32
    return %c0_i32, %c0_i32_0, %c0_i32_1 : i32, i32, i32
  }
  func.func @transform_28(%arg0: i32) -> (i32, i32) {
    %c0_i32 = arith.constant 0 : i32
    %c0_i32_0 = arith.constant 0 : i32
    %c0_i32_1 = arith.constant 0 : i32
    return %c0_i32, %c0_i32_0 : i32, i32
  }
  func.func @transform_29(%arg0: i32) -> (i32, i32) {
    %c0_i32 = arith.constant 0 : i32
    %c0_i32_0 = arith.constant 0 : i32
    %c0_i32_1 = arith.constant 0 : i32
    return %c0_i32, %c0_i32_0 : i32, i32
  }
  func.func @transform_30(%arg0: i32) -> (i32, i32, i32) {
    %c0_i32 = arith.constant 0 : i32
    %c0_i32_0 = arith.constant 0 : i32
    %c0_i32_1 = arith.constant 0 : i32
    return %arg0, %c0_i32, %c0_i32_0 : i32, i32, i32
  }
}

</mosaic_0001>

<bundles_post_ra>
// kernel: tpu_custom_call.1
= control target key start
LH: loop header
LB: loop body
LE: loop exit
PB: predicated region body
PF: predicated region fallthrough
CT: control target
= control target key end

     0   :  { %s8924_s6 = smov 1   ;;  %s8925_s10 = smov 2   ;;  %s10078_s0 = inlined_call_operand.smem [shape: u32[31], index: -1, kind: input, shape index: {}] }
   0x1   :  { %s8966_s5 = sld [smem:[%s10078_s0]]   ;;  %s8926_s14 = smov 3  }
   0x2   :  { %s8971_s9 = sld [smem:[%s10078_s0 + %s8924_s6]]   ;;  %s8927_s18 = smov 4  }
   0x3   :  { %s8976_s13 = sld [smem:[%s10078_s0 + %s8925_s10]]   ;;  %s8928_s22 = smov 5  }
   0x4   :  { %s8981_s17 = sld [smem:[%s10078_s0 + %s8926_s14]]   ;;  %s8929_s26 = smov 6  }
   0x5   :  { %s8986_s21 = sld [smem:[%s10078_s0 + %s8927_s18]]   ;;  %s8930_s30 = smov 7  }
   0x6   :  { %s8991_s25 = sld [smem:[%s10078_s0 + %s8928_s22]]   ;;  %s8931_s4 = smov 8  }
   0x7   :  { %10111 = sst [smem:[#allocation5_spill]] %s8966_s5  ;;  %s8932_s10 = smov 9  }
   0x8   :  { %10112 = sst [smem:[#allocation6_spill]] %s8971_s9  ;;  %s8933_s15 = smov 10  }
   0x9   :  { %s8996_s29 = sld [smem:[%s10078_s0 + %s8929_s26]]   ;;  %s8934_s20 = smov 11  }
   0xa   :  { %s9001_s3 = sld [smem:[%s10078_s0 + %s8930_s30]]   ;;  %s8935_s26 = smov 12  }
   0xb   :  { %s9006_s8 = sld [smem:[%s10078_s0 + %s8931_s4]]   ;;  %s8936_s1 = smov 13  }
   0xc   :  { %s9011_s14 = sld [smem:[%s10078_s0 + %s8932_s10]]   ;;  %s8937_s7 = smov 14  }
   0xd   :  { %s9016_s19 = sld [smem:[%s10078_s0 + %s8933_s15]]   ;;  %s8938_s15 = smov 15  }
   0xe   :  { %s9021_s24 = sld [smem:[%s10078_s0 + %s8934_s20]]   ;;  %s8939_s22 = smov 16  }
   0xf   :  { %s9026_s30 = sld [smem:[%s10078_s0 + %s8935_s26]]   ;;  %s8940_s28 = smov 17  }
  0x10   :  { %10113 = sst [smem:[#allocation7_spill]] %s9001_s3 }
  0x11   :  { %10114 = sst [smem:[#allocation8_spill]] %s9006_s8 }
  0x12   :  { %s9031_s6 = sld [smem:[%s10078_s0 + %s8936_s1]]  }
  0x13   :  { %s9036_s12 = sld [smem:[%s10078_s0 + %s8937_s7]]   ;;  %s8941_s7 = smov 18  }
  0x14   :  { %s9041_s20 = sld [smem:[%s10078_s0 + %s8938_s15]]   ;;  %s8942_s15 = smov 19  }
  0x15   :  { %s9046_s27 = sld [smem:[%s10078_s0 + %s8939_s22]]   ;;  %s8943_s22 = smov 20  }
  0x16   :  { %s9051_s4 = sld [smem:[%s10078_s0 + %s8940_s28]]   ;;  %s8944_s28 = smov 21  }
  0x17   :  { %s9056_s9 = sld [smem:[%s10078_s0 + %s8941_s7]]   ;;  %s8945_s7 = smov 22  }
  0x18   :  { %10115 = sst [smem:[#allocation9_spill]] %s9031_s6 }
  0x1a   :  { %10116 = sst [smem:[#allocation10_spill]] %s9041_s20 }
  0x1b   :  { %10117 = sst [smem:[#allocation11_spill]] %s9046_s27 }
  0x1c   :  { %10118 = sst [smem:[#allocation12_spill]] %s9051_s4 }
  0x1d   :  { %10119 = sst [smem:[#allocation13_spill]] %s9056_s9 }
  0x1e   :  { %s9061_s20 = sld [smem:[%s10078_s0 + %s8942_s15]]   ;;  %s8946_s15 = smov 23  }
  0x1f   :  { %s9066_s27 = sld [smem:[%s10078_s0 + %s8943_s22]]   ;;  %s8947_s22 = smov 24  }
  0x20   :  { %s9071_s4 = sld [smem:[%s10078_s0 + %s8944_s28]]   ;;  %s8948_s28 = smov 25  }
  0x21   :  { %s9076_s9 = sld [smem:[%s10078_s0 + %s8945_s7]]   ;;  %s8949_s7 = smov 26  }
  0x24   :  { %10120 = sst [smem:[#allocation14_spill]] %s9061_s20 }
  0x25   :  { %10121 = sst [smem:[#allocation15_spill]] %s9066_s27 }
  0x26   :  { %10122 = sst [smem:[#allocation16_spill]] %s9071_s4 }
  0x27   :  { %10123 = sst [smem:[#allocation17_spill]] %s9076_s9 }
  0x28   :  { %s9081_s20 = sld [smem:[%s10078_s0 + %s8946_s15]]   ;;  %s8950_s15 = smov 27  }
  0x29   :  { %s9086_s27 = sld [smem:[%s10078_s0 + %s8947_s22]]   ;;  %s8951_s22 = smov 28  }
  0x2a   :  { %s9091_s4 = sld [smem:[%s10078_s0 + %s8948_s28]]   ;;  %s8952_s28 = smov 29  }
  0x2b   :  { %s9096_s9 = sld [smem:[%s10078_s0 + %s8949_s7]]   ;;  %s8953_s7 = smov 30  }
  0x2e   :  { %10124 = sst [smem:[#allocation18_spill]] %s9081_s20 }
  0x2f   :  { %10125 = sst [smem:[#allocation19_spill]] %s9086_s27 }
  0x30   :  { %10126 = sst [smem:[#allocation20_spill]] %s9091_s4 }
  0x31   :  { %10127 = sst [smem:[#allocation21_spill]] %s9096_s9 }
  0x32   :  { %s9101_s20 = sld [smem:[%s10078_s0 + %s8950_s15]]  }
  0x33   :  { %s9106_s27 = sld [smem:[%s10078_s0 + %s8951_s22]]  }
  0x34   :  { %s9111_s4 = sld [smem:[%s10078_s0 + %s8952_s28]]  }
  0x35   :  { %s9116_s9 = sld [smem:[%s10078_s0 + %s8953_s7]]  }
  0x3a   :  { %10128 = sst [smem:[#allocation22_spill]] %s9111_s4 }
  0x3b   :  { %10129 = sst [smem:[#allocation23_spill]] %s9116_s9 }
  0x3c   :  { %66 = vsyncpa [#allocation3], 0 }
  0x3d   :  { %68 = vsyncpa [#allocation3 + $0x1], 0  ;;  %s9118_s15 = smov 0   ;;  %s9120_s16 = smov 0  }
  0x3e   :  { %s9122_s18 = smov 0   ;;  %s9124_s22 = smov 0  }
  0x3f LB: > { %s10130_s8 = sld [smem:[#allocation8_spill]]  ;;  %s10131_s6 = sld [smem:[#allocation9_spill]]  ;;  %s8918_s18 = sphi %s9122_s18, %s10171_s18   ;;  %s8914_s16 = sphi %s9120_s16, %s10173_s16   ;;  %s8910_s15 = sphi %s9118_s15, %s10172_s15   ;;  %s8922_s22 = sphi %s9124_s22, %s10169_s22  }
  0x40   : > { %s10132_s3 = sld [smem:[#allocation7_spill]]  ;;  %10133 = sst [smem:[#allocation24_spill]] %s8910_s15 }
  0x41   : > { %10134 = sst [smem:[#allocation25_spill]] %s8918_s18  ;;  %s9139_s0 = sadd.s32 4294967295, %s8922_s22  }
  0x42   : > { %10135 = sst [smem:[#allocation26_spill]] %s8922_s22  ;;  %s7194_s23 = sadd.s32 4294967294, %s8922_s22  }
  0x43   : > { %10136 = sst [smem:[#allocation27_spill]] %s9139_s0  ;;  %s9143_s26 = sadd.s32 1, %s8922_s22  }
  0x44   : > { %10137 = sst [smem:[#allocation28_spill]] %s9143_s26  ;;  %s721_s28 = sadd.s32 1, %s8918_s18 }
  0x45   : > { %s718_s1 = ssub.s32 %s8922_s22, %s9143_s26  ;;  %p731_p0 = scmp.ne.s32.totalorder %s8918_s18, %s8914_s16 }
  0x46   : > { %p719_p1 = scmp.eq.s32.totalorder %s718_s1, 0  ;;  %p732_p2 = scmp.eq.s32.totalorder %s9139_s0, 1 }
  0x47   : > { %p737_p3 = scmp.ne.s32.totalorder %s8914_s16, %s8910_s15  ;;  %p738_p4 = scmp.eq.s32.totalorder %s7194_s23, 1 }
  0x48   : > { %s9154_s2 = scalar_select %p719_p1, %s8918_s18, %s721_s28  }
  0x49   : > { %p9156_p5 = por %p732_p2, %p731_p0  ;;  %p9160_p6 = por %p738_p4, %p737_p3 }
  0x4a   : > { %10138 = sst [smem:[#allocation29_spill]] %s9154_s2  ;;  %p7197_p7 = scmp.ge.s32.totalorder %s8922_s22, 1 }
  0x4b   : > { %s10139_s7 = scalar_select %p9156_p5, 1, 0 }
  0x4c   : > { %s10141_s10 = scalar_select %p9160_p6, 1, 0 }
  0x4d   : > { %10140 = sst [smem:[#allocation30_spill]] %s10139_s7  ;;  %p854_p8 = scmp.lt.s32.totalorder %s8922_s22, 3 }
  0x4e   : > { %10142 = sst [smem:[#allocation31_spill]] %s10141_s10 }
  0x4f   : > { %p855_p9 = pnand %p7197_p7, %p854_p8 }
  0x50   : > { %s10143_s5 = sld [smem:[#allocation5_spill]] (!%p855_p9)  ;;  %p935_p10 = scmp.lt.s32.totalorder (!%p855_p9), %s9139_s0, 1  ;;  %vm1020_vm0 = vcmask (!%p855_p9), 261120   ;;  %v8673_v7 = vld [vmem:[%s8986_s21] sm:$0xff] (!%p855_p9)   ;;  %v8954_v9 = vmov (!%p855_p9), 0.0   ;;  %v8675_v10 = vld [vmem:[%s8986_s21 + $0x8] sm:$0xff] (!%p855_p9)  }
  0x51   : > { %858 = sbr.rel (%p855_p9) target bundleno = 8039 (0x1f67), region = 140  ;;  %v8674_v8 = vld [vmem:[%s8986_s21 + $0x20] sm:$0xff] (!%p855_p9)   ;;  %7889 = vmatprep.subr.bf16.mxu1 (!%p855_p9), %v8954_v9  ;;  %7905 = vmatprep.subr.bf16.mxu0 (!%p855_p9), %v8954_v9  ;;  %v8676_v11 = vld [vmem:[%s8986_s21 + $0x28] sm:$0xff] (!%p855_p9)   ;;  %vm8955_vm1 = vmmov (!%p855_p9), 0   ;;  %v8677_v21 = vld [vmem:[%s8986_s21 + $0x10] sm:$0xff] (!%p855_p9)   ;;  %vm1757_vm2 = vcmask (!%p855_p9), 64512  }
  0x52   : > { %7890 = vmatpush3.bf16.msra.mxu1 (!%p855_p9), %v8673_v7  ;;  %7906 = vmatpush3.bf16.msra.mxu0 (!%p855_p9), %v8674_v8  ;;  %v7201_v16 = vld [vmem:[%s8976_s13] ss:$0 sm:$0xff] (!%p855_p9)  ;;  %v8679_v24 = vld [vmem:[%s8986_s21 + $0x18] sm:$0xff] (!%p855_p9)   ;;  %v8680_v25 = vld [vmem:[%s8996_s29 + $0x8] sm:$0xff] (!%p855_p9)   ;;  %vm1997_vm3 = vcmask (!%p855_p9), 1043456   ;;  %s10144_s1 = sld [smem:[#allocation11_spill]] (!%p855_p9) }
  0x53   : > { %7891 = vmatprep.subr.bf16.mxu1 (!%p855_p9), %v8954_v9  ;;  %7907 = vmatprep.subr.bf16.mxu0 (!%p855_p9), %v8954_v9  ;;  %v7202_v18 = vld [vmem:[%s8981_s17] ss:$0 sm:$0xff] (!%p855_p9)  ;;  %v8681_v26 = vld [vmem:[%s8986_s21 + $0x30] sm:$0xff] (!%p855_p9)   ;;  %v8683_v28 = vld [vmem:[%s8986_s21 + $0x38] sm:$0xff] (!%p855_p9)   ;;  %s10150_s2 = sld [smem:[#allocation15_spill]] (!%p855_p9)  ;;  %s10151_s18 = sld [smem:[#allocation16_spill]] (!%p855_p9) }
  0x54   : > { %7893 = vmatprep.mubr.msk.bf16.mxu1 (!%p855_p9), %vm8955_vm1, %v8954_v9  ;;  %7909 = vmatprep.mubr.msk.bf16.mxu0 (!%p855_p9), %vm8955_vm1, %v8954_v9  ;;  %v8678_v22 = vld [vmem:[%s8996_s29] sm:$0xff] (!%p855_p9)   ;;  %v8684_v29 = vld [vmem:[%s8996_s29 + $0x28] sm:$0xff] (!%p855_p9)   ;;  %v8685_v30 = vld [vmem:[%s8996_s29 + $0x10] sm:$0xff] (!%p855_p9)   ;;  %s10153_s10 = sld [smem:[#allocation19_spill]] (!%p855_p9)  ;;  %s10154_s15 = sld [smem:[#allocation21_spill]] (!%p855_p9)  ;;  %vm3947_vm5 = vcmask (!%p855_p9), 523264  }
  0x55   : > { %v8682_v27 = vld [vmem:[%s8996_s29 + $0x20] sm:$0xff] (!%p855_p9)   ;;  %v8687_v32 = vld [vmem:[%s8996_s29 + $0x18] sm:$0xff] (!%p855_p9)   ;;  %v8688_v33 = vld [vmem:[%s10130_s8 + $0x8] sm:$0xff] (!%p855_p9)   ;;  %s10158_s22 = sld [smem:[#allocation18_spill]] (!%p855_p9)  ;;  %s10160_s4 = sld [smem:[#allocation20_spill]] (!%p855_p9) }
  0x56   : > { %7892 = vmatpush3.bf16.msra.mxu1 (!%p855_p9), %v8675_v10  ;;  %7908 = vmatpush3.bf16.msra.mxu0 (!%p855_p9), %v8676_v11  ;;  %v8686_v31 = vld [vmem:[%s10130_s8] sm:$0xff] (!%p855_p9)   ;;  %v8689_v34 = vld [vmem:[%s8996_s29 + $0x30] sm:$0xff] (!%p855_p9)   ;;  %v8691_v36 = vld [vmem:[%s8996_s29 + $0x38] sm:$0xff] (!%p855_p9)  }
  0x57   : > { %7897 = vmatprep.subr.bf16.mxu1 (!%p855_p9), %v8954_v9  ;;  %7921 = vmatprep.subr.bf16.mxu0 (!%p855_p9), %v8954_v9  ;;  %v8690_v35 = vld [vmem:[%s10130_s8 + $0x20] sm:$0xff] (!%p855_p9)   ;;  %v8692_v37 = vld [vmem:[%s10130_s8 + $0x28] sm:$0xff] (!%p855_p9)   ;;  %v8693_v38 = vld [vmem:[%s10130_s8 + $0x10] sm:$0xff] (!%p855_p9)  }
  0x58   : > { %s9168_s11 = scalar_select %p935_p10, %s9139_s0, 1  ;;  %v8694_v39 = vld [vmem:[%s10130_s8 + $0x18] sm:$0xff]   ;;  %v8695_v40 = vld [vmem:[%s10130_s8 + $0x30] sm:$0xff]   ;;  %v7219_v50 = vld [vmem:[%s10132_s3] ss:$0 sm:$0xff] }
  0x59   : > { %v8696_v41 = vld [vmem:[%s10130_s8 + $0x38] sm:$0xff]   ;;  %v7203_v61 = vld [vmem:[%s8991_s25] ss:$0 sm:$0xff]  ;;  %v7221_v63 = vld [vmem:[%s10132_s3 + $0x2] ss:$0 sm:$0xff]  ;;  %s10152_s26 = smov %s10151_s18 }
  0x5a   : > { %s7199_s23 = sshll.u32 %s9168_s11, 3  ;;  %s10147_s11 = sld [smem:[#allocation12_spill]] }
  0x5b   : > { %s9174_s28 = scalar_lea.vmem %s10143_s5, %s7199_s23  ;;  %s10155_s7 = smov %s10154_s15 }
  0x5c   : > { %v944_v0 = vld [vmem:[%s9174_s28] sm:$0xff]  ;;  %s10159_s0 = smov %s10158_s22 }
  0x5d   : > { %v1021_v1 = vsel %vm1020_vm0, %v944_v0, 0.0 }
  0x5e   : > { %1022 = vadd.xlane.f32.xlu0 %v1021_v1 }
  0xeb   : > { %v1023_v2 = vpop.xlane.xlu0 %1022 }
  0xec   : > { %v1025_v3 = vmul.f32 0.03125, %v1023_v2 }
  0xee   : > { %v1026_v4 = vsub.f32 %v944_v0, %v1025_v3 }
  0xf0   : > { %v1027_v5 = vmul.f32 %v1026_v4, %v1026_v4 }
  0xf2   : > { %v1028_v6 = vsel %vm1020_vm0, %v1027_v5, 0.0 }
  0xf3   : > { %1029 = vadd.xlane.f32.xlu0 %v1028_v6 }
 0x180   : > { %v1030_v12 = vpop.xlane.xlu0 %1029 }
 0x181   : > { %v1031_v13 = vmul.f32 0.03125, %v1030_v12 }
 0x183   : > { %v1032_v14 = vadd.f32 1e-06, %v1031_v13  ;;  %v7205_v13 = vld [vmem:[%s8991_s25 + $0x2] ss:$0 sm:$0xff] }
 0x185   : > { %8781 = vrsqrt.f32 %v1032_v14 }
 0x18f   : > { %v8782_v15 = vpop.eup %8781 }
 0x190   : > { %v1034_v17 = vmul.f32 %v8782_v15, %v1026_v4  ;;  %v7220_v15 = vld [vmem:[%s10132_s3 + $0x1] ss:$0 sm:$0xff] }
 0x192   : > { %v1041_v19 = vmul.f32 %v7201_v16, %v1034_v17  ;;  %v7235_v16 = vld [vmem:[%s9011_s14] ss:$0 sm:$0xff] }
 0x194   : > { %v1048_v20 = vadd.f32 %v7202_v18, %v1041_v19 }
 0x196   : > { %v9197_v23 = vpack.c.bf16 %v1048_v20, %v1048_v20 }
 0x198   : > { %7894 = vmatmul.mubr.msk.bf16.vlgmr.msra.gmra.mrb[0].mxu1 %vm1020_vm0, %v9197_v23  ;;  %7910 = vmatmul.mubr.msk.bf16.vlgmr.msra.gmra.mrb[0].mxu0 %vm1020_vm0, %v9197_v23 }
 0x199   : > { %7898 = vmatpush3.bf16.msra.mxu1 %v8677_v21  ;;  %7922 = vmatpush3.bf16.msra.mxu0 %v8678_v22 }
 0x19a   : > { %7899 = vmatprep.subr.bf16.mxu1 %v8954_v9  ;;  %7923 = vmatprep.subr.bf16.mxu0 %v8954_v9 }
 0x19b   : > { %7901 = vmatprep.mubr.msk.bf16.mxu1 %vm8955_vm1, %v8954_v9  ;;  %7925 = vmatprep.mubr.msk.bf16.mxu0 %vm8955_vm1, %v8954_v9 }
 0x19d   : > { %7900 = vmatpush3.bf16.msra.mxu1 %v8679_v24  ;;  %7924 = vmatpush3.bf16.msra.mxu0 %v8680_v25 }
 0x19e   : > { %7913 = vmatprep.subr.bf16.mxu1 %v8954_v9  ;;  %7937 = vmatprep.subr.bf16.mxu0 %v8954_v9 }
 0x1a0   : > { %7902 = vmatmul.mubr.msk.bf16.vlgmr.msra.gmra.mrb[4].mxu1 %vm1020_vm0, %v9197_v23  ;;  %7926 = vmatmul.mubr.msk.bf16.vlgmr.msra.gmra.mrb[4].mxu0 %vm1020_vm0, %v9197_v23 }
 0x1a1   : > { %7914 = vmatpush3.bf16.msra.mxu1 %v8681_v26  ;;  %7938 = vmatpush3.bf16.msra.mxu0 %v8682_v27 }
 0x1a2   : > { %7915 = vmatprep.subr.bf16.mxu1 %v8954_v9  ;;  %7939 = vmatprep.subr.bf16.mxu0 %v8954_v9 }
 0x1a3   : > { %7917 = vmatprep.mubr.msk.bf16.mxu1 %vm8955_vm1, %v8954_v9  ;;  %7941 = vmatprep.mubr.msk.bf16.mxu0 %vm8955_vm1, %v8954_v9 }
 0x1a5   : > { %7916 = vmatpush3.bf16.msra.mxu1 %v8683_v28  ;;  %7940 = vmatpush3.bf16.msra.mxu0 %v8684_v29 }
 0x1a6   : > { %7929 = vmatprep.subr.bf16.mxu1 %v8954_v9  ;;  %7953 = vmatprep.subr.bf16.mxu0 %v8954_v9 }
 0x1a8   : > { %7918 = vmatmul.mubr.msk.bf16.vlgmr.msra.gmra.mrb[8].mxu1 %vm1020_vm0, %v9197_v23  ;;  %7942 = vmatmul.mubr.msk.bf16.vlgmr.msra.gmra.mrb[8].mxu0 %vm1020_vm0, %v9197_v23 }
 0x1a9   : > { %7930 = vmatpush3.bf16.msra.mxu1 %v8685_v30  ;;  %7954 = vmatpush3.bf16.msra.mxu0 %v8686_v31  ;;  %v7204_v31 = vld [vmem:[%s8991_s25 + $0x1] ss:$0 sm:$0xff] }
 0x1aa   : > { %7931 = vmatprep.subr.bf16.mxu1 %v8954_v9  ;;  %7955 = vmatprep.subr.bf16.mxu0 %v8954_v9 }
 0x1ab   : > { %7933 = vmatprep.mubr.msk.bf16.mxu1 %vm8955_vm1, %v8954_v9  ;;  %7957 = vmatprep.mubr.msk.bf16.mxu0 %vm8955_vm1, %v8954_v9 }
 0x1ad   : > { %7932 = vmatpush3.bf16.msra.mxu1 %v8687_v32  ;;  %7956 = vmatpush3.bf16.msra.mxu0 %v8688_v33 }
 0x1ae   : > { %7945 = vmatprep.subr.bf16.mxu1 %v8954_v9  ;;  %7969 = vmatprep.subr.bf16.mxu0 %v8954_v9 }
 0x1b0   : > { %7934 = vmatmul.mubr.msk.bf16.vlgmr.msra.gmra.mrb[12].mxu1 %vm1020_vm0, %v9197_v23  ;;  %7958 = vmatmul.mubr.msk.bf16.vlgmr.msra.gmra.mrb[12].mxu0 %vm1020_vm0, %v9197_v23 }
 0x1b1   : > { %7946 = vmatpush3.bf16.msra.mxu1 %v8689_v34  ;;  %7970 = vmatpush3.bf16.msra.mxu0 %v8690_v35  ;;  %v7222_v34 = vld [vmem:[%s10132_s3 + $0x3] ss:$0 sm:$0xff] }
 0x1b2   : > { %7947 = vmatprep.subr.bf16.mxu1 %v8954_v9  ;;  %7971 = vmatprep.subr.bf16.mxu0 %v8954_v9 }
 0x1b3   : > { %7949 = vmatprep.mubr.msk.bf16.mxu1 %vm8955_vm1, %v8954_v9  ;;  %7973 = vmatprep.mubr.msk.bf16.mxu0 %vm8955_vm1, %v8954_v9 }
 0x1b5   : > { %7948 = vmatpush3.bf16.msra.mxu1 %v8691_v36  ;;  %7972 = vmatpush3.bf16.msra.mxu0 %v8692_v37 }
 0x1b6   : > { %7961 = vmatprep.subr.bf16.mxu1 %v8954_v9  ;;  %7985 = vmatprep.subr.bf16.mxu0 %v8954_v9 }
 0x1b8   : > { %7950 = vmatmul.mubr.msk.bf16.vlgmr.msra.gmra.mrb[16].mxu1 %vm1020_vm0, %v9197_v23  ;;  %7974 = vmatmul.mubr.msk.bf16.vlgmr.msra.gmra.mrb[16].mxu0 %vm1020_vm0, %v9197_v23 }
 0x1b9   : > { %7962 = vmatpush3.bf16.msra.mxu1 %v8693_v38  ;;  %7965 = vmatprep.mubr.msk.bf16.mxu1 %vm8955_vm1, %v8954_v9 }
 0x1ba   : > { %7963 = vmatprep.subr.bf16.mxu1 %v8954_v9  ;;  %7987 = vmatprep.mubr.msk.bf16.mxu0 %vm8955_vm1, %v8954_v9 }
 0x1bd   : > { %7964 = vmatpush3.bf16.msra.mxu1 %v8694_v39 }
 0x1be   : > { %7977 = vmatprep.subr.bf16.mxu1 %v8954_v9 }
 0x1c0   : > { %7966 = vmatmul.mubr.msk.bf16.vlgmr.msra.gmra.mrb[20].mxu1 %vm1020_vm0, %v9197_v23 }
 0x1c1   : > { %7978 = vmatpush3.bf16.msra.mxu1 %v8695_v40  ;;  %7981 = vmatprep.mubr.msk.bf16.mxu1 %vm8955_vm1, %v8954_v9 }
 0x1c2   : > { %7979 = vmatprep.subr.bf16.mxu1 %v8954_v9 }
 0x1c5   : > { %7980 = vmatpush3.bf16.msra.mxu1 %v8696_v41 }
 0x1c6   : > { %7991 = vmatprep.subr.bf16.mxu1 %v8954_v9 }
 0x1c8   : > { %7982 = vmatmul.mubr.msk.bf16.vlgmr.msra.gmra.mrb[24].mxu1 %vm1020_vm0, %v9197_v23 }
 0x1c9   : > { %7993 = vmatprep.mubr.msk.bf16.mxu1 %vm8955_vm1, %v8954_v9 }
 0x26b   : > { %v1123_v42 = vpop.f32.mrb[0].mxu1  ;;  %v1227_v43 = vpop.f32.mrb[0].mxu0 }
 0x26c   : > { %v7895_v44 = vpop.f32.mrb[1].mxu1  ;;  %v7911_v45 = vpop.f32.mrb[1].mxu0  ;;  %v1124_v0 = vadd.f32 %v7203_v61, %v1123_v42  ;;  %v1228_v17 = vadd.f32 %v7205_v13, %v1227_v43 }
 0x26d   : > { %v1126_v46 = vpop.f32.mrb[2].mxu1  ;;  %v1230_v47 = vpop.f32.mrb[2].mxu0 }
 0x26e   : > { %v7896_v48 = vpop.f32.mrb[3].mxu1  ;;  %v7912_v49 = vpop.f32.mrb[3].mxu0  ;;  %v1749_v8 = vpack.c.bf16 %v1124_v0, %v1124_v0  ;;  %v1751_v26 = vpack.c.bf16 %v1228_v17, %v1228_v17  ;;  %v7206_v47 = vld [vmem:[%s8991_s25 + $0x3] ss:$0 sm:$0xff] }
 0x26f   : > { %v7236_v49 = vld [vmem:[%s9011_s14 + $0x1] ss:$0 sm:$0xff] }
 0x273   : > { %v1175_v51 = vpop.f32.mrb[4].mxu1  ;;  %v1355_v52 = vpop.f32.mrb[4].mxu0 }
 0x274   : > { %v1356_v53 = vadd.f32 %v7219_v50, %v1355_v52  ;;  %v7903_v54 = vpop.f32.mrb[5].mxu1  ;;  %v7927_v55 = vpop.f32.mrb[5].mxu0  ;;  %v1176_v35 = vadd.f32 %v7204_v31, %v1175_v51 }
 0x275   : > { %v1178_v56 = vpop.f32.mrb[6].mxu1  ;;  %v1358_v57 = vpop.f32.mrb[6].mxu0 }
 0x276   : > { %v1753_v58 = vpack.c.bf16 %v1356_v53, %v1356_v53  ;;  %v7904_v59 = vpop.f32.mrb[7].mxu1  ;;  %v7928_v60 = vpop.f32.mrb[7].mxu0  ;;  %v1750_v43 = vpack.c.bf16 %v1176_v35, %v1176_v35 }
 0x278   : > { %v1762_v62 = vsel %vm1757_vm2, %v1753_v58, 0 }
 0x279   : > { %7986 = vmatpush3.bf16.xpose.msra.mxu0 %v1762_v62 }
 0x27a   : > { %7997 = vmatprep.subr.bf16.mxu0 %v8954_v9 }
 0x27b   : > { %v1279_v1 = vpop.f32.mrb[8].mxu1  ;;  %v1459_v2 = vpop.f32.mrb[8].mxu0 }
 0x27c   : > { %v1460_v3 = vadd.f32 %v7221_v63, %v1459_v2  ;;  %v7919_v4 = vpop.f32.mrb[9].mxu1  ;;  %v7943_v5 = vpop.f32.mrb[9].mxu0  ;;  %v1280_v50 = vadd.f32 %v7206_v47, %v1279_v1  ;;  %v947_v63 = vlaneseq  ;;  %v8956_v2 = vmov -1e+09  }
 0x27d   : > { %v1282_v6 = vpop.f32.mrb[10].mxu1  ;;  %v1462_v7 = vpop.f32.mrb[10].mxu0 }
 0x27e   : > { %v1755_v10 = vpack.c.bf16 %v1460_v3, %v1460_v3  ;;  %v7920_v11 = vpop.f32.mrb[11].mxu1  ;;  %v7944_v12 = vpop.f32.mrb[11].mxu0  ;;  %v1752_v55 = vpack.c.bf16 %v1280_v50, %v1280_v50  ;;  %v948_v0 = vshrl.u32 %v947_v63, 7  ;;  %v950_v1 = vand.u32 127, %v947_v63 }
 0x280   : > { %v1854_v14 = vsel %vm1757_vm2, %v1755_v10, 0  ;;  %7988 = vmatmul.mubr.msk.bf16.vlgmr.msra.gmra.mrb[20].mxu0 %vm1757_vm2, %v1749_v8  ;;  %vm951_vm4 = vcmp.le.s32.totalorder %v950_v1, %v948_v0 }
 0x281   : > { %7998 = vmatpush3.bf16.xpose.msra.mxu0 %v1854_v14  ;;  %7999 = vmatprep.mubr.msk.bf16.mxu0 %vm8955_vm1, %v8954_v9  ;;  %v9323_v3 = vsel %vm951_vm4, 0.0, %v8956_v2 }
 0x282   : > { %8009 = vmatprep.subr.bf16.mxu0 %v8954_v9 }
 0x283   : > { %v1407_v18 = vpop.f32.mrb[12].mxu1  ;;  %v1587_v19 = vpop.f32.mrb[12].mxu0 }
 0x284   : > { %v1408_v20 = vadd.f32 %v7220_v15, %v1407_v18  ;;  %v1588_v21 = vadd.f32 %v7235_v16, %v1587_v19  ;;  %v7935_v22 = vpop.f32.mrb[13].mxu1  ;;  %v7959_v23 = vpop.f32.mrb[13].mxu0 }
 0x285   : > { %v1410_v24 = vpop.f32.mrb[14].mxu1  ;;  %v1590_v25 = vpop.f32.mrb[14].mxu0 }
 0x286   : > { %v1754_v27 = vpack.c.bf16 %v1408_v20, %v1408_v20  ;;  %v1990_v28 = vpack.c.bf16 %v1588_v21, %v1588_v21  ;;  %v7936_v29 = vpop.f32.mrb[15].mxu1  ;;  %v7960_v30 = vpop.f32.mrb[15].mxu0 }
 0x288   : > { %v1808_v32 = vsel %vm1757_vm2, %v1754_v27, 0  ;;  %v1999_v33 = vsel %vm1997_vm3, %v1990_v28, 0  ;;  %8000 = vmatmul.mubr.msk.bf16.vlgmr.msra.gmra.mrb[24].mxu0 %vm1757_vm2, %v1751_v26 }
 0x289   : > { %7992 = vmatpush3.bf16.xpose.msra.mxu1 %v1808_v32  ;;  %8010 = vmatpush3.bf16.msra.mxu0 %v1999_v33 }
 0x28a   : > { %8003 = vmatprep.subr.bf16.mxu1 %v8954_v9  ;;  %8011 = vmatprep.mubr.msk.bf16.mxu0 %vm8955_vm1, %v8954_v9 }
 0x28b   : > { %v1511_v36 = vpop.f32.mrb[16].mxu1  ;;  %v9306_v37 = vpop.f32.mrb[16].mxu0  ;;  %8021 = vmatprep.subr.bf16.mxu0 %v8954_v9 }
 0x28c   : > { %v1512_v38 = vadd.f32 %v7222_v34, %v1511_v36  ;;  %v7951_v39 = vpop.f32.mrb[17].mxu1  ;;  %v7975_v40 = vpop.f32.mrb[17].mxu0 }
 0x28d   : > { %v1514_v41 = vpop.f32.mrb[18].mxu1  ;;  %v1694_v42 = vpop.f32.mrb[18].mxu0 }
 0x28e   : > { %v1756_v44 = vpack.c.bf16 %v1512_v38, %v1512_v38  ;;  %v7952_v45 = vpop.f32.mrb[19].mxu1  ;;  %v7976_v46 = vpop.f32.mrb[19].mxu0 }
 0x290   : > { %v1900_v48 = vsel %vm1757_vm2, %v1756_v44, 0  ;;  %7994 = vmatmul.mubr.msk.bf16.vlgmr.msra.gmra.mrb[28].mxu1 %vm1757_vm2, %v1750_v43 }
 0x291   : > { %8004 = vmatpush3.bf16.xpose.msra.mxu1 %v1900_v48  ;;  %8005 = vmatprep.mubr.msk.bf16.mxu1 %vm8955_vm1, %v8954_v9 }
 0x292   : > { %8015 = vmatprep.subr.bf16.mxu1 %v8954_v9 }
 0x293   : > { %v1639_v51 = vpop.f32.mrb[20].mxu1 }
 0x294   : > { %v1640_v52 = vadd.f32 %v7236_v49, %v1639_v51  ;;  %v7967_v53 = vpop.f32.mrb[21].mxu1  ;;  %v7237_v51 = vld [vmem:[%s9011_s14 + $0x2] ss:$0 sm:$0xff] }
 0x295   : > { %v1642_v54 = vpop.f32.mrb[22].mxu1 }
 0x296   : > { %v1991_v56 = vpack.c.bf16 %v1640_v52, %v1640_v52  ;;  %v7968_v57 = vpop.f32.mrb[23].mxu1  ;;  %v1692_v52 = vadd.f32 %v7237_v51, %v9306_v37 }
 0x298   : > { %v2045_v58 = vsel %vm1997_vm3, %v1991_v56, 0  ;;  %8006 = vmatmul.mubr.msk.bf16.vlgmr.msra.gmra.mrb[32].mxu1 %vm1757_vm2, %v1752_v55  ;;  %v1992_v55 = vpack.c.bf16 %v1692_v52, %v1692_v52 }
 0x299   : > { %8016 = vmatpush3.bf16.msra.mxu1 %v2045_v58  ;;  %8017 = vmatprep.mubr.msk.bf16.mxu1 %vm8955_vm1, %v8954_v9 }
 0x29a   : > { %8027 = vmatprep.subr.bf16.mxu1 %v8954_v9  ;;  %v2091_v58 = vsel %vm1997_vm3, %v1992_v55, 0 }
 0x29b   : > { %v9321_v59 = vpop.f32.mrb[24].mxu1 }
 0x29c   : > { %v7983_v60 = vpop.f32.mrb[25].mxu1 }
 0x29d   : > { %v1746_v61 = vpop.f32.mrb[26].mxu1 }
 0x29e   : > { %v7984_v62 = vpop.f32.mrb[27].mxu1 }
 0x29f   : > { %v7238_v62 = vld [vmem:[%s9011_s14 + $0x3] ss:$0 sm:$0xff] }
 0x2a0   : > { %v1744_v0 = vadd.f32 %v7238_v62, %v9321_v59 }
 0x353   : > { %v1798_v4 = vpop.f32.mrb[20].mxu0 }
 0x354   : > { %v1799_v5 = vadd.f32 %v1798_v4, %v9323_v3  ;;  %v7989_v6 = vpop.f32.mrb[21].mxu0  ;;  %v1993_v4 = vpack.c.bf16 %v1744_v0, %v1744_v0 }
 0x355   : > { %v1801_v7 = vpop.f32.mrb[22].mxu0 }
 0x356   : > { %v7990_v8 = vpop.f32.mrb[23].mxu0  ;;  %v1942_v10 = vsel %vm1757_vm2, %v1799_v5, -inf  ;;  %v2137_v7 = vsel %vm1997_vm3, %v1993_v4, 0 }
 0x357   : > { %1943 = vmax.xlane.f32.xlu1 %v1942_v10 }
 0x35b   : > { %v1890_v11 = vpop.f32.mrb[24].mxu0 }
 0x35c   : > { %v1891_v12 = vadd.f32 %v1890_v11, %v9323_v3  ;;  %v8001_v13 = vpop.f32.mrb[25].mxu0  ;;  %v1015_v11 = vld [vmem:[%s9016_s19] sm:$0xf] }
 0x35d   : > { %v1893_v14 = vpop.f32.mrb[26].mxu0  ;;  %v1016_v13 = vld [vmem:[%s9016_s19 + $0x4] sm:$0xf] }
 0x35e   : > { %v8002_v15 = vpop.f32.mrb[27].mxu0  ;;  %v1948_v16 = vsel %vm1757_vm2, %v1891_v12, -inf  ;;  %v2233_v14 = vsel %vm1997_vm3, %v1016_v13, 0  ;;  %v8700_v13 = vld [vmem:[%s9036_s12 + $0x18] sm:$0xff]  }
 0x35f   : > { %1949 = vmax.xlane.f32.xlu0 %v1948_v16  ;;  %v1017_v15 = vld [vmem:[%s9016_s19 + $0x8] sm:$0xf] }
 0x363   : > { %v1844_v17 = vpop.f32.mrb[28].mxu1 }
 0x364   : > { %v1845_v18 = vadd.f32 %v1844_v17, %v9323_v3  ;;  %v7995_v19 = vpop.f32.mrb[29].mxu1 }
 0x365   : > { %v1847_v20 = vpop.f32.mrb[30].mxu1  ;;  %v2279_v19 = vsel %vm1997_vm3, %v1017_v15, 0 }
 0x366   : > { %v7996_v21 = vpop.f32.mrb[31].mxu1  ;;  %v1945_v22 = vsel %vm1757_vm2, %v1845_v18, -inf }
 0x367   : > { %1946 = vmax.xlane.f32.xlu1 %v1945_v22 }
 0x36b   : > { %v1936_v23 = vpop.f32.mrb[32].mxu1 }
 0x36c   : > { %v1937_v24 = vadd.f32 %v1936_v23, %v9323_v3  ;;  %v8007_v25 = vpop.f32.mrb[33].mxu1 }
 0x36d   : > { %v1939_v26 = vpop.f32.mrb[34].mxu1 }
 0x36e   : > { %v8008_v27 = vpop.f32.mrb[35].mxu1  ;;  %v1951_v28 = vsel %vm1757_vm2, %v1937_v24, -inf }
 0x36f   : > { %1952 = vmax.xlane.f32.xlu1 %v1951_v28  ;;  %v1018_v27 = vld [vmem:[%s9016_s19 + $0xc] sm:$0xf] }
 0x3e4   : > { %v1944_v29 = vpop.xlane.xlu1 %1943 }
 0x3e5   : > { %v1954_v30 = vsub.f32 %v1799_v5, %v1944_v29 }
 0x3e7   : > { %v1958_v31 = vmul.f32 1.442695, %v1954_v30 }
 0x3e9   : > { %8783 = vpow2.f32 %v1958_v31  ;;  %v2325_v31 = vsel %vm1997_vm3, %v1018_v27, 0  ;;  %v8704_v27 = vld [vmem:[%s9036_s12 + $0x38] sm:$0xff]  }
 0x3ec   : > { %v1950_v32 = vpop.xlane.xlu0 %1949 }
 0x3ed   : > { %v1956_v33 = vsub.f32 %v1891_v12, %v1950_v32  ;;  %v2187_v12 = vsel %vm1997_vm3, %v1015_v11, 0  ;;  %v8698_v11 = vld [vmem:[%s9036_s12 + $0x10] sm:$0xff]  }
 0x3ef   : > { %v1962_v34 = vmul.f32 1.442695, %v1956_v33 }
 0x3f1   : > { %8785 = vpow2.f32 %v1962_v34 }
 0x3f3   : > { %v8784_v35 = vpop.eup %8783 }
 0x3f4   : > { %v1947_v36 = vpop.xlane.xlu1 %1946  ;;  %v1966_v38 = vsel %vm1757_vm2, %v8784_v35, 0.0 }
 0x3f5   : > { %v1955_v39 = vsub.f32 %v1845_v18, %v1947_v36  ;;  %1967 = vadd.xlane.f32.xlu0 %v1966_v38 }
 0x3f7   : > { %v1960_v40 = vmul.f32 1.442695, %v1955_v39 }
 0x3f9   : > { %8787 = vpow2.f32 %v1960_v40 }
 0x3fb   : > { %v8786_v41 = vpop.eup %8785 }
 0x3fc   : > { %v1953_v42 = vpop.xlane.xlu1 %1952  ;;  %v1972_v43 = vsel %vm1757_vm2, %v8786_v41, 0.0 }
 0x3fd   : > { %v1957_v44 = vsub.f32 %v1937_v24, %v1953_v42  ;;  %1973 = vadd.xlane.f32.xlu0 %v1972_v43 }
 0x3ff   : > { %v1964_v45 = vmul.f32 1.442695, %v1957_v44 }
 0x401   : > { %8789 = vpow2.f32 %v1964_v45 }
 0x403   : > { %v8788_v46 = vpop.eup %8787 }
 0x404   : > { %v1969_v47 = vsel %vm1757_vm2, %v8788_v46, 0.0 }
 0x405   : > { %1970 = vadd.xlane.f32.xlu1 %v1969_v47 }
 0x40b   : > { %v8790_v48 = vpop.eup %8789 }
 0x40c   : > { %v1975_v49 = vsel %vm1757_vm2, %v8790_v48, 0.0 }
 0x40d   : > { %1976 = vadd.xlane.f32.xlu1 %v1975_v49 }
 0x482   : > { %v1968_v50 = vpop.xlane.xlu0 %1967 }
 0x483   : > { %8791 = vrcp.f32 %v1968_v50 }
 0x48a   : > { %v1974_v53 = vpop.xlane.xlu0 %1973 }
 0x48b   : > { %8793 = vrcp.f32 %v1974_v53 }
 0x48d   : > { %v8792_v54 = vpop.eup %8791 }
 0x48e   : > { %v1982_v56 = vmul.f32 %v8792_v54, %v8784_v35 }
 0x490   : > { %v1986_v57 = vpack.c.bf16 %v1982_v56, %v1982_v56 }
 0x492   : > { %8012 = vmatmul.mubr.msk.bf16.vlgmr.msra.gmra.mrb[28].mxu0 %vm1757_vm2, %v1986_v57  ;;  %v1971_v60 = vpop.xlane.xlu1 %1970 }
 0x493   : > { %8022 = vmatpush3.bf16.msra.mxu0 %v2091_v58  ;;  %8795 = vrcp.f32 %v1971_v60  ;;  %8023 = vmatprep.mubr.msk.bf16.mxu0 %vm8955_vm1, %v8954_v9  ;;  %v7263_v58 = vld [vmem:[%s9021_s24] ss:$0 sm:$0xff] }
 0x494   : > { %8033 = vmatprep.subr.bf16.mxu0 %v8954_v9 }
 0x495   : > { %v8794_v37 = vpop.eup %8793 }
 0x496   : > { %v1984_v61 = vmul.f32 %v8794_v37, %v8786_v41 }
 0x498   : > { %v1988_v63 = vpack.c.bf16 %v1984_v61, %v1984_v61 }
 0x49a   : > { %8024 = vmatmul.mubr.msk.bf16.vlgmr.msra.gmra.mrb[32].mxu0 %vm1757_vm2, %v1988_v63  ;;  %v1977_v1 = vpop.xlane.xlu1 %1976 }
 0x49b   : > { %8797 = vrcp.f32 %v1977_v1  ;;  %8035 = vmatprep.mubr.msk.bf16.mxu0 %vm8955_vm1, %v8954_v9  ;;  %8034 = vmatpush3.bf16.msra.mxu0 %v2187_v12  ;;  %v8859_v1 = vld [vmem:[%s9174_s28] sm:$0xff]  ;;  %v8699_v12 = vld [vmem:[%s9036_s12 + $0x8] sm:$0xff]   ;;  %s10145_s28 = sld [smem:[#allocation6_spill]] }
 0x49c   : > { %8045 = vmatprep.subr.bf16.mxu0 %v8954_v9 }
 0x49d   : > { %v8796_v2 = vpop.eup %8795 }
 0x49e   : > { %v1983_v5 = vmul.f32 %v8796_v2, %v8788_v46 }
 0x4a0   : > { %v1987_v6 = vpack.c.bf16 %v1983_v5, %v1983_v5 }
 0x4a1   : > { %s942_s5 = scalar_lea.vmem %s10145_s28, %s7199_s23  ;;  %s10148_s23 = sld [smem:[#allocation10_spill]] }
 0x4a2   : > { %8018 = vmatmul.mubr.msk.bf16.vlgmr.msra.gmra.mrb[36].mxu1 %vm1757_vm2, %v1987_v6  ;;  %s10149_s28 = sld [smem:[#allocation14_spill]] }
 0x4a3   : > { %8028 = vmatpush3.bf16.msra.mxu1 %v2137_v7  ;;  %8029 = vmatprep.mubr.msk.bf16.mxu1 %vm8955_vm1, %v8954_v9 }
 0x4a4   : > { %8039 = vmatprep.subr.bf16.mxu1 %v8954_v9 }
 0x4a5   : > { %v8798_v59 = vpop.eup %8797 }
 0x4a6   : > { %v1985_v8 = vmul.f32 %v8798_v59, %v8790_v48 }
 0x4a8   : > { %v1989_v10 = vpack.c.bf16 %v1985_v8, %v1985_v8 }
 0x4aa   : > { %8030 = vmatmul.mubr.msk.bf16.vlgmr.msra.gmra.mrb[40].mxu1 %vm1757_vm2, %v1989_v10  ;;  %v8697_v10 = vld [vmem:[%s9036_s12] sm:$0xff]  }
 0x4ab   : > { %8041 = vmatprep.mubr.msk.bf16.mxu1 %vm8955_vm1, %v8954_v9  ;;  %8040 = vmatpush3.bf16.msra.mxu1 %v2233_v14 }
 0x4ac   : > { %8051 = vmatprep.subr.bf16.mxu1 %v8954_v9 }
 0x565   : > { %v2035_v16 = vpop.f32.mrb[28].mxu0 }
 0x566   : > { %v2179_v17 = vpack.c.bf16 %v2035_v16, %v2035_v16  ;;  %v8013_v18 = vpop.f32.mrb[29].mxu0 }
 0x567   : > { %v2038_v20 = vpop.f32.mrb[30].mxu0  ;;  %v7264_v18 = vld [vmem:[%s9026_s30] ss:$0 sm:$0xff] }
 0x568   : > { %v8014_v21 = vpop.f32.mrb[31].mxu0  ;;  %8036 = vmatmul.mubr.msk.bf16.vlgmr.msra.gmra.mrb[36].mxu0 %vm1757_vm2, %v2179_v17  ;;  %v7265_v20 = vld [vmem:[%s10131_s6] ss:$0 sm:$0xff] }
 0x569   : > { %8046 = vmatpush3.bf16.msra.mxu0 %v2279_v19  ;;  %8047 = vmatprep.mubr.msk.bf16.mxu0 %vm8955_vm1, %v8954_v9 }
 0x56a   : > { %8057 = vmatprep.subr.bf16.mxu0 %v8954_v9 }
 0x56d   : > { %v2127_v22 = vpop.f32.mrb[32].mxu0 }
 0x56e   : > { %v2181_v23 = vpack.c.bf16 %v2127_v22, %v2127_v22  ;;  %v8025_v24 = vpop.f32.mrb[33].mxu0 }
 0x56f   : > { %v2130_v25 = vpop.f32.mrb[34].mxu0  ;;  %v8702_v24 = vld [vmem:[%s9036_s12 + $0x30] sm:$0xff]  }
 0x570   : > { %v8026_v26 = vpop.f32.mrb[35].mxu0  ;;  %8048 = vmatmul.mubr.msk.bf16.vlgmr.msra.gmra.mrb[40].mxu0 %vm1757_vm2, %v2181_v23  ;;  %v8701_v23 = vld [vmem:[%s9036_s12 + $0x20] sm:$0xff]  }
 0x571   : > { %8061 = vmatprep.mubr.msk.bf16.mxu0 %vm8955_vm1, %v8954_v9  ;;  %8058 = vmatpush3.bf16.msra.mxu0 %v8697_v10  ;;  %v8703_v26 = vld [vmem:[%s9036_s12 + $0x28] sm:$0xff]  }
 0x572   : > { %8059 = vmatprep.subr.bf16.mxu0 %v8954_v9 }
 0x575   : > { %v2081_v28 = vpop.f32.mrb[36].mxu1  ;;  %8060 = vmatpush3.bf16.msra.mxu0 %v8699_v12 }
 0x576   : > { %v2180_v29 = vpack.c.bf16 %v2081_v28, %v2081_v28  ;;  %v8019_v30 = vpop.f32.mrb[37].mxu1  ;;  %8073 = vmatprep.subr.bf16.mxu0 %v8954_v9  ;;  %v8705_v28 = vld [vmem:[%s10144_s1] sm:$0xff]  }
 0x577   : > { %v2084_v32 = vpop.f32.mrb[38].mxu1  ;;  %v945_v30 = vld [vmem:[%s942_s5] sm:$0xff]  ;;  %s10146_s5 = sld [smem:[#allocation13_spill]] }
 0x578   : > { %v8020_v33 = vpop.f32.mrb[39].mxu1  ;;  %8042 = vmatmul.mubr.msk.bf16.vlgmr.msra.gmra.mrb[44].mxu1 %vm1757_vm2, %v2180_v29  ;;  %v8706_v29 = vld [vmem:[%s10144_s1 + $0x10] sm:$0xff]   ;;  %v8708_v32 = vld [vmem:[%s10144_s1 + $0x18] sm:$0xff]  }
 0x579   : > { %8052 = vmatpush3.bf16.msra.mxu1 %v2325_v31  ;;  %8053 = vmatprep.mubr.msk.bf16.mxu1 %vm8955_vm1, %v8954_v9  ;;  %v8707_v31 = vld [vmem:[%s10144_s1 + $0x8] sm:$0xff]   ;;  %v9432_v33 = vpack.c.bf16 %v945_v30, %v945_v30 }
 0x57a   : > { %8065 = vmatprep.subr.bf16.mxu1 %v8954_v9 }
 0x57d   : > { %v2173_v34 = vpop.f32.mrb[40].mxu1 }
 0x57e   : > { %v2182_v35 = vpack.c.bf16 %v2173_v34, %v2173_v34  ;;  %v8031_v36 = vpop.f32.mrb[41].mxu1  ;;  %v8709_v34 = vld [vmem:[%s10144_s1 + $0x20] sm:$0xff]  }
 0x57f   : > { %v2176_v38 = vpop.f32.mrb[42].mxu1  ;;  %v8711_v36 = vld [vmem:[%s10144_s1 + $0x28] sm:$0xff]  }
 0x580   : > { %v8032_v39 = vpop.f32.mrb[43].mxu1  ;;  %8054 = vmatmul.mubr.msk.bf16.vlgmr.msra.gmra.mrb[48].mxu1 %vm1757_vm2, %v2182_v35  ;;  %v8710_v35 = vld [vmem:[%s10144_s1 + $0x30] sm:$0xff]   ;;  %v8712_v38 = vld [vmem:[%s10144_s1 + $0x38] sm:$0xff]  }
 0x581   : > { %8069 = vmatprep.mubr.msk.bf16.mxu1 %vm8955_vm1, %v8954_v9  ;;  %8066 = vmatpush3.bf16.msra.mxu1 %v8698_v11  ;;  %v8713_v39 = vld [vmem:[%s10146_s5] sm:$0xff]  }
 0x582   : > { %8067 = vmatprep.subr.bf16.mxu1 %v8954_v9 }
 0x585   : > { %8068 = vmatpush3.bf16.msra.mxu1 %v8700_v13 }
 0x586   : > { %8081 = vmatprep.subr.bf16.mxu1 %v8954_v9 }
 0x63b   : > { %v2223_v40 = vpop.f32.mrb[36].mxu0 }
 0x63c   : > { %v8037_v41 = vpop.f32.mrb[37].mxu0  ;;  %v2367_v49 = vsel %vm1020_vm0, %v2223_v40, 0.0  ;;  %v8714_v40 = vld [vmem:[%s10146_s5 + $0x10] sm:$0xff]  }
 0x63d   : > { %v2226_v42 = vpop.f32.mrb[38].mxu0  ;;  %v8715_v41 = vld [vmem:[%s10146_s5 + $0x8] sm:$0xff]  }
 0x63e   : > { %v8038_v43 = vpop.f32.mrb[39].mxu0  ;;  %v8716_v42 = vld [vmem:[%s10146_s5 + $0x18] sm:$0xff]  }
 0x63f   : > { %v8717_v43 = vld [vmem:[%s10146_s5 + $0x20] sm:$0xff]  }
 0x643   : > { %v2315_v44 = vpop.f32.mrb[40].mxu0 }
 0x644   : > { %v8049_v45 = vpop.f32.mrb[41].mxu0  ;;  %v2370_v54 = vsel %vm1020_vm0, %v2315_v44, 0.0  ;;  %v8718_v44 = vld [vmem:[%s10146_s5 + $0x30] sm:$0xff]  }
 0x645   : > { %v2318_v46 = vpop.f32.mrb[42].mxu0  ;;  %v8719_v45 = vld [vmem:[%s10146_s5 + $0x28] sm:$0xff]  }
 0x646   : > { %v8050_v47 = vpop.f32.mrb[43].mxu0  ;;  %v8720_v46 = vld [vmem:[%s10146_s5 + $0x38] sm:$0xff]  }
 0x64b   : > { %v2269_v48 = vpop.f32.mrb[44].mxu1 }
 0x64c   : > { %v2368_v50 = vsel %vm1020_vm0, %v2269_v48, 0.0  ;;  %v8043_v51 = vpop.f32.mrb[45].mxu1 }
 0x64d   : > { %v2369_v52 = vadd.f32 %v2368_v50, %v2367_v49  ;;  %v2272_v53 = vpop.f32.mrb[46].mxu1 }
 0x64e   : > { %v8044_v55 = vpop.f32.mrb[47].mxu1 }
 0x64f   : > { %v2371_v56 = vadd.f32 %v2370_v54, %v2369_v52 }
 0x653   : > { %v2361_v57 = vpop.f32.mrb[48].mxu1 }
 0x654   : > { %v2372_v60 = vsel %vm1020_vm0, %v2361_v57, 0.0  ;;  %v8055_v37 = vpop.f32.mrb[49].mxu1 }
 0x655   : > { %v2373_v61 = vadd.f32 %v2372_v60, %v2371_v56  ;;  %v2364_v62 = vpop.f32.mrb[50].mxu1 }
 0x656   : > { %v8056_v63 = vpop.f32.mrb[51].mxu1 }
 0x657   : > { %v2380_v0 = vadd.f32 %v7263_v58, %v2373_v61  ;;  %v7282_v63 = vld [vmem:[%s10147_s11] ss:$0 sm:$0xff] }
 0x659   : > { %v9387_v2 = vadd.f32 %v8859_v1, %v2380_v0  ;;  %v7283_v0 = vld [vmem:[%s10147_s11 + $0x1] ss:$0 sm:$0xff] }
 0x65b   : > { %v2449_v4 = vsel %vm1020_vm0, %v9387_v2, 0.0 }
 0x65c   : > { %2450 = vadd.xlane.f32.xlu0 %v2449_v4 }
 0x6e9   : > { %v2451_v5 = vpop.xlane.xlu0 %2450 }
 0x6ea   : > { %v2452_v6 = vmul.f32 0.03125, %v2451_v5 }
 0x6ec   : > { %v2453_v7 = vsub.f32 %v9387_v2, %v2452_v6 }
 0x6ee   : > { %v2454_v59 = vmul.f32 %v2453_v7, %v2453_v7 }
 0x6f0   : > { %v2455_v8 = vsel %vm1020_vm0, %v2454_v59, 0.0 }
 0x6f1   : > { %2456 = vadd.xlane.f32.xlu1 %v2455_v8 }
 0x77e   : > { %v2457_v14 = vpop.xlane.xlu1 %2456 }
 0x77f   : > { %v2458_v15 = vmul.f32 0.03125, %v2457_v14 }
 0x781   : > { %v2459_v16 = vadd.f32 1e-06, %v2458_v15  ;;  %v7266_v15 = vld [vmem:[%s10148_s23] ss:$0 sm:$0xff] }
 0x783   : > { %8799 = vrsqrt.f32 %v2459_v16  ;;  %v7267_v16 = vld [vmem:[%s10148_s23 + $0x1] ss:$0 sm:$0xff] }
 0x78d   : > { %v8800_v17 = vpop.eup %8799 }
 0x78e   : > { %v2461_v19 = vmul.f32 %v8800_v17, %v2453_v7 }
 0x790   : > { %v2468_v21 = vmul.f32 %v7264_v18, %v2461_v19  ;;  %v7284_v19 = vld [vmem:[%s10147_s11 + $0x2] ss:$0 sm:$0xff] }
 0x792   : > { %v2475_v22 = vadd.f32 %v7265_v20, %v2468_v21  ;;  %v7285_v20 = vld [vmem:[%s10147_s11 + $0x3] ss:$0 sm:$0xff] }
 0x794   : > { %v2476_v25 = vpack.c.bf16 %v2475_v22, %v2475_v22 }
 0x796   : > { %8062 = vmatmul.mubr.msk.bf16.vlgmr.msra.gmra.mrb[44].mxu0 %vm1020_vm0, %v2476_v25  ;;  %8070 = vmatmul.mubr.msk.bf16.vlgmr.msra.gmra.mrb[52].mxu1 %vm1020_vm0, %v2476_v25 }
 0x797   : > { %8074 = vmatpush3.bf16.msra.mxu0 %v8701_v23  ;;  %8082 = vmatpush3.bf16.msra.mxu1 %v8702_v24 }
 0x798   : > { %8075 = vmatprep.subr.bf16.mxu0 %v8954_v9  ;;  %8083 = vmatprep.subr.bf16.mxu1 %v8954_v9 }
 0x799   : > { %8077 = vmatprep.mubr.msk.bf16.mxu0 %vm8955_vm1, %v8954_v9  ;;  %8085 = vmatprep.mubr.msk.bf16.mxu1 %vm8955_vm1, %v8954_v9 }
 0x79b   : > { %8076 = vmatpush3.bf16.msra.mxu0 %v8703_v26  ;;  %8084 = vmatpush3.bf16.msra.mxu1 %v8704_v27 }
 0x79c   : > { %8089 = vmatprep.subr.bf16.mxu0 %v8954_v9  ;;  %8097 = vmatprep.subr.bf16.mxu1 %v8954_v9 }
 0x79e   : > { %8078 = vmatmul.mubr.msk.bf16.vlgmr.msra.gmra.mrb[48].mxu0 %vm1020_vm0, %v2476_v25  ;;  %8086 = vmatmul.mubr.msk.bf16.vlgmr.msra.gmra.mrb[56].mxu1 %vm1020_vm0, %v2476_v25 }
 0x79f   : > { %8090 = vmatpush3.bf16.msra.mxu0 %v8705_v28  ;;  %8098 = vmatpush3.bf16.msra.mxu1 %v8706_v29 }
 0x7a0   : > { %8091 = vmatprep.subr.bf16.mxu0 %v8954_v9  ;;  %8099 = vmatprep.subr.bf16.mxu1 %v8954_v9 }
 0x7a1   : > { %8093 = vmatprep.mubr.msk.bf16.mxu0 %vm8955_vm1, %v8954_v9  ;;  %8101 = vmatprep.mubr.msk.bf16.mxu1 %vm8955_vm1, %v8954_v9 }
 0x7a3   : > { %8092 = vmatpush3.bf16.msra.mxu0 %v8707_v31  ;;  %8100 = vmatpush3.bf16.msra.mxu1 %v8708_v32 }
 0x7a4   : > { %8105 = vmatprep.subr.bf16.mxu0 %v8954_v9  ;;  %8113 = vmatprep.subr.bf16.mxu1 %v8954_v9 }
 0x7a6   : > { %8094 = vmatmul.mubr.msk.bf16.vlgmr.msra.gmra.mrb[52].mxu0 %vm1020_vm0, %v9432_v33  ;;  %8102 = vmatmul.mubr.msk.bf16.vlgmr.msra.gmra.mrb[60].mxu1 %vm1020_vm0, %v9432_v33 }
 0x7a7   : > { %8106 = vmatpush3.bf16.msra.mxu0 %v8709_v34  ;;  %8114 = vmatpush3.bf16.msra.mxu1 %v8710_v35 }
 0x7a8   : > { %8107 = vmatprep.subr.bf16.mxu0 %v8954_v9  ;;  %8115 = vmatprep.subr.bf16.mxu1 %v8954_v9 }
 0x7a9   : > { %8109 = vmatprep.mubr.msk.bf16.mxu0 %vm8955_vm1, %v8954_v9  ;;  %8117 = vmatprep.mubr.msk.bf16.mxu1 %vm8955_vm1, %v8954_v9 }
 0x7ab   : > { %8108 = vmatpush3.bf16.msra.mxu0 %v8711_v36  ;;  %8116 = vmatpush3.bf16.msra.mxu1 %v8712_v38 }
 0x7ac   : > { %8121 = vmatprep.subr.bf16.mxu0 %v8954_v9  ;;  %8129 = vmatprep.subr.bf16.mxu1 %v8954_v9 }
 0x7ae   : > { %8110 = vmatmul.mubr.msk.bf16.vlgmr.msra.gmra.mrb[56].mxu0 %vm1020_vm0, %v9432_v33  ;;  %8118 = vmatmul.mubr.msk.bf16.vlgmr.msra.gmra.mrb[64].mxu1 %vm1020_vm0, %v9432_v33 }
 0x7af   : > { %8122 = vmatpush3.bf16.msra.mxu0 %v8713_v39  ;;  %8125 = vmatprep.mubr.msk.bf16.mxu0 %vm8955_vm1, %v8954_v9  ;;  %v7268_v39 = vld [vmem:[%s10148_s23 + $0x2] ss:$0 sm:$0xff] }
 0x7b0   : > { %8123 = vmatprep.subr.bf16.mxu0 %v8954_v9  ;;  %8133 = vmatprep.mubr.msk.bf16.mxu1 %vm8955_vm1, %v8954_v9 }
 0x7b1   : > { %8130 = vmatpush3.bf16.msra.mxu1 %v8714_v40  ;;  %v7269_v40 = vld [vmem:[%s10148_s23 + $0x3] ss:$0 sm:$0xff] }
 0x7b2   : > { %8131 = vmatprep.subr.bf16.mxu1 %v8954_v9 }
 0x7b3   : > { %8124 = vmatpush3.bf16.msra.mxu0 %v8715_v41 }
 0x7b4   : > { %8137 = vmatprep.subr.bf16.mxu0 %v8954_v9 }
 0x7b5   : > { %8132 = vmatpush3.bf16.msra.mxu1 %v8716_v42 }
 0x7b6   : > { %8126 = vmatmul.mubr.msk.bf16.vlgmr.msra.gmra.mrb[60].mxu0 %vm1020_vm0, %v9432_v33  ;;  %8145 = vmatprep.subr.bf16.mxu1 %v8954_v9 }
 0x7b7   : > { %8141 = vmatprep.mubr.msk.bf16.mxu0 %vm8955_vm1, %v8954_v9  ;;  %8138 = vmatpush3.bf16.msra.mxu0 %v8717_v43 }
 0x7b8   : > { %8134 = vmatmul.mubr.msk.bf16.vlgmr.msra.gmra.mrb[68].mxu1 %vm1020_vm0, %v9432_v33  ;;  %8139 = vmatprep.subr.bf16.mxu0 %v8954_v9 }
 0x7b9   : > { %8146 = vmatpush3.bf16.msra.mxu1 %v8718_v44  ;;  %8149 = vmatprep.mubr.msk.bf16.mxu1 %vm8955_vm1, %v8954_v9 }
 0x7ba   : > { %8147 = vmatprep.subr.bf16.mxu1 %v8954_v9 }
 0x7bb   : > { %8140 = vmatpush3.bf16.msra.mxu0 %v8719_v45 }
 0x7bc   : > { %8153 = vmatprep.subr.bf16.mxu0 %v8954_v9 }
 0x7bd   : > { %8148 = vmatpush3.bf16.msra.mxu1 %v8720_v46 }
 0x7be   : > { %8159 = vmatprep.subr.bf16.mxu1 %v8954_v9  ;;  %8142 = vmatmul.mubr.msk.bf16.vlgmr.msra.gmra.mrb[64].mxu0 %vm1020_vm0, %v9432_v33 }
 0x7bf   : > { %8155 = vmatprep.mubr.msk.bf16.mxu0 %vm8955_vm1, %v8954_v9 }
 0x7c0   : > { %8150 = vmatmul.mubr.msk.bf16.vlgmr.msra.gmra.mrb[72].mxu1 %vm1020_vm0, %v9432_v33 }
 0x7c1   : > { %8161 = vmatprep.mubr.msk.bf16.mxu1 %vm8955_vm1, %v8954_v9 }
 0x869   : > { %v2550_v47 = vpop.f32.mrb[44].mxu0  ;;  %v2602_v48 = vpop.f32.mrb[52].mxu1 }
 0x86a   : > { %v8063_v49 = vpop.f32.mrb[45].mxu0  ;;  %v8071_v50 = vpop.f32.mrb[53].mxu1  ;;  %v2551_v21 = vadd.f32 %v7266_v15, %v2550_v47  ;;  %v2603_v22 = vadd.f32 %v7267_v16, %v2602_v48  ;;  %v7298_v47 = vld [vmem:[%s10149_s28] ss:$0 sm:$0xff] }
 0x86b   : > { %v2553_v51 = vpop.f32.mrb[46].mxu0  ;;  %v2605_v52 = vpop.f32.mrb[54].mxu1  ;;  %v7299_v49 = vld [vmem:[%s10149_s28 + $0x1] ss:$0 sm:$0xff] }
 0x86c   : > { %v8064_v53 = vpop.f32.mrb[47].mxu0  ;;  %v8072_v54 = vpop.f32.mrb[55].mxu1  ;;  %v3179_v31 = vpack.c.bf16 %v2551_v21, %v2551_v21  ;;  %v3180_v32 = vpack.c.bf16 %v2603_v22, %v2603_v22 }
 0x871   : > { %v2654_v55 = vpop.f32.mrb[48].mxu0  ;;  %v2706_v56 = vpop.f32.mrb[56].mxu1 }
 0x872   : > { %v8079_v57 = vpop.f32.mrb[49].mxu0  ;;  %v8087_v58 = vpop.f32.mrb[57].mxu1  ;;  %v2655_v43 = vadd.f32 %v7268_v39, %v2654_v55  ;;  %v2707_v44 = vadd.f32 %v7269_v40, %v2706_v56 }
 0x873   : > { %v2657_v60 = vpop.f32.mrb[50].mxu0  ;;  %v2709_v37 = vpop.f32.mrb[58].mxu1 }
 0x874   : > { %v8080_v61 = vpop.f32.mrb[51].mxu0  ;;  %v8088_v62 = vpop.f32.mrb[59].mxu1  ;;  %v3181_v45 = vpack.c.bf16 %v2655_v43, %v2655_v43  ;;  %v3182_v46 = vpack.c.bf16 %v2707_v44, %v2707_v44 }
 0x879   : > { %v2785_v1 = vpop.f32.mrb[52].mxu0  ;;  %v2837_v4 = vpop.f32.mrb[60].mxu1 }
 0x87a   : > { %v2786_v5 = vadd.f32 %v7282_v63, %v2785_v1  ;;  %v2838_v6 = vadd.f32 %v7283_v0, %v2837_v4  ;;  %v8095_v7 = vpop.f32.mrb[53].mxu0  ;;  %v8103_v59 = vpop.f32.mrb[61].mxu1 }
 0x87b   : > { %v2788_v8 = vpop.f32.mrb[54].mxu0  ;;  %v2840_v10 = vpop.f32.mrb[62].mxu1 }
 0x87c   : > { %v3183_v11 = vpack.c.bf16 %v2786_v5, %v2786_v5  ;;  %v3184_v12 = vpack.c.bf16 %v2838_v6, %v2838_v6  ;;  %v8096_v13 = vpop.f32.mrb[55].mxu0  ;;  %v8104_v14 = vpop.f32.mrb[63].mxu1 }
 0x87e   : > { %v3191_v17 = vsel %vm1757_vm2, %v3183_v11, 0  ;;  %v3237_v18 = vsel %vm1757_vm2, %v3184_v12, 0 }
 0x87f   : > { %8154 = vmatpush3.bf16.xpose.msra.mxu0 %v3191_v17  ;;  %8160 = vmatpush3.bf16.xpose.msra.mxu1 %v3237_v18 }
 0x880   : > { %8165 = vmatprep.subr.bf16.mxu0 %v8954_v9  ;;  %8171 = vmatprep.subr.bf16.mxu1 %v8954_v9 }
 0x881   : > { %v2889_v23 = vpop.f32.mrb[56].mxu0  ;;  %v2941_v24 = vpop.f32.mrb[64].mxu1 }
 0x882   : > { %v2890_v25 = vadd.f32 %v7284_v19, %v2889_v23  ;;  %v2942_v26 = vadd.f32 %v7285_v20, %v2941_v24  ;;  %v8111_v27 = vpop.f32.mrb[57].mxu0  ;;  %v8119_v28 = vpop.f32.mrb[65].mxu1 }
 0x883   : > { %v2892_v29 = vpop.f32.mrb[58].mxu0  ;;  %v2944_v30 = vpop.f32.mrb[66].mxu1 }
 0x884   : > { %v3185_v34 = vpack.c.bf16 %v2890_v25, %v2890_v25  ;;  %v3186_v35 = vpack.c.bf16 %v2942_v26, %v2942_v26  ;;  %v8112_v36 = vpop.f32.mrb[59].mxu0  ;;  %v8120_v38 = vpop.f32.mrb[67].mxu1 }
 0x886   : > { %v3283_v41 = vsel %vm1757_vm2, %v3185_v34, 0  ;;  %v3329_v42 = vsel %vm1757_vm2, %v3186_v35, 0  ;;  %8156 = vmatmul.mubr.msk.bf16.vlgmr.msra.gmra.mrb[68].mxu0 %vm1757_vm2, %v3179_v31  ;;  %8162 = vmatmul.mubr.msk.bf16.vlgmr.msra.gmra.mrb[76].mxu1 %vm1757_vm2, %v3180_v32 }
 0x887   : > { %8166 = vmatpush3.bf16.xpose.msra.mxu0 %v3283_v41  ;;  %8172 = vmatpush3.bf16.xpose.msra.mxu1 %v3329_v42 }
 0x888   : > { %8167 = vmatprep.mubr.msk.bf16.mxu0 %vm8955_vm1, %v8954_v9  ;;  %8173 = vmatprep.mubr.msk.bf16.mxu1 %vm8955_vm1, %v8954_v9 }
 0x889   : > { %8177 = vmatprep.subr.bf16.mxu0 %v8954_v9  ;;  %8183 = vmatprep.subr.bf16.mxu1 %v8954_v9  ;;  %v3017_v48 = vpop.f32.mrb[60].mxu0 }
 0x88a   : > { %v3018_v50 = vadd.f32 %v7298_v47, %v3017_v48  ;;  %v8127_v51 = vpop.f32.mrb[61].mxu0 }
 0x88b   : > { %v3020_v52 = vpop.f32.mrb[62].mxu0  ;;  %v3069_v53 = vpop.f32.mrb[68].mxu1 }
 0x88c   : > { %v3419_v54 = vpack.c.bf16 %v3018_v50, %v3018_v50  ;;  %v3070_v55 = vadd.f32 %v7299_v49, %v3069_v53  ;;  %v8128_v56 = vpop.f32.mrb[63].mxu0  ;;  %v8135_v57 = vpop.f32.mrb[69].mxu1  ;;  %v7300_v53 = vld [vmem:[%s10149_s28 + $0x2] ss:$0 sm:$0xff] }
 0x88d   : > { %v3072_v58 = vpop.f32.mrb[70].mxu1 }
 0x88e   : > { %8168 = vmatmul.mubr.msk.bf16.vlgmr.msra.gmra.mrb[72].mxu0 %vm1757_vm2, %v3181_v45  ;;  %8174 = vmatmul.mubr.msk.bf16.vlgmr.msra.gmra.mrb[80].mxu1 %vm1757_vm2, %v3182_v46  ;;  %v3427_v60 = vsel %vm1997_vm3, %v3419_v54, 0  ;;  %v3420_v37 = vpack.c.bf16 %v3070_v55, %v3070_v55  ;;  %v8136_v61 = vpop.f32.mrb[71].mxu1  ;;  %v7301_v54 = vld [vmem:[%s10149_s28 + $0x3] ss:$0 sm:$0xff] }
 0x88f   : > { %8179 = vmatprep.mubr.msk.bf16.mxu0 %vm8955_vm1, %v8954_v9  ;;  %8185 = vmatprep.mubr.msk.bf16.mxu1 %vm8955_vm1, %v8954_v9 }
 0x890   : > { %8178 = vmatpush3.bf16.msra.mxu0 %v3427_v60  ;;  %v3473_v62 = vsel %vm1997_vm3, %v3420_v37, 0 }
 0x891   : > { %8189 = vmatprep.subr.bf16.mxu0 %v8954_v9  ;;  %8184 = vmatpush3.bf16.msra.mxu1 %v3473_v62  ;;  %v9526_v63 = vpop.f32.mrb[64].mxu0 }
 0x892   : > { %8195 = vmatprep.subr.bf16.mxu1 %v8954_v9  ;;  %v8143_v1 = vpop.f32.mrb[65].mxu0  ;;  %v3122_v55 = vadd.f32 %v7300_v53, %v9526_v63 }
 0x893   : > { %v9528_v0 = vpop.f32.mrb[72].mxu1  ;;  %v3124_v5 = vpop.f32.mrb[66].mxu0 }
 0x894   : > { %v8151_v4 = vpop.f32.mrb[73].mxu1  ;;  %v8144_v7 = vpop.f32.mrb[67].mxu0  ;;  %v3174_v57 = vadd.f32 %v7301_v54, %v9528_v0  ;;  %v3421_v61 = vpack.c.bf16 %v3122_v55, %v3122_v55 }
 0x895   : > { %v3176_v6 = vpop.f32.mrb[74].mxu1 }
 0x896   : > { %v8152_v59 = vpop.f32.mrb[75].mxu1  ;;  %v3422_v1 = vpack.c.bf16 %v3174_v57, %v3174_v57  ;;  %v3519_v7 = vsel %vm1997_vm3, %v3421_v61, 0  ;;  %v7326_v61 = vld [vmem:[%s10151_s18] ss:$0 sm:$0xff]  ;;  %s10156_s18 = sld [smem:[#allocation17_spill]] }
 0x897   : > { %v2444_v59 = vld [vmem:[%s10150_s2] sm:$0xf] }
 0x898   : > { %v3565_v63 = vsel %vm1997_vm3, %v3422_v1, 0 }
 0x89c   : > { %s10157_s9 = smov %s10156_s18 }
 0x959   : > { %v3227_v8 = vpop.f32.mrb[68].mxu0  ;;  %v3273_v10 = vpop.f32.mrb[76].mxu1 }
 0x95a   : > { %v8157_v11 = vpop.f32.mrb[69].mxu0  ;;  %v8163_v12 = vpop.f32.mrb[77].mxu1  ;;  %v3371_v13 = vsel %vm1757_vm2, %v3227_v8, -inf  ;;  %v3374_v14 = vsel %vm1757_vm2, %v3273_v10, -inf }
 0x95b   : > { %3372 = vmax.xlane.f32.xlu0 %v3371_v13  ;;  %v3230_v15 = vpop.f32.mrb[70].mxu0  ;;  %3375 = vmax.xlane.f32.xlu1 %v3374_v14  ;;  %v3276_v16 = vpop.f32.mrb[78].mxu1  ;;  %v2445_v11 = vld [vmem:[%s10150_s2 + $0x4] sm:$0xf]  ;;  %v3615_v14 = vsel %vm1997_vm3, %v2444_v59, 0 }
 0x95c   : > { %v8158_v17 = vpop.f32.mrb[71].mxu0  ;;  %v8164_v18 = vpop.f32.mrb[79].mxu1  ;;  %v3661_v16 = vsel %vm1997_vm3, %v2445_v11, 0 }
 0x95d   : > { %v2446_v17 = vld [vmem:[%s10150_s2 + $0x8] sm:$0xf]  ;;  %v2447_v18 = vld [vmem:[%s10150_s2 + $0xc] sm:$0xf] }
 0x961   : > { %v3319_v19 = vpop.f32.mrb[72].mxu0  ;;  %v3365_v20 = vpop.f32.mrb[80].mxu1 }
 0x962   : > { %v8169_v21 = vpop.f32.mrb[73].mxu0  ;;  %v8175_v22 = vpop.f32.mrb[81].mxu1  ;;  %v3377_v23 = vsel %vm1757_vm2, %v3319_v19, -inf  ;;  %v3380_v24 = vsel %vm1757_vm2, %v3365_v20, -inf }
 0x963   : > { %3378 = vmax.xlane.f32.xlu0 %v3377_v23  ;;  %v3322_v25 = vpop.f32.mrb[74].mxu0  ;;  %3381 = vmax.xlane.f32.xlu1 %v3380_v24  ;;  %v3368_v26 = vpop.f32.mrb[82].mxu1  ;;  %v3707_v23 = vsel %vm1997_vm3, %v2446_v17, 0 }
 0x964   : > { %v8170_v27 = vpop.f32.mrb[75].mxu0  ;;  %v8176_v28 = vpop.f32.mrb[83].mxu1 }
 0x965   : > { %v3753_v27 = vsel %vm1997_vm3, %v2447_v18, 0 }
 0x9e8   : > { %v3373_v29 = vpop.xlane.xlu0 %3372  ;;  %v3376_v30 = vpop.xlane.xlu1 %3375 }
 0x9e9   : > { %v3383_v31 = vsub.f32 %v3227_v8, %v3373_v29  ;;  %v3384_v32 = vsub.f32 %v3273_v10, %v3376_v30 }
 0x9eb   : > { %v3387_v34 = vmul.f32 1.442695, %v3383_v31  ;;  %v3389_v35 = vmul.f32 1.442695, %v3384_v32 }
 0x9ed   : > { %8801 = vpow2.f32 %v3387_v34 }
 0x9ee   : > { %8803 = vpow2.f32 %v3389_v35 }
 0x9f0   : > { %v3379_v36 = vpop.xlane.xlu0 %3378  ;;  %v3382_v38 = vpop.xlane.xlu1 %3381 }
 0x9f1   : > { %v3385_v39 = vsub.f32 %v3319_v19, %v3379_v36  ;;  %v3386_v40 = vsub.f32 %v3365_v20, %v3382_v38 }
 0x9f3   : > { %v3391_v41 = vmul.f32 1.442695, %v3385_v39  ;;  %v3393_v42 = vmul.f32 1.442695, %v3386_v40 }
 0x9f5   : > { %8805 = vpow2.f32 %v3391_v41 }
 0x9f6   : > { %8807 = vpow2.f32 %v3393_v42 }
 0x9f7   : > { %v8802_v43 = vpop.eup %8801 }
 0x9f8   : > { %v8804_v44 = vpop.eup %8803  ;;  %v3395_v45 = vsel %vm1757_vm2, %v8802_v43, 0.0 }
 0x9f9   : > { %3396 = vadd.xlane.f32.xlu0 %v3395_v45  ;;  %v3398_v46 = vsel %vm1757_vm2, %v8804_v44, 0.0 }
 0x9fa   : > { %3399 = vadd.xlane.f32.xlu1 %v3398_v46 }
 0x9ff   : > { %v8806_v47 = vpop.eup %8805 }
 0xa00   : > { %v8808_v48 = vpop.eup %8807  ;;  %v3401_v49 = vsel %vm1757_vm2, %v8806_v47, 0.0 }
 0xa01   : > { %3402 = vadd.xlane.f32.xlu0 %v3401_v49  ;;  %v3404_v50 = vsel %vm1757_vm2, %v8808_v48, 0.0 }
 0xa02   : > { %3405 = vadd.xlane.f32.xlu1 %v3404_v50 }
 0xa86   : > { %v3397_v51 = vpop.xlane.xlu0 %3396 }
 0xa87   : > { %8809 = vrcp.f32 %v3397_v51  ;;  %v3400_v52 = vpop.xlane.xlu1 %3399 }
 0xa88   : > { %8811 = vrcp.f32 %v3400_v52 }
 0xa8e   : > { %v3403_v56 = vpop.xlane.xlu0 %3402 }
 0xa8f   : > { %8813 = vrcp.f32 %v3403_v56  ;;  %v3406_v58 = vpop.xlane.xlu1 %3405 }
 0xa90   : > { %8815 = vrcp.f32 %v3406_v58 }
 0xa91   : > { %v8810_v60 = vpop.eup %8809 }
 0xa92   : > { %v8812_v37 = vpop.eup %8811  ;;  %v3411_v62 = vmul.f32 %v8810_v60, %v8802_v43 }
 0xa93   : > { %v3412_v4 = vmul.f32 %v8812_v37, %v8804_v44 }
 0xa94   : > { %v3415_v5 = vpack.c.bf16 %v3411_v62, %v3411_v62 }
 0xa95   : > { %v3416_v6 = vpack.c.bf16 %v3412_v4, %v3412_v4 }
 0xa96   : > { %8180 = vmatmul.mubr.msk.bf16.vlgmr.msra.gmra.mrb[76].mxu0 %vm1757_vm2, %v3415_v5 }
 0xa97   : > { %8186 = vmatmul.mubr.msk.bf16.vlgmr.msra.gmra.mrb[84].mxu1 %vm1757_vm2, %v3416_v6  ;;  %8190 = vmatpush3.bf16.msra.mxu0 %v3519_v7 }
 0xa98   : > { %8196 = vmatpush3.bf16.msra.mxu1 %v3565_v63  ;;  %8191 = vmatprep.mubr.msk.bf16.mxu0 %vm8955_vm1, %v8954_v9 }
 0xa99   : > { %v8814_v0 = vpop.eup %8813  ;;  %8197 = vmatprep.mubr.msk.bf16.mxu1 %vm8955_vm1, %v8954_v9  ;;  %8201 = vmatprep.subr.bf16.mxu0 %v8954_v9 }
 0xa9a   : > { %v8816_v8 = vpop.eup %8815  ;;  %v3413_v10 = vmul.f32 %v8814_v0, %v8806_v47  ;;  %8207 = vmatprep.subr.bf16.mxu1 %v8954_v9 }
 0xa9b   : > { %v3414_v12 = vmul.f32 %v8816_v8, %v8808_v48 }
 0xa9c   : > { %v3417_v13 = vpack.c.bf16 %v3413_v10, %v3413_v10 }
 0xa9d   : > { %v3418_v15 = vpack.c.bf16 %v3414_v12, %v3414_v12 }
 0xa9e   : > { %8192 = vmatmul.mubr.msk.bf16.vlgmr.msra.gmra.mrb[80].mxu0 %vm1757_vm2, %v3417_v13  ;;  %v8721_v13 = vld [vmem:[%s10153_s10] sm:$0xff]  }
 0xa9f   : > { %8198 = vmatmul.mubr.msk.bf16.vlgmr.msra.gmra.mrb[88].mxu1 %vm1757_vm2, %v3418_v15  ;;  %8202 = vmatpush3.bf16.msra.mxu0 %v3615_v14  ;;  %v8722_v14 = vld [vmem:[%s10153_s10 + $0x8] sm:$0xff]  }
 0xaa0   : > { %8208 = vmatpush3.bf16.msra.mxu1 %v3661_v16  ;;  %8203 = vmatprep.mubr.msk.bf16.mxu0 %vm8955_vm1, %v8954_v9  ;;  %v8724_v15 = vld [vmem:[%s10155_s7 + $0x8] sm:$0xff]  }
 0xaa1   : > { %8209 = vmatprep.mubr.msk.bf16.mxu1 %vm8955_vm1, %v8954_v9  ;;  %8213 = vmatprep.subr.bf16.mxu0 %v8954_v9 }
 0xaa2   : > { %8219 = vmatprep.subr.bf16.mxu1 %v8954_v9 }
 0xb69   : > { %v3463_v19 = vpop.f32.mrb[76].mxu0 }
 0xb6a   : > { %v3607_v20 = vpack.c.bf16 %v3463_v19, %v3463_v19  ;;  %v3509_v21 = vpop.f32.mrb[84].mxu1  ;;  %v8181_v22 = vpop.f32.mrb[77].mxu0 }
 0xb6b   : > { %v3608_v24 = vpack.c.bf16 %v3509_v21, %v3509_v21  ;;  %v8187_v25 = vpop.f32.mrb[85].mxu1  ;;  %v3466_v26 = vpop.f32.mrb[78].mxu0  ;;  %v7328_v22 = vld [vmem:[%s10158_s22] ss:$0 sm:$0xff]  ;;  %s10162_s22 = sld [smem:[#allocation27_spill]] }
 0xb6c   : > { %v3512_v28 = vpop.f32.mrb[86].mxu1  ;;  %v8182_v29 = vpop.f32.mrb[79].mxu0  ;;  %8204 = vmatmul.mubr.msk.bf16.vlgmr.msra.gmra.mrb[84].mxu0 %vm1757_vm2, %v3607_v20  ;;  %v7327_v20 = vld [vmem:[%s10156_s18] ss:$0 sm:$0xff]  ;;  %v8725_v26 = vld [vmem:[%s10155_s7 + $0x10] sm:$0xff]   ;;  %s10163_s18 = sld [smem:[#allocation23_spill]] }
 0xb6d   : > { %v8188_v30 = vpop.f32.mrb[87].mxu1  ;;  %8210 = vmatmul.mubr.msk.bf16.vlgmr.msra.gmra.mrb[92].mxu1 %vm1757_vm2, %v3608_v24  ;;  %8214 = vmatpush3.bf16.msra.mxu0 %v3707_v23  ;;  %v7329_v28 = vld [vmem:[%s10160_s4] ss:$0 sm:$0xff] }
 0xb6e   : > { %8220 = vmatpush3.bf16.msra.mxu1 %v3753_v27  ;;  %8215 = vmatprep.mubr.msk.bf16.mxu0 %vm8955_vm1, %v8954_v9  ;;  %v8726_v27 = vld [vmem:[%s10155_s7 + $0x18] sm:$0xff]  }
 0xb6f   : > { %8221 = vmatprep.mubr.msk.bf16.mxu1 %vm8955_vm1, %v8954_v9  ;;  %8225 = vmatprep.subr.bf16.mxu0 %v8954_v9 }
 0xb70   : > { %8233 = vmatprep.subr.bf16.mxu1 %v8954_v9 }
 0xb71   : > { %v3555_v31 = vpop.f32.mrb[80].mxu0 }
 0xb72   : > { %v3609_v32 = vpack.c.bf16 %v3555_v31, %v3555_v31  ;;  %v3601_v34 = vpop.f32.mrb[88].mxu1  ;;  %v8193_v35 = vpop.f32.mrb[81].mxu0 }
 0xb73   : > { %v3610_v36 = vpack.c.bf16 %v3601_v34, %v3601_v34  ;;  %v8199_v38 = vpop.f32.mrb[89].mxu1  ;;  %v3558_v39 = vpop.f32.mrb[82].mxu0 }
 0xb74   : > { %v3604_v40 = vpop.f32.mrb[90].mxu1  ;;  %v8194_v41 = vpop.f32.mrb[83].mxu0  ;;  %8216 = vmatmul.mubr.msk.bf16.vlgmr.msra.gmra.mrb[88].mxu0 %vm1757_vm2, %v3609_v32  ;;  %v7333_v38 = vld [vmem:[%s9101_s20] ss:$0 sm:$0xff] }
 0xb75   : > { %v8200_v42 = vpop.f32.mrb[91].mxu1  ;;  %8222 = vmatmul.mubr.msk.bf16.vlgmr.msra.gmra.mrb[96].mxu1 %vm1757_vm2, %v3610_v36  ;;  %8229 = vmatprep.mubr.msk.bf16.mxu0 %vm8955_vm1, %v8954_v9 }
 0xb76   : > { %8241 = vmatprep.mubr.msk.bf16.mxu1 %vm8955_vm1, %v8954_v9  ;;  %8226 = vmatpush3.bf16.msra.mxu0 %v8721_v13  ;;  %v8741_v13 = vld [vmem:[%s8996_s29 + $0x58] sm:$0xff]  }
 0xb77   : > { %8227 = vmatprep.subr.bf16.mxu0 %v8954_v9 }
 0xb7a   : > { %8228 = vmatpush3.bf16.msra.mxu0 %v8722_v14  ;;  %v8742_v14 = vld [vmem:[%s10130_s8 + $0x48] sm:$0xff]  }
 0xb7b   : > { %8245 = vmatprep.subr.bf16.mxu0 %v8954_v9 }
 0xc3f   : > { %v3651_v43 = vpop.f32.mrb[84].mxu0 }
 0xc40   : > { %v3795_v44 = vsel %vm1020_vm0, %v3651_v43, 0.0  ;;  %v3697_v45 = vpop.f32.mrb[92].mxu1  ;;  %v8205_v46 = vpop.f32.mrb[85].mxu0 }
 0xc41   : > { %v3796_v47 = vsel %vm1020_vm0, %v3697_v45, 0.0  ;;  %v8211_v48 = vpop.f32.mrb[93].mxu1  ;;  %v3654_v49 = vpop.f32.mrb[86].mxu0 }
 0xc42   : > { %v3797_v50 = vadd.f32 %v3796_v47, %v3795_v44  ;;  %v3700_v51 = vpop.f32.mrb[94].mxu1  ;;  %v8206_v52 = vpop.f32.mrb[87].mxu0 }
 0xc43   : > { %v8212_v53 = vpop.f32.mrb[95].mxu1  ;;  %v8727_v51 = vld [vmem:[%s8986_s21 + $0x40] sm:$0xff]  }
 0xc44   : > { %v8728_v52 = vld [vmem:[%s8986_s21 + $0x60] sm:$0xff]   ;;  %v8729_v53 = vld [vmem:[%s8986_s21 + $0x48] sm:$0xff]  }
 0xc47   : > { %v3743_v54 = vpop.f32.mrb[88].mxu0 }
 0xc48   : > { %v3798_v55 = vsel %vm1020_vm0, %v3743_v54, 0.0  ;;  %v3789_v56 = vpop.f32.mrb[96].mxu1  ;;  %v8217_v57 = vpop.f32.mrb[89].mxu0  ;;  %v8730_v54 = vld [vmem:[%s8986_s21 + $0x68] sm:$0xff]  }
 0xc49   : > { %v3799_v58 = vadd.f32 %v3798_v55, %v3797_v50  ;;  %v8223_v60 = vpop.f32.mrb[97].mxu1  ;;  %v3746_v37 = vpop.f32.mrb[90].mxu0  ;;  %v3800_v62 = vsel %vm1020_vm0, %v3789_v56, 0.0 }
 0xc4a   : > { %v3792_v1 = vpop.f32.mrb[98].mxu1  ;;  %v8218_v4 = vpop.f32.mrb[91].mxu0  ;;  %v7406_v60 = vld [vmem:[%s8976_s13 + $0x1] ss:$0 sm:$0xff] }
 0xc4b   : > { %v3801_v5 = vadd.f32 %v3800_v62, %v3799_v58  ;;  %v8224_v6 = vpop.f32.mrb[99].mxu1  ;;  %v8731_v4 = vld [vmem:[%s8986_s21 + $0x50] sm:$0xff]  }
 0xc4d   : > { %v3808_v7 = vadd.f32 %v7326_v61, %v3801_v5  ;;  %v7407_v61 = vld [vmem:[%s8981_s17 + $0x1] ss:$0 sm:$0xff] }
 0xc4e   : > { %v8732_v5 = vld [vmem:[%s8996_s29 + $0x40] sm:$0xff]  }
 0xc4f   : > { %v3809_v63 = vadd.f32 %v3808_v7, %v9387_v2  ;;  %v8723_v2 = vld [vmem:[%s10154_s15] sm:$0xff]   ;;  %v8733_v7 = vld [vmem:[%s8986_s21 + $0x58] sm:$0xff]   ;;  %s10161_s15 = sld [smem:[#allocation22_spill]] }
 0xc50   : > { %8234 = vmatpush3.bf16.msra.mxu1 %v8723_v2  ;;  %v8743_v2 = vld [vmem:[%s8996_s29 + $0x70] sm:$0xff]  }
 0xc51   : > { %v3826_v0 = vsel %vm1020_vm0, %v3809_v63, 0.0  ;;  %8235 = vmatprep.subr.bf16.mxu1 %v8954_v9 }
 0xc52   : > { %3827 = vadd.xlane.f32.xlu0 %v3826_v0  ;;  %v8735_v0 = vld [vmem:[%s8986_s21 + $0x70] sm:$0xff]  }
 0xc54   : > { %8236 = vmatpush3.bf16.msra.mxu1 %v8724_v15  ;;  %v8744_v15 = vld [vmem:[%s10130_s8 + $0x60] sm:$0xff]  }
 0xc55   : > { %8237 = vmatprep.subr.bf16.mxu1 %v8954_v9 }
 0xc58   : > { %8238 = vmatpush3.bf16.msra.mxu1 %v8725_v26 }
 0xc59   : > { %8239 = vmatprep.subr.bf16.mxu1 %v8954_v9 }
 0xc5c   : > { %8240 = vmatpush3.bf16.msra.mxu1 %v8726_v27 }
 0xc5d   : > { %8261 = vmatprep.subr.bf16.mxu1 %v8954_v9 }
 0xcdf   : > { %v3828_v59 = vpop.xlane.xlu0 %3827 }
 0xce0   : > { %v3829_v8 = vmul.f32 0.03125, %v3828_v59  ;;  %v8736_v59 = vld [vmem:[%s8996_s29 + $0x60] sm:$0xff]  }
 0xce2   : > { %v3830_v10 = vsub.f32 %v3809_v63, %v3829_v8  ;;  %v8737_v8 = vld [vmem:[%s8986_s21 + $0x78] sm:$0xff]  }
 0xce4   : > { %v3831_v11 = vmul.f32 %v3830_v10, %v3830_v10 }
 0xce6   : > { %v3832_v12 = vsel %vm1020_vm0, %v3831_v11, 0.0  ;;  %v8739_v11 = vld [vmem:[%s8996_s29 + $0x50] sm:$0xff]  }
 0xce7   : > { %3833 = vadd.xlane.f32.xlu1 %v3832_v12  ;;  %v8740_v12 = vld [vmem:[%s10130_s8 + $0x40] sm:$0xff]  }
 0xd74   : > { %v3834_v16 = vpop.xlane.xlu1 %3833 }
 0xd75   : > { %v3835_v17 = vmul.f32 0.03125, %v3834_v16  ;;  %v8745_v16 = vld [vmem:[%s8996_s29 + $0x78] sm:$0xff]  }
 0xd77   : > { %v3836_v18 = vadd.f32 1e-06, %v3835_v17  ;;  %v8746_v17 = vld [vmem:[%s10130_s8 + $0x68] sm:$0xff]  }
 0xd79   : > { %8817 = vrsqrt.f32 %v3836_v18  ;;  %v8747_v18 = vld [vmem:[%s10130_s8 + $0x50] sm:$0xff]  }
 0xd83   : > { %v8818_v19 = vpop.eup %8817 }
 0xd84   : > { %v3838_v21 = vmul.f32 %v8818_v19, %v3830_v10  ;;  %v8738_v10 = vld [vmem:[%s8996_s29 + $0x68] sm:$0xff]   ;;  %v8748_v19 = vld [vmem:[%s10130_s8 + $0x58] sm:$0xff]  }
 0xd86   : > { %v3845_v23 = vmul.f32 %v7327_v20, %v3838_v21  ;;  %v8749_v20 = vld [vmem:[%s10130_s8 + $0x70] sm:$0xff]   ;;  %v8750_v21 = vld [vmem:[%s10130_s8 + $0x78] sm:$0xff]  }
 0xd88   : > { %v3852_v24 = vadd.f32 %v7328_v22, %v3845_v23 }
 0xd8a   : > { %v3853_v25 = vpack.c.bf16 %v3852_v24, %v3852_v24 }
 0xd8c   : > { %8230 = vmatmul.mubr.msk.bf16.vlgmr.msra.gmra.mrb[92].mxu0 %vm1020_vm0, %v3853_v25 }
 0xd8d   : > { %8249 = vmatprep.mubr.msk.bf16.mxu0 %vm8955_vm1, %v8954_v9  ;;  %8246 = vmatpush3.bf16.msra.mxu0 %v8727_v51 }
 0xd8e   : > { %8247 = vmatprep.subr.bf16.mxu0 %v8954_v9 }
 0xd91   : > { %8248 = vmatpush3.bf16.msra.mxu0 %v8729_v53 }
 0xd92   : > { %8253 = vmatprep.subr.bf16.mxu0 %v8954_v9 }
 0xe5f   : > { %v3909_v29 = vpop.f32.mrb[92].mxu0 }
 0xe60   : > { %v3910_v30 = vadd.f32 %v7329_v28, %v3909_v29  ;;  %v8231_v31 = vpop.f32.mrb[93].mxu0 }
 0xe61   : > { %v3912_v32 = vpop.f32.mrb[94].mxu0 }
 0xe62   : > { %v3915_v34 = vmax.f32 %v3910_v30, 0.0  ;;  %v8232_v35 = vpop.f32.mrb[95].mxu0  ;;  %v7424_v30 = vld [vmem:[%s10132_s3 + $0x4] ss:$0 sm:$0xff] }
 0xe64   : > { %v3916_v36 = vpack.c.bf16 %v3915_v34, %v3915_v34 }
 0xe66   : > { %8242 = vmatmul.mubr.msk.bf16.vlgmr.msra.gmra.mrb[100].mxu1 %vm3947_vm5, %v3916_v36 }
 0xe67   : > { %8265 = vmatprep.mubr.msk.bf16.mxu1 %vm8955_vm1, %v8954_v9  ;;  %8262 = vmatpush3.bf16.msra.mxu1 %v8728_v52 }
 0xe68   : > { %8263 = vmatprep.subr.bf16.mxu1 %v8954_v9 }
 0xe6b   : > { %8264 = vmatpush3.bf16.msra.mxu1 %v8730_v54 }
 0xe6c   : > { %8277 = vmatprep.subr.bf16.mxu1 %v8954_v9 }
 0xf39   : > { %v3985_v39 = vpop.f32.mrb[100].mxu1 }
 0xf3a   : > { %v3986_v40 = vadd.f32 %v7333_v38, %v3985_v39  ;;  %v8243_v41 = vpop.f32.mrb[101].mxu1 }
 0xf3b   : > { %v3988_v42 = vpop.f32.mrb[102].mxu1 }
 0xf3c   : > { %v9612_v43 = vadd.f32 %v3986_v40, %v3809_v63  ;;  %v8244_v44 = vpop.f32.mrb[103].mxu1  ;;  %v8734_v63 = vld [vmem:[%s8996_s29 + $0x48] sm:$0xff]  }
 0xf3d   : > { %v7408_v44 = vld [vmem:[%s8991_s25 + $0x4] ss:$0 sm:$0xff] }
 0xf3e   : > { %v4069_v45 = vsel %vm1020_vm0, %v9612_v43, 0.0 }
 0xf3f   : > { %4070 = vadd.xlane.f32.xlu0 %v4069_v45 }
 0xfcc   : > { %v4071_v46 = vpop.xlane.xlu0 %4070 }
 0xfcd   : > { %v4072_v47 = vmul.f32 0.03125, %v4071_v46  ;;  %v7426_v46 = vld [vmem:[%s10132_s3 + $0x6] ss:$0 sm:$0xff] }
 0xfcf   : > { %v4073_v48 = vsub.f32 %v9612_v43, %v4072_v47 }
 0xfd1   : > { %v4074_v49 = vmul.f32 %v4073_v48, %v4073_v48 }
 0xfd3   : > { %v4075_v50 = vsel %vm1020_vm0, %v4074_v49, 0.0 }
 0xfd4   : > { %4076 = vadd.xlane.f32.xlu1 %v4075_v50 }
0x1061   : > { %v4077_v55 = vpop.xlane.xlu1 %4076 }
0x1062   : > { %v4078_v56 = vmul.f32 0.03125, %v4077_v55 }
0x1064   : > { %v4079_v57 = vadd.f32 1e-06, %v4078_v56 }
0x1066   : > { %8819 = vrsqrt.f32 %v4079_v57 }
0x1070   : > { %v8820_v58 = vpop.eup %8819 }
0x1071   : > { %v4081_v37 = vmul.f32 %v8820_v58, %v4073_v48 }
0x1073   : > { %v4088_v62 = vmul.f32 %v7406_v60, %v4081_v37  ;;  %v7410_v60 = vld [vmem:[%s8991_s25 + $0x6] ss:$0 sm:$0xff] }
0x1075   : > { %v4095_v1 = vadd.f32 %v7407_v61, %v4088_v62  ;;  %v7425_v61 = vld [vmem:[%s10132_s3 + $0x5] ss:$0 sm:$0xff]  ;;  %v7440_v62 = vld [vmem:[%s9011_s14 + $0x4] ss:$0 sm:$0xff] }
0x1077   : > { %v9630_v6 = vpack.c.bf16 %v4095_v1, %v4095_v1 }
0x1079   : > { %8250 = vmatmul.mubr.msk.bf16.vlgmr.msra.gmra.mrb[96].mxu0 %vm1020_vm0, %v9630_v6  ;;  %8266 = vmatmul.mubr.msk.bf16.vlgmr.msra.gmra.mrb[104].mxu1 %vm1020_vm0, %v9630_v6 }
0x107a   : > { %8254 = vmatpush3.bf16.msra.mxu0 %v8731_v4  ;;  %8278 = vmatpush3.bf16.msra.mxu1 %v8732_v5 }
0x107b   : > { %8255 = vmatprep.subr.bf16.mxu0 %v8954_v9  ;;  %8279 = vmatprep.subr.bf16.mxu1 %v8954_v9 }
0x107c   : > { %8257 = vmatprep.mubr.msk.bf16.mxu0 %vm8955_vm1, %v8954_v9  ;;  %8281 = vmatprep.mubr.msk.bf16.mxu1 %vm8955_vm1, %v8954_v9 }
0x107e   : > { %8256 = vmatpush3.bf16.msra.mxu0 %v8733_v7  ;;  %8280 = vmatpush3.bf16.msra.mxu1 %v8734_v63 }
0x107f   : > { %8269 = vmatprep.subr.bf16.mxu0 %v8954_v9  ;;  %8293 = vmatprep.subr.bf16.mxu1 %v8954_v9 }
0x1081   : > { %8258 = vmatmul.mubr.msk.bf16.vlgmr.msra.gmra.mrb[100].mxu0 %vm1020_vm0, %v9630_v6  ;;  %8282 = vmatmul.mubr.msk.bf16.vlgmr.msra.gmra.mrb[108].mxu1 %vm1020_vm0, %v9630_v6 }
0x1082   : > { %8270 = vmatpush3.bf16.msra.mxu0 %v8735_v0  ;;  %8294 = vmatpush3.bf16.msra.mxu1 %v8736_v59 }
0x1083   : > { %8271 = vmatprep.subr.bf16.mxu0 %v8954_v9  ;;  %8295 = vmatprep.subr.bf16.mxu1 %v8954_v9 }
0x1084   : > { %8273 = vmatprep.mubr.msk.bf16.mxu0 %vm8955_vm1, %v8954_v9  ;;  %8297 = vmatprep.mubr.msk.bf16.mxu1 %vm8955_vm1, %v8954_v9 }
0x1086   : > { %8272 = vmatpush3.bf16.msra.mxu0 %v8737_v8  ;;  %8296 = vmatpush3.bf16.msra.mxu1 %v8738_v10 }
0x1087   : > { %8285 = vmatprep.subr.bf16.mxu0 %v8954_v9  ;;  %8309 = vmatprep.subr.bf16.mxu1 %v8954_v9 }
0x1089   : > { %8274 = vmatmul.mubr.msk.bf16.vlgmr.msra.gmra.mrb[104].mxu0 %vm1020_vm0, %v9630_v6  ;;  %8298 = vmatmul.mubr.msk.bf16.vlgmr.msra.gmra.mrb[112].mxu1 %vm1020_vm0, %v9630_v6 }
0x108a   : > { %8286 = vmatpush3.bf16.msra.mxu0 %v8739_v11  ;;  %8310 = vmatpush3.bf16.msra.mxu1 %v8740_v12 }
0x108b   : > { %8287 = vmatprep.subr.bf16.mxu0 %v8954_v9  ;;  %8311 = vmatprep.subr.bf16.mxu1 %v8954_v9 }
0x108c   : > { %8289 = vmatprep.mubr.msk.bf16.mxu0 %vm8955_vm1, %v8954_v9  ;;  %8313 = vmatprep.mubr.msk.bf16.mxu1 %vm8955_vm1, %v8954_v9 }
0x108e   : > { %8288 = vmatpush3.bf16.msra.mxu0 %v8741_v13  ;;  %8312 = vmatpush3.bf16.msra.mxu1 %v8742_v14 }
0x108f   : > { %8301 = vmatprep.subr.bf16.mxu0 %v8954_v9  ;;  %8325 = vmatprep.subr.bf16.mxu1 %v8954_v9 }
0x1091   : > { %8290 = vmatmul.mubr.msk.bf16.vlgmr.msra.gmra.mrb[108].mxu0 %vm1020_vm0, %v9630_v6  ;;  %8314 = vmatmul.mubr.msk.bf16.vlgmr.msra.gmra.mrb[116].mxu1 %vm1020_vm0, %v9630_v6 }
0x1092   : > { %8302 = vmatpush3.bf16.msra.mxu0 %v8743_v2  ;;  %8326 = vmatpush3.bf16.msra.mxu1 %v8744_v15  ;;  %v7409_v2 = vld [vmem:[%s8991_s25 + $0x5] ss:$0 sm:$0xff] }
0x1093   : > { %8303 = vmatprep.subr.bf16.mxu0 %v8954_v9  ;;  %8327 = vmatprep.subr.bf16.mxu1 %v8954_v9 }
0x1094   : > { %8305 = vmatprep.mubr.msk.bf16.mxu0 %vm8955_vm1, %v8954_v9  ;;  %8329 = vmatprep.mubr.msk.bf16.mxu1 %vm8955_vm1, %v8954_v9 }
0x1096   : > { %8304 = vmatpush3.bf16.msra.mxu0 %v8745_v16  ;;  %8328 = vmatpush3.bf16.msra.mxu1 %v8746_v17  ;;  %v7427_v17 = vld [vmem:[%s10132_s3 + $0x7] ss:$0 sm:$0xff] }
0x1097   : > { %8317 = vmatprep.subr.bf16.mxu0 %v8954_v9  ;;  %8341 = vmatprep.subr.bf16.mxu1 %v8954_v9 }
0x1099   : > { %8306 = vmatmul.mubr.msk.bf16.vlgmr.msra.gmra.mrb[112].mxu0 %vm1020_vm0, %v9630_v6  ;;  %8330 = vmatmul.mubr.msk.bf16.vlgmr.msra.gmra.mrb[120].mxu1 %vm1020_vm0, %v9630_v6 }
0x109a   : > { %8318 = vmatpush3.bf16.msra.mxu0 %v8747_v18  ;;  %8321 = vmatprep.mubr.msk.bf16.mxu0 %vm8955_vm1, %v8954_v9 }
0x109b   : > { %8319 = vmatprep.subr.bf16.mxu0 %v8954_v9  ;;  %8343 = vmatprep.mubr.msk.bf16.mxu1 %vm8955_vm1, %v8954_v9 }
0x109e   : > { %8320 = vmatpush3.bf16.msra.mxu0 %v8748_v19 }
0x109f   : > { %8333 = vmatprep.subr.bf16.mxu0 %v8954_v9 }
0x10a1   : > { %8322 = vmatmul.mubr.msk.bf16.vlgmr.msra.gmra.mrb[116].mxu0 %vm1020_vm0, %v9630_v6 }
0x10a2   : > { %8334 = vmatpush3.bf16.msra.mxu0 %v8749_v20  ;;  %8337 = vmatprep.mubr.msk.bf16.mxu0 %vm8955_vm1, %v8954_v9 }
0x10a3   : > { %8335 = vmatprep.subr.bf16.mxu0 %v8954_v9 }
0x10a6   : > { %8336 = vmatpush3.bf16.msra.mxu0 %v8750_v21 }
0x10a7   : > { %8347 = vmatprep.subr.bf16.mxu0 %v8954_v9 }
0x10a9   : > { %8338 = vmatmul.mubr.msk.bf16.vlgmr.msra.gmra.mrb[120].mxu0 %vm1020_vm0, %v9630_v6 }
0x10aa   : > { %8349 = vmatprep.mubr.msk.bf16.mxu0 %vm8955_vm1, %v8954_v9 }
0x114c   : > { %v4170_v22 = vpop.f32.mrb[96].mxu0  ;;  %v4274_v23 = vpop.f32.mrb[104].mxu1 }
0x114d   : > { %v8251_v24 = vpop.f32.mrb[97].mxu0  ;;  %v8267_v25 = vpop.f32.mrb[105].mxu1  ;;  %v4171_v47 = vadd.f32 %v7408_v44, %v4170_v22  ;;  %v4275_v1 = vadd.f32 %v7410_v60, %v4274_v23 }
0x114e   : > { %v4173_v26 = vpop.f32.mrb[98].mxu0  ;;  %v4277_v27 = vpop.f32.mrb[106].mxu1 }
0x114f   : > { %v8252_v28 = vpop.f32.mrb[99].mxu0  ;;  %v8268_v29 = vpop.f32.mrb[107].mxu1  ;;  %v4796_v55 = vpack.c.bf16 %v4171_v47, %v4171_v47  ;;  %v4798_v10 = vpack.c.bf16 %v4275_v1, %v4275_v1 }
0x1154   : > { %v4222_v31 = vpop.f32.mrb[100].mxu0  ;;  %v4402_v32 = vpop.f32.mrb[108].mxu1 }
0x1155   : > { %v4403_v34 = vadd.f32 %v7424_v30, %v4402_v32  ;;  %v8259_v35 = vpop.f32.mrb[101].mxu0  ;;  %v8283_v36 = vpop.f32.mrb[109].mxu1  ;;  %v4223_v18 = vadd.f32 %v7409_v2, %v4222_v31  ;;  %v7411_v30 = vld [vmem:[%s8991_s25 + $0x7] ss:$0 sm:$0xff]  ;;  %v7441_v32 = vld [vmem:[%s9011_s14 + $0x5] ss:$0 sm:$0xff] }
0x1156   : > { %v4225_v38 = vpop.f32.mrb[102].mxu0  ;;  %v4405_v39 = vpop.f32.mrb[110].mxu1 }
0x1157   : > { %v4800_v40 = vpack.c.bf16 %v4403_v34, %v4403_v34  ;;  %v8260_v41 = vpop.f32.mrb[103].mxu0  ;;  %v8284_v42 = vpop.f32.mrb[111].mxu1  ;;  %v4797_v26 = vpack.c.bf16 %v4223_v18, %v4223_v18 }
0x1159   : > { %v4808_v45 = vsel %vm1757_vm2, %v4800_v40, 0 }
0x115a   : > { %8342 = vmatpush3.bf16.xpose.msra.mxu1 %v4808_v45 }
0x115b   : > { %8353 = vmatprep.subr.bf16.mxu1 %v8954_v9 }
0x115c   : > { %v4326_v48 = vpop.f32.mrb[104].mxu0  ;;  %v4506_v49 = vpop.f32.mrb[112].mxu1 }
0x115d   : > { %v4507_v50 = vadd.f32 %v7426_v46, %v4506_v49  ;;  %v8275_v51 = vpop.f32.mrb[105].mxu0  ;;  %v8299_v52 = vpop.f32.mrb[113].mxu1  ;;  %v4327_v34 = vadd.f32 %v7411_v30, %v4326_v48 }
0x115e   : > { %v4329_v53 = vpop.f32.mrb[106].mxu0  ;;  %v4509_v54 = vpop.f32.mrb[114].mxu1 }
0x115f   : > { %v4802_v56 = vpack.c.bf16 %v4507_v50, %v4507_v50  ;;  %v8276_v57 = vpop.f32.mrb[107].mxu0  ;;  %v8300_v58 = vpop.f32.mrb[115].mxu1  ;;  %v4799_v40 = vpack.c.bf16 %v4327_v34, %v4327_v34 }
0x1161   : > { %v4900_v37 = vsel %vm1757_vm2, %v4802_v56, 0  ;;  %8344 = vmatmul.mubr.msk.bf16.vlgmr.msra.gmra.mrb[124].mxu1 %vm1757_vm2, %v4796_v55 }
0x1162   : > { %8354 = vmatpush3.bf16.xpose.msra.mxu1 %v4900_v37  ;;  %8355 = vmatprep.mubr.msk.bf16.mxu1 %vm8955_vm1, %v8954_v9 }
0x1163   : > { %8365 = vmatprep.subr.bf16.mxu1 %v8954_v9 }
0x1164   : > { %v4454_v4 = vpop.f32.mrb[108].mxu0  ;;  %v4634_v5 = vpop.f32.mrb[116].mxu1 }
0x1165   : > { %v4455_v6 = vadd.f32 %v7425_v61, %v4454_v4  ;;  %v4635_v7 = vadd.f32 %v7440_v62, %v4634_v5  ;;  %v8291_v63 = vpop.f32.mrb[109].mxu0  ;;  %v8315_v0 = vpop.f32.mrb[117].mxu1 }
0x1166   : > { %v4457_v59 = vpop.f32.mrb[110].mxu0  ;;  %v4637_v8 = vpop.f32.mrb[118].mxu1 }
0x1167   : > { %v4801_v11 = vpack.c.bf16 %v4455_v6, %v4455_v6  ;;  %v5036_v12 = vpack.c.bf16 %v4635_v7, %v4635_v7  ;;  %v8292_v13 = vpop.f32.mrb[111].mxu0  ;;  %v8316_v14 = vpop.f32.mrb[119].mxu1 }
0x1169   : > { %v4854_v15 = vsel %vm1757_vm2, %v4801_v11, 0  ;;  %v5044_v16 = vsel %vm1997_vm3, %v5036_v12, 0  ;;  %8356 = vmatmul.mubr.msk.bf16.vlgmr.msra.gmra.mrb[128].mxu1 %vm1757_vm2, %v4798_v10 }
0x116a   : > { %8348 = vmatpush3.bf16.xpose.msra.mxu0 %v4854_v15  ;;  %8366 = vmatpush3.bf16.msra.mxu1 %v5044_v16 }
0x116b   : > { %8359 = vmatprep.subr.bf16.mxu0 %v8954_v9  ;;  %8367 = vmatprep.mubr.msk.bf16.mxu1 %vm8955_vm1, %v8954_v9 }
0x116c   : > { %v4558_v19 = vpop.f32.mrb[112].mxu0  ;;  %v9739_v20 = vpop.f32.mrb[120].mxu1  ;;  %8377 = vmatprep.subr.bf16.mxu1 %v8954_v9 }
0x116d   : > { %v4559_v21 = vadd.f32 %v7427_v17, %v4558_v19  ;;  %v8307_v22 = vpop.f32.mrb[113].mxu0  ;;  %v8331_v23 = vpop.f32.mrb[121].mxu1 }
0x116e   : > { %v4561_v24 = vpop.f32.mrb[114].mxu0  ;;  %v4741_v25 = vpop.f32.mrb[122].mxu1 }
0x116f   : > { %v4803_v27 = vpack.c.bf16 %v4559_v21, %v4559_v21  ;;  %v8308_v28 = vpop.f32.mrb[115].mxu0  ;;  %v8332_v29 = vpop.f32.mrb[123].mxu1 }
0x1171   : > { %v4946_v31 = vsel %vm1757_vm2, %v4803_v27, 0  ;;  %8350 = vmatmul.mubr.msk.bf16.vlgmr.msra.gmra.mrb[124].mxu0 %vm1757_vm2, %v4797_v26 }
0x1172   : > { %8360 = vmatpush3.bf16.xpose.msra.mxu0 %v4946_v31  ;;  %8361 = vmatprep.mubr.msk.bf16.mxu0 %vm8955_vm1, %v8954_v9  ;;  %v7442_v31 = vld [vmem:[%s9011_s14 + $0x6] ss:$0 sm:$0xff] }
0x1173   : > { %8371 = vmatprep.subr.bf16.mxu0 %v8954_v9 }
0x1174   : > { %v4686_v35 = vpop.f32.mrb[116].mxu0 }
0x1175   : > { %v4687_v36 = vadd.f32 %v7441_v32, %v4686_v35  ;;  %v8323_v38 = vpop.f32.mrb[117].mxu0  ;;  %v4739_v32 = vadd.f32 %v7442_v31, %v9739_v20 }
0x1176   : > { %v4689_v39 = vpop.f32.mrb[118].mxu0 }
0x1177   : > { %v5037_v41 = vpack.c.bf16 %v4687_v36, %v4687_v36  ;;  %v8324_v42 = vpop.f32.mrb[119].mxu0  ;;  %v5038_v36 = vpack.c.bf16 %v4739_v32, %v4739_v32 }
0x1179   : > { %v5090_v44 = vsel %vm1997_vm3, %v5037_v41, 0  ;;  %8362 = vmatmul.mubr.msk.bf16.vlgmr.msra.gmra.mrb[128].mxu0 %vm1757_vm2, %v4799_v40  ;;  %v5136_v40 = vsel %vm1997_vm3, %v5038_v36, 0 }
0x117a   : > { %8372 = vmatpush3.bf16.msra.mxu0 %v5090_v44  ;;  %8373 = vmatprep.mubr.msk.bf16.mxu0 %vm8955_vm1, %v8954_v9  ;;  %v7443_v44 = vld [vmem:[%s9011_s14 + $0x7] ss:$0 sm:$0xff] }
0x117b   : > { %8383 = vmatprep.subr.bf16.mxu0 %v8954_v9 }
0x117c   : > { %v9754_v45 = vpop.f32.mrb[120].mxu0 }
0x117d   : > { %v8339_v46 = vpop.f32.mrb[121].mxu0 }
0x117e   : > { %v4793_v47 = vpop.f32.mrb[122].mxu0 }
0x117f   : > { %v8340_v48 = vpop.f32.mrb[123].mxu0  ;;  %v4791_v47 = vadd.f32 %v7443_v44, %v9754_v45 }
0x1234   : > { %v4844_v49 = vpop.f32.mrb[124].mxu1 }
0x1235   : > { %v4845_v50 = vadd.f32 %v4844_v49, %v9323_v3  ;;  %v8345_v51 = vpop.f32.mrb[125].mxu1 }
0x1236   : > { %v4847_v52 = vpop.f32.mrb[126].mxu1 }
0x1237   : > { %v8346_v53 = vpop.f32.mrb[127].mxu1  ;;  %v4988_v54 = vsel %vm1757_vm2, %v4845_v50, -inf }
0x1238   : > { %4989 = vmax.xlane.f32.xlu0 %v4988_v54 }
0x123c   : > { %v4936_v55 = vpop.f32.mrb[128].mxu1 }
0x123d   : > { %v4937_v56 = vadd.f32 %v4936_v55, %v9323_v3  ;;  %v8357_v57 = vpop.f32.mrb[129].mxu1 }
0x123e   : > { %v4939_v58 = vpop.f32.mrb[130].mxu1 }
0x123f   : > { %v8358_v60 = vpop.f32.mrb[131].mxu1  ;;  %v4994_v37 = vsel %vm1757_vm2, %v4937_v56, -inf  ;;  %v7402_v58 = vld [vmem:[%s9016_s19 + $0x14] sm:$0xf] }
0x1240   : > { %4995 = vmax.xlane.f32.xlu0 %v4994_v37  ;;  %v5278_v60 = vsel %vm1997_vm3, %v7402_v58, 0  ;;  %v7403_v37 = vld [vmem:[%s9016_s19 + $0x18] sm:$0xf] }
0x1244   : > { %v4890_v61 = vpop.f32.mrb[124].mxu0 }
0x1245   : > { %v4891_v62 = vadd.f32 %v4890_v61, %v9323_v3  ;;  %v8351_v1 = vpop.f32.mrb[125].mxu0 }
0x1246   : > { %v4893_v4 = vpop.f32.mrb[126].mxu0 }
0x1247   : > { %v8352_v5 = vpop.f32.mrb[127].mxu0  ;;  %v4991_v6 = vsel %vm1757_vm2, %v4891_v62, -inf  ;;  %v5324_v4 = vsel %vm1997_vm3, %v7403_v37, 0 }
0x1248   : > { %4992 = vmax.xlane.f32.xlu1 %v4991_v6 }
0x124c   : > { %v4982_v7 = vpop.f32.mrb[128].mxu0 }
0x124d   : > { %v4983_v63 = vadd.f32 %v4982_v7, %v9323_v3  ;;  %v8363_v0 = vpop.f32.mrb[129].mxu0 }
0x124e   : > { %v4985_v59 = vpop.f32.mrb[130].mxu0 }
0x124f   : > { %v8364_v8 = vpop.f32.mrb[131].mxu0  ;;  %v4997_v10 = vsel %vm1757_vm2, %v4983_v63, -inf }
0x1250   : > { %4998 = vmax.xlane.f32.xlu1 %v4997_v10  ;;  %v7404_v10 = vld [vmem:[%s9016_s19 + $0x1c] sm:$0xf] }
0x12c5   : > { %v4990_v11 = vpop.xlane.xlu0 %4989 }
0x12c6   : > { %v5000_v12 = vsub.f32 %v4845_v50, %v4990_v11  ;;  %v5039_v50 = vpack.c.bf16 %v4791_v47, %v4791_v47 }
0x12c8   : > { %v5004_v13 = vmul.f32 1.442695, %v5000_v12  ;;  %v5182_v53 = vsel %vm1997_vm3, %v5039_v50, 0 }
0x12ca   : > { %8821 = vpow2.f32 %v5004_v13 }
0x12cd   : > { %v4996_v14 = vpop.xlane.xlu0 %4995 }
0x12ce   : > { %v5002_v2 = vsub.f32 %v4937_v56, %v4996_v14  ;;  %v7401_v56 = vld [vmem:[%s9016_s19 + $0x10] sm:$0xf]  ;;  %v5370_v14 = vsel %vm1997_vm3, %v7404_v10, 0  ;;  %v8759_v10 = vld [vmem:[%s10144_s1 + $0x40] sm:$0xff]  }
0x12cf   : > { %v5232_v57 = vsel %vm1997_vm3, %v7401_v56, 0  ;;  %v8752_v56 = vld [vmem:[%s9036_s12 + $0x50] sm:$0xff]  }
0x12d0   : > { %v5008_v15 = vmul.f32 1.442695, %v5002_v2 }
0x12d2   : > { %8823 = vpow2.f32 %v5008_v15 }
0x12d4   : > { %v8822_v16 = vpop.eup %8821 }
0x12d5   : > { %v4993_v17 = vpop.xlane.xlu1 %4992  ;;  %v5012_v18 = vsel %vm1757_vm2, %v8822_v16, 0.0 }
0x12d6   : > { %v5001_v19 = vsub.f32 %v4891_v62, %v4993_v17  ;;  %5013 = vadd.xlane.f32.xlu0 %v5012_v18 }
0x12d8   : > { %v5006_v3 = vmul.f32 1.442695, %v5001_v19 }
0x12da   : > { %8825 = vpow2.f32 %v5006_v3 }
0x12dc   : > { %v8824_v21 = vpop.eup %8823 }
0x12dd   : > { %v4999_v22 = vpop.xlane.xlu1 %4998  ;;  %v5018_v23 = vsel %vm1757_vm2, %v8824_v21, 0.0 }
0x12de   : > { %v5003_v24 = vsub.f32 %v4983_v63, %v4999_v22  ;;  %5019 = vadd.xlane.f32.xlu0 %v5018_v23 }
0x12e0   : > { %v5010_v25 = vmul.f32 1.442695, %v5003_v24 }
0x12e2   : > { %8827 = vpow2.f32 %v5010_v25 }
0x12e4   : > { %v8826_v26 = vpop.eup %8825 }
0x12e5   : > { %v5015_v27 = vsel %vm1757_vm2, %v8826_v26, 0.0 }
0x12e6   : > { %5016 = vadd.xlane.f32.xlu1 %v5015_v27 }
0x12ec   : > { %v8828_v28 = vpop.eup %8827 }
0x12ed   : > { %v5021_v29 = vsel %vm1757_vm2, %v8828_v28, 0.0 }
0x12ee   : > { %5022 = vadd.xlane.f32.xlu1 %v5021_v29 }
0x1363   : > { %v5014_v30 = vpop.xlane.xlu0 %5013 }
0x1364   : > { %8829 = vrcp.f32 %v5014_v30 }
0x136b   : > { %v5020_v34 = vpop.xlane.xlu0 %5019 }
0x136c   : > { %8831 = vrcp.f32 %v5020_v34 }
0x136e   : > { %v8830_v35 = vpop.eup %8829 }
0x136f   : > { %v5028_v38 = vmul.f32 %v8830_v35, %v8822_v16 }
0x1371   : > { %v5032_v39 = vpack.c.bf16 %v5028_v38, %v5028_v38 }
0x1373   : > { %v5017_v41 = vpop.xlane.xlu1 %5016  ;;  %8368 = vmatmul.mubr.msk.bf16.vlgmr.msra.gmra.mrb[132].mxu1 %vm1757_vm2, %v5032_v39 }
0x1374   : > { %8833 = vrcp.f32 %v5017_v41  ;;  %8378 = vmatpush3.bf16.msra.mxu1 %v5136_v40  ;;  %8379 = vmatprep.mubr.msk.bf16.mxu1 %vm8955_vm1, %v8954_v9  ;;  %v7468_v41 = vld [vmem:[%s9021_s24 + $0x1] ss:$0 sm:$0xff] }
0x1375   : > { %8389 = vmatprep.subr.bf16.mxu1 %v8954_v9 }
0x1376   : > { %v8832_v20 = vpop.eup %8831 }
0x1377   : > { %v5030_v42 = vmul.f32 %v8832_v20, %v8824_v21 }
0x1379   : > { %v5034_v46 = vpack.c.bf16 %v5030_v42, %v5030_v42 }
0x137b   : > { %v5023_v48 = vpop.xlane.xlu1 %5022  ;;  %8380 = vmatmul.mubr.msk.bf16.vlgmr.msra.gmra.mrb[136].mxu1 %vm1757_vm2, %v5034_v46 }
0x137c   : > { %8835 = vrcp.f32 %v5023_v48  ;;  %8391 = vmatprep.mubr.msk.bf16.mxu1 %vm8955_vm1, %v8954_v9  ;;  %8390 = vmatpush3.bf16.msra.mxu1 %v5232_v57  ;;  %v8754_v57 = vld [vmem:[%s9036_s12 + $0x58] sm:$0xff]  }
0x137d   : > { %8401 = vmatprep.subr.bf16.mxu1 %v8954_v9 }
0x137e   : > { %v8834_v49 = vpop.eup %8833 }
0x137f   : > { %v5029_v51 = vmul.f32 %v8834_v49, %v8826_v26 }
0x1381   : > { %v5033_v52 = vpack.c.bf16 %v5029_v51, %v5029_v51 }
0x1383   : > { %8374 = vmatmul.mubr.msk.bf16.vlgmr.msra.gmra.mrb[132].mxu0 %vm1757_vm2, %v5033_v52 }
0x1384   : > { %8384 = vmatpush3.bf16.msra.mxu0 %v5182_v53  ;;  %8385 = vmatprep.mubr.msk.bf16.mxu0 %vm8955_vm1, %v8954_v9 }
0x1385   : > { %8395 = vmatprep.subr.bf16.mxu0 %v8954_v9 }
0x1386   : > { %v8836_v45 = vpop.eup %8835 }
0x1387   : > { %v5031_v54 = vmul.f32 %v8836_v45, %v8828_v28 }
0x1389   : > { %v5035_v55 = vpack.c.bf16 %v5031_v54, %v5031_v54 }
0x138b   : > { %8386 = vmatmul.mubr.msk.bf16.vlgmr.msra.gmra.mrb[136].mxu0 %vm1757_vm2, %v5035_v55  ;;  %v8751_v55 = vld [vmem:[%s9036_s12 + $0x40] sm:$0xff]  }
0x138c   : > { %8397 = vmatprep.mubr.msk.bf16.mxu0 %vm8955_vm1, %v8954_v9  ;;  %8396 = vmatpush3.bf16.msra.mxu0 %v5278_v60 }
0x138d   : > { %8407 = vmatprep.subr.bf16.mxu0 %v8954_v9 }
0x1446   : > { %v5080_v61 = vpop.f32.mrb[132].mxu1 }
0x1447   : > { %v5224_v62 = vpack.c.bf16 %v5080_v61, %v5080_v61  ;;  %v8369_v1 = vpop.f32.mrb[133].mxu1 }
0x1448   : > { %v5083_v5 = vpop.f32.mrb[134].mxu1 }
0x1449   : > { %v8370_v6 = vpop.f32.mrb[135].mxu1  ;;  %8392 = vmatmul.mubr.msk.bf16.vlgmr.msra.gmra.mrb[140].mxu1 %vm1757_vm2, %v5224_v62  ;;  %v7536_v62 = vld [vmem:[%s9026_s30 + $0x1] ss:$0 sm:$0xff] }
0x144a   : > { %8402 = vmatpush3.bf16.msra.mxu1 %v5324_v4  ;;  %8403 = vmatprep.mubr.msk.bf16.mxu1 %vm8955_vm1, %v8954_v9  ;;  %v7537_v4 = vld [vmem:[%s10131_s6 + $0x1] ss:$0 sm:$0xff] }
0x144b   : > { %8413 = vmatprep.subr.bf16.mxu1 %v8954_v9 }
0x144e   : > { %v5172_v7 = vpop.f32.mrb[136].mxu1 }
0x144f   : > { %v5226_v63 = vpack.c.bf16 %v5172_v7, %v5172_v7  ;;  %v8381_v0 = vpop.f32.mrb[137].mxu1  ;;  %v8755_v7 = vld [vmem:[%s9036_s12 + $0x60] sm:$0xff]  }
0x1450   : > { %v5175_v59 = vpop.f32.mrb[138].mxu1 }
0x1451   : > { %v8382_v8 = vpop.f32.mrb[139].mxu1  ;;  %8404 = vmatmul.mubr.msk.bf16.vlgmr.msra.gmra.mrb[144].mxu1 %vm1757_vm2, %v5226_v63  ;;  %v8756_v63 = vld [vmem:[%s9036_s12 + $0x70] sm:$0xff]   ;;  %v8757_v59 = vld [vmem:[%s9036_s12 + $0x68] sm:$0xff]  }
0x1452   : > { %8417 = vmatprep.mubr.msk.bf16.mxu1 %vm8955_vm1, %v8954_v9  ;;  %8414 = vmatpush3.bf16.msra.mxu1 %v8751_v55  ;;  %v8758_v8 = vld [vmem:[%s9036_s12 + $0x78] sm:$0xff]  }
0x1453   : > { %8415 = vmatprep.subr.bf16.mxu1 %v8954_v9 }
0x1456   : > { %v5126_v11 = vpop.f32.mrb[132].mxu0 }
0x1457   : > { %v5225_v12 = vpack.c.bf16 %v5126_v11, %v5126_v11  ;;  %v8375_v13 = vpop.f32.mrb[133].mxu0  ;;  %v8760_v11 = vld [vmem:[%s10144_s1 + $0x50] sm:$0xff]  }
0x1458   : > { %v5129_v2 = vpop.f32.mrb[134].mxu0  ;;  %v8762_v13 = vld [vmem:[%s10144_s1 + $0x58] sm:$0xff]  }
0x1459   : > { %v8376_v15 = vpop.f32.mrb[135].mxu0  ;;  %8398 = vmatmul.mubr.msk.bf16.vlgmr.msra.gmra.mrb[140].mxu0 %vm1757_vm2, %v5225_v12  ;;  %v8761_v12 = vld [vmem:[%s10144_s1 + $0x48] sm:$0xff]   ;;  %v8764_v2 = vld [vmem:[%s10144_s1 + $0x70] sm:$0xff]  }
0x145a   : > { %8408 = vmatpush3.bf16.msra.mxu0 %v5370_v14  ;;  %8409 = vmatprep.mubr.msk.bf16.mxu0 %vm8955_vm1, %v8954_v9  ;;  %v8763_v14 = vld [vmem:[%s10144_s1 + $0x60] sm:$0xff]   ;;  %v8765_v15 = vld [vmem:[%s10144_s1 + $0x68] sm:$0xff]  }
0x145b   : > { %8421 = vmatprep.subr.bf16.mxu0 %v8954_v9 }
0x145e   : > { %v5218_v16 = vpop.f32.mrb[136].mxu0 }
0x145f   : > { %v5227_v17 = vpack.c.bf16 %v5218_v16, %v5218_v16  ;;  %v8387_v18 = vpop.f32.mrb[137].mxu0  ;;  %v8766_v16 = vld [vmem:[%s10144_s1 + $0x78] sm:$0xff]   ;;  %s932_s1 = sand.u32 1, %s8914_s16  }
0x1460   : > { %v5221_v19 = vpop.f32.mrb[138].mxu0  ;;  %v8768_v18 = vld [vmem:[%s10146_s5 + $0x50] sm:$0xff]   ;;  %s7080_s8 = scalar_lea.sflag [#allocation3], %s932_s1 }
0x1461   : > { %v8388_v3 = vpop.f32.mrb[139].mxu0  ;;  %8410 = vmatmul.mubr.msk.bf16.vlgmr.msra.gmra.mrb[144].mxu0 %vm1757_vm2, %v5227_v17  ;;  %v8767_v17 = vld [vmem:[%s10146_s5 + $0x40] sm:$0xff]   ;;  %v8769_v19 = vld [vmem:[%s10146_s5 + $0x48] sm:$0xff]  }
0x1462   : > { %8425 = vmatprep.mubr.msk.bf16.mxu0 %vm8955_vm1, %v8954_v9  ;;  %8422 = vmatpush3.bf16.msra.mxu0 %v8752_v56  ;;  %v8770_v3 = vld [vmem:[%s10146_s5 + $0x58] sm:$0xff]  }
0x1463   : > { %8423 = vmatprep.subr.bf16.mxu0 %v8954_v9 }
0x1466   : > { %8424 = vmatpush3.bf16.msra.mxu0 %v8754_v57  ;;  %v7539_v57 = vld [vmem:[%s10148_s23 + $0x5] ss:$0 sm:$0xff] }
0x1467   : > { %8437 = vmatprep.subr.bf16.mxu0 %v8954_v9 }
0x151c   : > { %v5268_v21 = vpop.f32.mrb[140].mxu1 }
0x151d   : > { %v8393_v22 = vpop.f32.mrb[141].mxu1  ;;  %v5412_v30 = vsel %vm1020_vm0, %v5268_v21, 0.0  ;;  %v8771_v21 = vld [vmem:[%s10146_s5 + $0x60] sm:$0xff]  }
0x151e   : > { %v5271_v23 = vpop.f32.mrb[142].mxu1  ;;  %v8772_v22 = vld [vmem:[%s10146_s5 + $0x70] sm:$0xff]  }
0x151f   : > { %v8394_v24 = vpop.f32.mrb[143].mxu1  ;;  %v8773_v23 = vld [vmem:[%s10146_s5 + $0x68] sm:$0xff]  }
0x1520   : > { %v8774_v24 = vld [vmem:[%s10146_s5 + $0x78] sm:$0xff]  }
0x1524   : > { %v5360_v25 = vpop.f32.mrb[144].mxu1 }
0x1525   : > { %v8405_v26 = vpop.f32.mrb[145].mxu1  ;;  %v5415_v36 = vsel %vm1020_vm0, %v5360_v25, 0.0 }
0x1526   : > { %v5363_v27 = vpop.f32.mrb[146].mxu1 }
0x1527   : > { %v8406_v28 = vpop.f32.mrb[147].mxu1 }
0x152c   : > { %v5314_v29 = vpop.f32.mrb[140].mxu0 }
0x152d   : > { %v5413_v31 = vsel %vm1020_vm0, %v5314_v29, 0.0  ;;  %v8399_v32 = vpop.f32.mrb[141].mxu0 }
0x152e   : > { %v5414_v34 = vadd.f32 %v5413_v31, %v5412_v30  ;;  %v5317_v35 = vpop.f32.mrb[142].mxu0 }
0x152f   : > { %v8400_v38 = vpop.f32.mrb[143].mxu0 }
0x1530   : > { %v5416_v39 = vadd.f32 %v5415_v36, %v5414_v34 }
0x1534   : > { %v5406_v40 = vpop.f32.mrb[144].mxu0 }
0x1535   : > { %v5417_v20 = vsel %vm1020_vm0, %v5406_v40, 0.0  ;;  %v8411_v42 = vpop.f32.mrb[145].mxu0 }
0x1536   : > { %v5418_v44 = vadd.f32 %v5417_v20, %v5416_v39  ;;  %v5409_v46 = vpop.f32.mrb[146].mxu0  ;;  %v7554_v20 = vld [vmem:[%s10147_s11 + $0x4] ss:$0 sm:$0xff]  ;;  %v7555_v42 = vld [vmem:[%s10147_s11 + $0x5] ss:$0 sm:$0xff] }
0x1537   : > { %v8412_v47 = vpop.f32.mrb[147].mxu0 }
0x1538   : > { %v5425_v48 = vadd.f32 %v7468_v41, %v5418_v44 }
0x153a   : > { %v9818_v49 = vadd.f32 %v5425_v48, %v9612_v43  ;;  %v8753_v43 = vld [vmem:[%s9036_s12 + $0x48] sm:$0xff]  }
0x153b   : > { %8416 = vmatpush3.bf16.msra.mxu1 %v8753_v43  ;;  %v7538_v43 = vld [vmem:[%s10148_s23 + $0x4] ss:$0 sm:$0xff] }
0x153c   : > { %v5504_v50 = vsel %vm1020_vm0, %v9818_v49, 0.0  ;;  %8429 = vmatprep.subr.bf16.mxu1 %v8954_v9 }
0x153d   : > { %5505 = vadd.xlane.f32.xlu0 %v5504_v50 }
0x15ca   : > { %v5506_v51 = vpop.xlane.xlu0 %5505 }
0x15cb   : > { %v5507_v52 = vmul.f32 0.03125, %v5506_v51 }
0x15cd   : > { %v5508_v53 = vsub.f32 %v9818_v49, %v5507_v52 }
0x15cf   : > { %v5509_v45 = vmul.f32 %v5508_v53, %v5508_v53 }
0x15d1   : > { %v5510_v54 = vsel %vm1020_vm0, %v5509_v45, 0.0 }
0x15d2   : > { %5511 = vadd.xlane.f32.xlu1 %v5510_v54 }
0x165f   : > { %v5512_v58 = vpop.xlane.xlu1 %5511 }
0x1660   : > { %v5513_v60 = vmul.f32 0.03125, %v5512_v58 }
0x1662   : > { %v5514_v37 = vadd.f32 1e-06, %v5513_v60 }
0x1664   : > { %8837 = vrsqrt.f32 %v5514_v37  ;;  %v7556_v37 = vld [vmem:[%s10147_s11 + $0x6] ss:$0 sm:$0xff] }
0x166e   : > { %v8838_v61 = vpop.eup %8837 }
0x166f   : > { %v5516_v1 = vmul.f32 %v8838_v61, %v5508_v53  ;;  %v7557_v61 = vld [vmem:[%s10147_s11 + $0x7] ss:$0 sm:$0xff] }
0x1671   : > { %v5523_v5 = vmul.f32 %v7536_v62, %v5516_v1 }
0x1673   : > { %v5530_v6 = vadd.f32 %v7537_v4, %v5523_v5 }
0x1675   : > { %v5531_v0 = vpack.c.bf16 %v5530_v6, %v5530_v6 }
0x1677   : > { %8418 = vmatmul.mubr.msk.bf16.vlgmr.msra.gmra.mrb[148].mxu1 %vm1020_vm0, %v5531_v0  ;;  %8426 = vmatmul.mubr.msk.bf16.vlgmr.msra.gmra.mrb[148].mxu0 %vm1020_vm0, %v5531_v0 }
0x1678   : > { %8430 = vmatpush3.bf16.msra.mxu1 %v8755_v7  ;;  %8438 = vmatpush3.bf16.msra.mxu0 %v8756_v63 }
0x1679   : > { %8431 = vmatprep.subr.bf16.mxu1 %v8954_v9  ;;  %8439 = vmatprep.subr.bf16.mxu0 %v8954_v9 }
0x167a   : > { %8433 = vmatprep.mubr.msk.bf16.mxu1 %vm8955_vm1, %v8954_v9  ;;  %8441 = vmatprep.mubr.msk.bf16.mxu0 %vm8955_vm1, %v8954_v9 }
0x167c   : > { %8432 = vmatpush3.bf16.msra.mxu1 %v8757_v59  ;;  %8440 = vmatpush3.bf16.msra.mxu0 %v8758_v8 }
0x167d   : > { %8445 = vmatprep.subr.bf16.mxu1 %v8954_v9  ;;  %8453 = vmatprep.subr.bf16.mxu0 %v8954_v9 }
0x167f   : > { %8434 = vmatmul.mubr.msk.bf16.vlgmr.msra.gmra.mrb[152].mxu1 %vm1020_vm0, %v5531_v0  ;;  %8442 = vmatmul.mubr.msk.bf16.vlgmr.msra.gmra.mrb[152].mxu0 %vm1020_vm0, %v5531_v0 }
0x1680   : > { %8446 = vmatpush3.bf16.msra.mxu1 %v8759_v10  ;;  %8454 = vmatpush3.bf16.msra.mxu0 %v8760_v11 }
0x1681   : > { %8447 = vmatprep.subr.bf16.mxu1 %v8954_v9  ;;  %8455 = vmatprep.subr.bf16.mxu0 %v8954_v9 }
0x1682   : > { %8449 = vmatprep.mubr.msk.bf16.mxu1 %vm8955_vm1, %v8954_v9  ;;  %8457 = vmatprep.mubr.msk.bf16.mxu0 %vm8955_vm1, %v8954_v9 }
0x1684   : > { %8448 = vmatpush3.bf16.msra.mxu1 %v8761_v12  ;;  %8456 = vmatpush3.bf16.msra.mxu0 %v8762_v13 }
0x1685   : > { %8461 = vmatprep.subr.bf16.mxu1 %v8954_v9  ;;  %8469 = vmatprep.subr.bf16.mxu0 %v8954_v9 }
0x1687   : > { %8450 = vmatmul.mubr.msk.bf16.vlgmr.msra.gmra.mrb[156].mxu1 %vm1020_vm0, %v9432_v33  ;;  %8458 = vmatmul.mubr.msk.bf16.vlgmr.msra.gmra.mrb[156].mxu0 %vm1020_vm0, %v9432_v33 }
0x1688   : > { %8462 = vmatpush3.bf16.msra.mxu1 %v8763_v14  ;;  %8470 = vmatpush3.bf16.msra.mxu0 %v8764_v2 }
0x1689   : > { %8463 = vmatprep.subr.bf16.mxu1 %v8954_v9  ;;  %8471 = vmatprep.subr.bf16.mxu0 %v8954_v9 }
0x168a   : > { %8465 = vmatprep.mubr.msk.bf16.mxu1 %vm8955_vm1, %v8954_v9  ;;  %8473 = vmatprep.mubr.msk.bf16.mxu0 %vm8955_vm1, %v8954_v9 }
0x168c   : > { %8464 = vmatpush3.bf16.msra.mxu1 %v8765_v15  ;;  %8472 = vmatpush3.bf16.msra.mxu0 %v8766_v16  ;;  %v7540_v15 = vld [vmem:[%s10148_s23 + $0x6] ss:$0 sm:$0xff]  ;;  %v7541_v16 = vld [vmem:[%s10148_s23 + $0x7] ss:$0 sm:$0xff] }
0x168d   : > { %8477 = vmatprep.subr.bf16.mxu1 %v8954_v9  ;;  %8485 = vmatprep.subr.bf16.mxu0 %v8954_v9 }
0x168f   : > { %8466 = vmatmul.mubr.msk.bf16.vlgmr.msra.gmra.mrb[160].mxu1 %vm1020_vm0, %v9432_v33  ;;  %8474 = vmatmul.mubr.msk.bf16.vlgmr.msra.gmra.mrb[160].mxu0 %vm1020_vm0, %v9432_v33 }
0x1690   : > { %8478 = vmatpush3.bf16.msra.mxu1 %v8767_v17  ;;  %8481 = vmatprep.mubr.msk.bf16.mxu1 %vm8955_vm1, %v8954_v9 }
0x1691   : > { %8479 = vmatprep.subr.bf16.mxu1 %v8954_v9  ;;  %8489 = vmatprep.mubr.msk.bf16.mxu0 %vm8955_vm1, %v8954_v9 }
0x1692   : > { %8486 = vmatpush3.bf16.msra.mxu0 %v8768_v18 }
0x1693   : > { %8487 = vmatprep.subr.bf16.mxu0 %v8954_v9 }
0x1694   : > { %8480 = vmatpush3.bf16.msra.mxu1 %v8769_v19 }
0x1695   : > { %8493 = vmatprep.subr.bf16.mxu1 %v8954_v9 }
0x1696   : > { %8488 = vmatpush3.bf16.msra.mxu0 %v8770_v3 }
0x1697   : > { %8482 = vmatmul.mubr.msk.bf16.vlgmr.msra.gmra.mrb[164].mxu1 %vm1020_vm0, %v9432_v33  ;;  %8501 = vmatprep.subr.bf16.mxu0 %v8954_v9 }
0x1698   : > { %8497 = vmatprep.mubr.msk.bf16.mxu1 %vm8955_vm1, %v8954_v9  ;;  %8494 = vmatpush3.bf16.msra.mxu1 %v8771_v21 }
0x1699   : > { %8490 = vmatmul.mubr.msk.bf16.vlgmr.msra.gmra.mrb[164].mxu0 %vm1020_vm0, %v9432_v33  ;;  %8495 = vmatprep.subr.bf16.mxu1 %v8954_v9 }
0x169a   : > { %8502 = vmatpush3.bf16.msra.mxu0 %v8772_v22  ;;  %8505 = vmatprep.mubr.msk.bf16.mxu0 %vm8955_vm1, %v8954_v9 }
0x169b   : > { %8503 = vmatprep.subr.bf16.mxu0 %v8954_v9 }
0x169c   : > { %8496 = vmatpush3.bf16.msra.mxu1 %v8773_v23  ;;  %v7570_v23 = vld [vmem:[%s10149_s28 + $0x4] ss:$0 sm:$0xff] }
0x169d   : > { %8509 = vmatprep.subr.bf16.mxu1 %v8954_v9 }
0x169e   : > { %8504 = vmatpush3.bf16.msra.mxu0 %v8774_v24 }
0x169f   : > { %8515 = vmatprep.subr.bf16.mxu0 %v8954_v9  ;;  %8498 = vmatmul.mubr.msk.bf16.vlgmr.msra.gmra.mrb[168].mxu1 %vm1020_vm0, %v9432_v33 }
0x16a0   : > { %8511 = vmatprep.mubr.msk.bf16.mxu1 %vm8955_vm1, %v8954_v9 }
0x16a1   : > { %8506 = vmatmul.mubr.msk.bf16.vlgmr.msra.gmra.mrb[168].mxu0 %vm1020_vm0, %v9432_v33 }
0x16a2   : > { %8517 = vmatprep.mubr.msk.bf16.mxu0 %vm8955_vm1, %v8954_v9 }
0x174a   : > { %v5605_v25 = vpop.f32.mrb[148].mxu1  ;;  %v5657_v26 = vpop.f32.mrb[148].mxu0 }
0x174b   : > { %v8419_v27 = vpop.f32.mrb[149].mxu1  ;;  %v8427_v28 = vpop.f32.mrb[149].mxu0  ;;  %v5606_v62 = vadd.f32 %v7538_v43, %v5605_v25  ;;  %v5658_v1 = vadd.f32 %v7539_v57, %v5657_v26  ;;  %v7571_v25 = vld [vmem:[%s10149_s28 + $0x5] ss:$0 sm:$0xff] }
0x174c   : > { %v5608_v29 = vpop.f32.mrb[150].mxu1  ;;  %v5660_v30 = vpop.f32.mrb[150].mxu0 }
0x174d   : > { %v8420_v31 = vpop.f32.mrb[151].mxu1  ;;  %v8428_v32 = vpop.f32.mrb[151].mxu0  ;;  %v6231_v10 = vpack.c.bf16 %v5606_v62, %v5606_v62  ;;  %v6232_v11 = vpack.c.bf16 %v5658_v1, %v5658_v1 }
0x1752   : > { %v5709_v34 = vpop.f32.mrb[152].mxu1  ;;  %v5761_v35 = vpop.f32.mrb[152].mxu0 }
0x1753   : > { %v8435_v36 = vpop.f32.mrb[153].mxu1  ;;  %v8443_v33 = vpop.f32.mrb[153].mxu0  ;;  %v5710_v19 = vadd.f32 %v7540_v15, %v5709_v34  ;;  %v5762_v3 = vadd.f32 %v7541_v16, %v5761_v35 }
0x1754   : > { %v5712_v38 = vpop.f32.mrb[154].mxu1  ;;  %v5764_v39 = vpop.f32.mrb[154].mxu0 }
0x1755   : > { %v8436_v40 = vpop.f32.mrb[155].mxu1  ;;  %v8444_v41 = vpop.f32.mrb[155].mxu0  ;;  %v6233_v21 = vpack.c.bf16 %v5710_v19, %v5710_v19  ;;  %v6234_v22 = vpack.c.bf16 %v5762_v3, %v5762_v3 }
0x175a   : > { %v5837_v44 = vpop.f32.mrb[156].mxu1  ;;  %v5889_v46 = vpop.f32.mrb[156].mxu0 }
0x175b   : > { %v5838_v47 = vadd.f32 %v7554_v20, %v5837_v44  ;;  %v5890_v48 = vadd.f32 %v7555_v42, %v5889_v46  ;;  %v8451_v50 = vpop.f32.mrb[157].mxu1  ;;  %v8459_v51 = vpop.f32.mrb[157].mxu0 }
0x175c   : > { %v5840_v52 = vpop.f32.mrb[158].mxu1  ;;  %v5892_v53 = vpop.f32.mrb[158].mxu0 }
0x175d   : > { %v6235_v45 = vpack.c.bf16 %v5838_v47, %v5838_v47  ;;  %v6236_v54 = vpack.c.bf16 %v5890_v48, %v5890_v48  ;;  %v8452_v55 = vpop.f32.mrb[159].mxu1  ;;  %v8460_v56 = vpop.f32.mrb[159].mxu0 }
0x175f   : > { %v6243_v58 = vsel %vm1757_vm2, %v6235_v45, 0  ;;  %v6289_v60 = vsel %vm1757_vm2, %v6236_v54, 0 }
0x1760   : > { %8510 = vmatpush3.bf16.xpose.msra.mxu1 %v6243_v58  ;;  %8516 = vmatpush3.bf16.xpose.msra.mxu0 %v6289_v60 }
0x1761   : > { %8521 = vmatprep.subr.bf16.mxu1 %v8954_v9  ;;  %8527 = vmatprep.subr.bf16.mxu0 %v8954_v9 }
0x1762   : > { %v5941_v4 = vpop.f32.mrb[160].mxu1  ;;  %v5993_v5 = vpop.f32.mrb[160].mxu0 }
0x1763   : > { %v5942_v6 = vadd.f32 %v7556_v37, %v5941_v4  ;;  %v5994_v7 = vadd.f32 %v7557_v61, %v5993_v5  ;;  %v8467_v63 = vpop.f32.mrb[161].mxu1  ;;  %v8475_v0 = vpop.f32.mrb[161].mxu0 }
0x1764   : > { %v5944_v59 = vpop.f32.mrb[162].mxu1  ;;  %v5996_v8 = vpop.f32.mrb[162].mxu0 }
0x1765   : > { %v6237_v12 = vpack.c.bf16 %v5942_v6, %v5942_v6  ;;  %v6238_v13 = vpack.c.bf16 %v5994_v7, %v5994_v7  ;;  %v8468_v14 = vpop.f32.mrb[163].mxu1  ;;  %v8476_v2 = vpop.f32.mrb[163].mxu0 }
0x1767   : > { %v6335_v17 = vsel %vm1757_vm2, %v6237_v12, 0  ;;  %v6381_v18 = vsel %vm1757_vm2, %v6238_v13, 0  ;;  %8512 = vmatmul.mubr.msk.bf16.vlgmr.msra.gmra.mrb[172].mxu1 %vm1757_vm2, %v6231_v10  ;;  %8518 = vmatmul.mubr.msk.bf16.vlgmr.msra.gmra.mrb[172].mxu0 %vm1757_vm2, %v6232_v11 }
0x1768   : > { %8522 = vmatpush3.bf16.xpose.msra.mxu1 %v6335_v17  ;;  %8528 = vmatpush3.bf16.xpose.msra.mxu0 %v6381_v18 }
0x1769   : > { %8523 = vmatprep.mubr.msk.bf16.mxu1 %vm8955_vm1, %v8954_v9  ;;  %8529 = vmatprep.mubr.msk.bf16.mxu0 %vm8955_vm1, %v8954_v9 }
0x176a   : > { %8533 = vmatprep.subr.bf16.mxu1 %v8954_v9  ;;  %8539 = vmatprep.subr.bf16.mxu0 %v8954_v9  ;;  %v6069_v24 = vpop.f32.mrb[164].mxu1 }
0x176b   : > { %v6070_v26 = vadd.f32 %v7570_v23, %v6069_v24  ;;  %v8483_v27 = vpop.f32.mrb[165].mxu1 }
0x176c   : > { %v6072_v28 = vpop.f32.mrb[166].mxu1  ;;  %v6121_v29 = vpop.f32.mrb[164].mxu0  ;;  %v7573_v27 = vld [vmem:[%s10149_s28 + $0x7] ss:$0 sm:$0xff] }
0x176d   : > { %v6471_v30 = vpack.c.bf16 %v6070_v26, %v6070_v26  ;;  %v6122_v31 = vadd.f32 %v7571_v25, %v6121_v29  ;;  %v8484_v32 = vpop.f32.mrb[167].mxu1  ;;  %v8491_v34 = vpop.f32.mrb[165].mxu0  ;;  %v7572_v28 = vld [vmem:[%s10149_s28 + $0x6] ss:$0 sm:$0xff] }
0x176e   : > { %v6124_v35 = vpop.f32.mrb[166].mxu0 }
0x176f   : > { %8524 = vmatmul.mubr.msk.bf16.vlgmr.msra.gmra.mrb[176].mxu1 %vm1757_vm2, %v6233_v21  ;;  %8530 = vmatmul.mubr.msk.bf16.vlgmr.msra.gmra.mrb[176].mxu0 %vm1757_vm2, %v6234_v22  ;;  %v6479_v36 = vsel %vm1997_vm3, %v6471_v30, 0  ;;  %v6472_v33 = vpack.c.bf16 %v6122_v31, %v6122_v31  ;;  %v8492_v38 = vpop.f32.mrb[167].mxu0 }
0x1770   : > { %8535 = vmatprep.mubr.msk.bf16.mxu1 %vm8955_vm1, %v8954_v9  ;;  %8541 = vmatprep.mubr.msk.bf16.mxu0 %vm8955_vm1, %v8954_v9 }
0x1771   : > { %8534 = vmatpush3.bf16.msra.mxu1 %v6479_v36  ;;  %v6525_v39 = vsel %vm1997_vm3, %v6472_v33, 0 }
0x1772   : > { %8545 = vmatprep.subr.bf16.mxu1 %v8954_v9  ;;  %8540 = vmatpush3.bf16.msra.mxu0 %v6525_v39  ;;  %v9952_v40 = vpop.f32.mrb[168].mxu1 }
0x1773   : > { %8551 = vmatprep.subr.bf16.mxu0 %v8954_v9  ;;  %v8499_v20 = vpop.f32.mrb[169].mxu1  ;;  %v6174_v31 = vadd.f32 %v7572_v28, %v9952_v40 }
0x1774   : > { %v9954_v41 = vpop.f32.mrb[168].mxu0  ;;  %v6176_v44 = vpop.f32.mrb[170].mxu1 }
0x1775   : > { %v8507_v42 = vpop.f32.mrb[169].mxu0  ;;  %v8500_v47 = vpop.f32.mrb[171].mxu1  ;;  %v6226_v29 = vadd.f32 %v7573_v27, %v9954_v41  ;;  %v6473_v38 = vpack.c.bf16 %v6174_v31, %v6174_v31 }
0x1776   : > { %v6228_v46 = vpop.f32.mrb[170].mxu0 }
0x1777   : > { %v8508_v48 = vpop.f32.mrb[171].mxu0  ;;  %v6474_v36 = vpack.c.bf16 %v6226_v29, %v6226_v29  ;;  %v6571_v41 = vsel %vm1997_vm3, %v6473_v38, 0  ;;  %v7532_v46 = vld [vmem:[%s10150_s2 + $0x14] sm:$0xf] }
0x1779   : > { %v6617_v44 = vsel %vm1997_vm3, %v6474_v36, 0  ;;  %v7598_v36 = vld [vmem:[%s10152_s26 + $0x1] ss:$0 sm:$0xff] }
0x183a   : > { %v6279_v50 = vpop.f32.mrb[172].mxu1  ;;  %v6325_v51 = vpop.f32.mrb[172].mxu0 }
0x183b   : > { %v8513_v52 = vpop.f32.mrb[173].mxu1  ;;  %v8519_v53 = vpop.f32.mrb[173].mxu0  ;;  %v6426_v45 = vsel %vm1757_vm2, %v6325_v51, -inf  ;;  %v6423_v54 = vsel %vm1757_vm2, %v6279_v50, -inf }
0x183c   : > { %6427 = vmax.xlane.f32.xlu1 %v6426_v45  ;;  %v6328_v55 = vpop.f32.mrb[174].mxu0  ;;  %6424 = vmax.xlane.f32.xlu0 %v6423_v54  ;;  %v6282_v56 = vpop.f32.mrb[174].mxu1  ;;  %v6713_v53 = vsel %vm1997_vm3, %v7532_v46, 0 }
0x183d   : > { %v8514_v43 = vpop.f32.mrb[175].mxu1  ;;  %v8520_v57 = vpop.f32.mrb[175].mxu0  ;;  %v7534_v55 = vld [vmem:[%s10150_s2 + $0x1c] sm:$0xf]  ;;  %v7533_v56 = vld [vmem:[%s10150_s2 + $0x18] sm:$0xf] }
0x1842   : > { %v6371_v58 = vpop.f32.mrb[176].mxu1  ;;  %v6417_v60 = vpop.f32.mrb[176].mxu0 }
0x1843   : > { %v8525_v37 = vpop.f32.mrb[177].mxu1  ;;  %v8531_v61 = vpop.f32.mrb[177].mxu0  ;;  %v6432_v62 = vsel %vm1757_vm2, %v6417_v60, -inf  ;;  %v6429_v1 = vsel %vm1757_vm2, %v6371_v58, -inf }
0x1844   : > { %6433 = vmax.xlane.f32.xlu1 %v6432_v62  ;;  %v6420_v4 = vpop.f32.mrb[178].mxu0  ;;  %6430 = vmax.xlane.f32.xlu0 %v6429_v1  ;;  %v6374_v5 = vpop.f32.mrb[178].mxu1  ;;  %v6805_v37 = vsel %vm1997_vm3, %v7534_v55, 0 }
0x1845   : > { %v8526_v6 = vpop.f32.mrb[179].mxu1  ;;  %v8532_v7 = vpop.f32.mrb[179].mxu0  ;;  %v6759_v4 = vsel %vm1997_vm3, %v7533_v56, 0  ;;  %v7615_v56 = vld [vmem:[%s10157_s9 + $0x1] ss:$0 sm:$0xff] }
0x18c9   : > { %v6428_v63 = vpop.xlane.xlu1 %6427  ;;  %v6425_v0 = vpop.xlane.xlu0 %6424 }
0x18ca   : > { %v6436_v59 = vsub.f32 %v6325_v51, %v6428_v63  ;;  %v6435_v8 = vsub.f32 %v6279_v50, %v6425_v0  ;;  %v7531_v50 = vld [vmem:[%s10150_s2 + $0x10] sm:$0xf]  ;;  %s7198_s2 = sshll.u32 %s932_s1, 3 }
0x18cb   : > { %v6667_v54 = vsel %vm1997_vm3, %v7531_v50, 0  ;;  %v8775_v50 = vld [vmem:[%s10153_s10 + $0x10] sm:$0xff]   ;;  %s934_s5 = scalar_lea.vmem [#allocation2], %s7198_s2 }
0x18cc   : > { %v6441_v10 = vmul.f32 1.442695, %v6436_v59  ;;  %v6439_v11 = vmul.f32 1.442695, %v6435_v8  ;;  %s7093_s6 = sshll.u32 %s934_s5, 4  ;;  %s10041_s6 = int_to_ptr.vmem [resolvable:$true] %s7093_s6 }
0x18cd   : > { %s8860_s9 = scalar_lea.vmem %s10041_s6, 128 }
0x18ce   : > { %8839 = vpow2.f32 %v6441_v10  ;;  %p8861_p11 = scmp.ne.s32.totalorder %s10041_s6, %s8860_s9 }
0x18cf   : > { %8841 = vpow2.f32 %v6439_v11 }
0x18d0   : > { %p8862_p12 = pnand %p8861_p11, %p9156_p5 }
0x18d1   : > { %v6434_v12 = vpop.xlane.xlu1 %6433  ;;  %v6431_v13 = vpop.xlane.xlu0 %6430 }
0x18d2   : > { %v6438_v14 = vsub.f32 %v6417_v60, %v6434_v12  ;;  %v6437_v2 = vsub.f32 %v6371_v58, %v6431_v13  ;;  %p8863_p13 = pneg %p8862_p12 }
0x18d4   : > { %v6445_v15 = vmul.f32 1.442695, %v6438_v14  ;;  %v6443_v16 = vmul.f32 1.442695, %v6437_v2 }
0x18d6   : > { %8843 = vpow2.f32 %v6445_v15 }
0x18d7   : > { %8845 = vpow2.f32 %v6443_v16 }
0x18d8   : > { %v8840_v17 = vpop.eup %8839 }
0x18d9   : > { %v8842_v18 = vpop.eup %8841  ;;  %v6450_v19 = vsel %vm1757_vm2, %v8840_v17, 0.0 }
0x18da   : > { %6451 = vadd.xlane.f32.xlu1 %v6450_v19  ;;  %v6447_v3 = vsel %vm1757_vm2, %v8842_v18, 0.0 }
0x18db   : > { %6448 = vadd.xlane.f32.xlu0 %v6447_v3 }
0x18e0   : > { %v8844_v21 = vpop.eup %8843 }
0x18e1   : > { %v8846_v22 = vpop.eup %8845  ;;  %v6456_v23 = vsel %vm1757_vm2, %v8844_v21, 0.0 }
0x18e2   : > { %6457 = vadd.xlane.f32.xlu1 %v6456_v23  ;;  %v6453_v24 = vsel %vm1757_vm2, %v8846_v22, 0.0 }
0x18e3   : > { %6454 = vadd.xlane.f32.xlu0 %v6453_v24 }
0x1967   : > { %v6452_v25 = vpop.xlane.xlu1 %6451 }
0x1968   : > { %8847 = vrcp.f32 %v6452_v25  ;;  %v6449_v26 = vpop.xlane.xlu0 %6448 }
0x1969   : > { %8849 = vrcp.f32 %v6449_v26 }
0x196f   : > { %v6458_v30 = vpop.xlane.xlu1 %6457 }
0x1970   : > { %8851 = vrcp.f32 %v6458_v30  ;;  %v6455_v32 = vpop.xlane.xlu0 %6454 }
0x1971   : > { %8853 = vrcp.f32 %v6455_v32 }
0x1972   : > { %v8848_v34 = vpop.eup %8847 }
0x1973   : > { %v8850_v35 = vpop.eup %8849  ;;  %v6464_v33 = vmul.f32 %v8848_v34, %v8840_v17 }
0x1974   : > { %v6463_v39 = vmul.f32 %v8850_v35, %v8842_v18 }
0x1975   : > { %v6468_v20 = vpack.c.bf16 %v6464_v33, %v6464_v33 }
0x1976   : > { %v6467_v42 = vpack.c.bf16 %v6463_v39, %v6463_v39 }
0x1977   : > { %8542 = vmatmul.mubr.msk.bf16.vlgmr.msra.gmra.mrb[180].mxu0 %vm1757_vm2, %v6468_v20 }
0x1978   : > { %8536 = vmatmul.mubr.msk.bf16.vlgmr.msra.gmra.mrb[180].mxu1 %vm1757_vm2, %v6467_v42  ;;  %8552 = vmatpush3.bf16.msra.mxu0 %v6617_v44 }
0x1979   : > { %8546 = vmatpush3.bf16.msra.mxu1 %v6571_v41  ;;  %8547 = vmatprep.mubr.msk.bf16.mxu1 %vm8955_vm1, %v8954_v9 }
0x197a   : > { %v8852_v40 = vpop.eup %8851  ;;  %8553 = vmatprep.mubr.msk.bf16.mxu0 %vm8955_vm1, %v8954_v9  ;;  %8557 = vmatprep.subr.bf16.mxu1 %v8954_v9 }
0x197b   : > { %v8854_v47 = vpop.eup %8853  ;;  %v6466_v48 = vmul.f32 %v8852_v40, %v8844_v21  ;;  %8563 = vmatprep.subr.bf16.mxu0 %v8954_v9 }
0x197c   : > { %v6465_v51 = vmul.f32 %v8854_v47, %v8846_v22 }
0x197d   : > { %v6470_v52 = vpack.c.bf16 %v6466_v48, %v6466_v48 }
0x197e   : > { %v6469_v45 = vpack.c.bf16 %v6465_v51, %v6465_v51  ;;  %v8776_v51 = vld [vmem:[%s10153_s10 + $0x18] sm:$0xff]  }
0x197f   : > { %8554 = vmatmul.mubr.msk.bf16.vlgmr.msra.gmra.mrb[184].mxu0 %vm1757_vm2, %v6470_v52  ;;  %v8778_v52 = vld [vmem:[%s10155_s7 + $0x28] sm:$0xff]  }
0x1980   : > { %8548 = vmatmul.mubr.msk.bf16.vlgmr.msra.gmra.mrb[184].mxu1 %vm1757_vm2, %v6469_v45  ;;  %8564 = vmatpush3.bf16.msra.mxu0 %v6713_v53 }
0x1981   : > { %8558 = vmatpush3.bf16.msra.mxu1 %v6667_v54  ;;  %8559 = vmatprep.mubr.msk.bf16.mxu1 %vm8955_vm1, %v8954_v9 }
0x1982   : > { %8565 = vmatprep.mubr.msk.bf16.mxu0 %vm8955_vm1, %v8954_v9  ;;  %8569 = vmatprep.subr.bf16.mxu1 %v8954_v9 }
0x1983   : > { %8575 = vmatprep.subr.bf16.mxu0 %v8954_v9 }
0x1a4a   : > { %v6561_v43 = vpop.f32.mrb[180].mxu0 }
0x1a4b   : > { %v6515_v57 = vpop.f32.mrb[180].mxu1  ;;  %v6660_v58 = vpack.c.bf16 %v6561_v43, %v6561_v43  ;;  %v8543_v60 = vpop.f32.mrb[181].mxu0 }
0x1a4c   : > { %v6659_v61 = vpack.c.bf16 %v6515_v57, %v6515_v57  ;;  %v8537_v62 = vpop.f32.mrb[181].mxu1  ;;  %v6564_v1 = vpop.f32.mrb[182].mxu0  ;;  %v7616_v57 = vld [vmem:[%s10159_s0 + $0x1] ss:$0 sm:$0xff]  ;;  %s10164_s0 = smov %s10163_s18 }
0x1a4d   : > { %v6518_v5 = vpop.f32.mrb[182].mxu1  ;;  %v8544_v6 = vpop.f32.mrb[183].mxu0  ;;  %8566 = vmatmul.mubr.msk.bf16.vlgmr.msra.gmra.mrb[188].mxu0 %vm1757_vm2, %v6660_v58  ;;  %v8780_v62 = vld [vmem:[%s10155_s7 + $0x38] sm:$0xff]   ;;  %v7617_v1 = vld [vmem:[%s10160_s4 + $0x1] ss:$0 sm:$0xff]  ;;  %s7630_s4 = sshll.u32 %s10162_s22, 7 }
0x1a4e   : > { %v8538_v7 = vpop.f32.mrb[183].mxu1  ;;  %8560 = vmatmul.mubr.msk.bf16.vlgmr.msra.gmra.mrb[188].mxu1 %vm1757_vm2, %v6659_v61  ;;  %8576 = vmatpush3.bf16.msra.mxu0 %v6805_v37  ;;  %v8779_v61 = vld [vmem:[%s10155_s7 + $0x30] sm:$0xff]  }
0x1a4f   : > { %8570 = vmatpush3.bf16.msra.mxu1 %v6759_v4  ;;  %8571 = vmatprep.mubr.msk.bf16.mxu1 %vm8955_vm1, %v8954_v9 }
0x1a50   : > { %8577 = vmatprep.mubr.msk.bf16.mxu0 %vm8955_vm1, %v8954_v9  ;;  %8581 = vmatprep.subr.bf16.mxu1 %v8954_v9 }
0x1a51   : > { %8589 = vmatprep.subr.bf16.mxu0 %v8954_v9 }
0x1a52   : > { %v6653_v63 = vpop.f32.mrb[184].mxu0 }
0x1a53   : > { %v6607_v0 = vpop.f32.mrb[184].mxu1  ;;  %v6662_v59 = vpack.c.bf16 %v6653_v63, %v6653_v63  ;;  %v8555_v8 = vpop.f32.mrb[185].mxu0 }
0x1a54   : > { %v6661_v10 = vpack.c.bf16 %v6607_v0, %v6607_v0  ;;  %v8549_v11 = vpop.f32.mrb[185].mxu1  ;;  %v6656_v12 = vpop.f32.mrb[186].mxu0  ;;  %v7621_v8 = vld [vmem:[%s9101_s20 + $0x1] ss:$0 sm:$0xff] }
0x1a55   : > { %v6610_v13 = vpop.f32.mrb[186].mxu1  ;;  %v8556_v14 = vpop.f32.mrb[187].mxu0  ;;  %8578 = vmatmul.mubr.msk.bf16.vlgmr.msra.gmra.mrb[192].mxu0 %vm1757_vm2, %v6662_v59 }
0x1a56   : > { %v8550_v2 = vpop.f32.mrb[187].mxu1  ;;  %8572 = vmatmul.mubr.msk.bf16.vlgmr.msra.gmra.mrb[192].mxu1 %vm1757_vm2, %v6661_v10  ;;  %8597 = vmatprep.mubr.msk.bf16.mxu0 %vm8955_vm1, %v8954_v9 }
0x1a57   : > { %8585 = vmatprep.mubr.msk.bf16.mxu1 %vm8955_vm1, %v8954_v9  ;;  %8582 = vmatpush3.bf16.msra.mxu1 %v8775_v50 }
0x1a58   : > { %8583 = vmatprep.subr.bf16.mxu1 %v8954_v9 }
0x1a5b   : > { %8584 = vmatpush3.bf16.msra.mxu1 %v8776_v51 }
0x1b20   : > { %v6749_v15 = vpop.f32.mrb[188].mxu0 }
0x1b21   : > { %v6703_v16 = vpop.f32.mrb[188].mxu1  ;;  %v6848_v17 = vsel %vm1020_vm0, %v6749_v15, 0.0  ;;  %v8567_v18 = vpop.f32.mrb[189].mxu0 }
0x1b22   : > { %v6847_v19 = vsel %vm1020_vm0, %v6703_v16, 0.0  ;;  %v8561_v3 = vpop.f32.mrb[189].mxu1  ;;  %v6752_v21 = vpop.f32.mrb[190].mxu0 }
0x1b23   : > { %v6849_v22 = vadd.f32 %v6848_v17, %v6847_v19  ;;  %v6706_v23 = vpop.f32.mrb[190].mxu1  ;;  %v8568_v24 = vpop.f32.mrb[191].mxu0 }
0x1b24   : > { %v8562_v25 = vpop.f32.mrb[191].mxu1  ;;  %v7627_v24 = vld [vmem:[%s9106_s27] ss:$0 sm:$0xff] }
0x1b28   : > { %v6841_v26 = vpop.f32.mrb[192].mxu0 }
0x1b29   : > { %v6795_v27 = vpop.f32.mrb[192].mxu1  ;;  %v8579_v28 = vpop.f32.mrb[193].mxu0  ;;  %v6852_v33 = vsel %vm1020_vm0, %v6841_v26, 0.0  ;;  %v7628_v26 = vld [vmem:[%s10161_s15] ss:$0 sm:$0xff]  ;;  %s8957_s15 = smov [#allocation2]  }
0x1b2a   : > { %v6850_v29 = vsel %vm1020_vm0, %v6795_v27, 0.0  ;;  %v8573_v30 = vpop.f32.mrb[193].mxu1  ;;  %v6844_v31 = vpop.f32.mrb[194].mxu0  ;;  %s8864_s2 = sshll.u32 %s8957_s15, 4  ;;  %s8865_s2 = int_to_ptr.vmem [resolvable:$false] %s8864_s2 }
0x1b2b   : > { %v6851_v32 = vadd.f32 %v6850_v29, %v6849_v22  ;;  %v6798_v34 = vpop.f32.mrb[194].mxu1  ;;  %v8580_v35 = vpop.f32.mrb[195].mxu0  ;;  %s8866_s22 = scalar_lea.vmem %s8865_s2, 256  ;;  %p8867_p0 = scmp.lt.s32.totalorder %s10041_s6, %s8865_s2 }
0x1b2c   : > { %v8574_v38 = vpop.f32.mrb[195].mxu1  ;;  %p8868_p1 = scmp.lt.s32.totalorder %s8866_s22, %s8860_s9 }
0x1b2d   : > { %v6853_v39 = vadd.f32 %v6852_v33, %v6851_v32 }
0x1b2e   : > { %p8869_p2 = por %p8868_p1, %p8867_p0 }
0x1b2f   : > { %v6860_v20 = vadd.f32 %v7598_v36, %v6853_v39 }
0x1b30   : > { %p8870_p3 = pnand %p8869_p2, %p8863_p13 }
0x1b31   : > { %v6861_v42 = vadd.f32 %v6860_v20, %v9818_v49  ;;  %v8777_v49 = vld [vmem:[%s10155_s7 + $0x20] sm:$0xff]   ;;  %s10039_s7 = scalar_lea.hbm %s10163_s18, %s7630_s4 }
0x1b32   : > { %8590 = vmatpush3.bf16.msra.mxu0 %v8777_v49 }
0x1b33   : > { %v6884_v44 = vsel %vm1020_vm0, %v6861_v42, 0.0  ;;  %8591 = vmatprep.subr.bf16.mxu0 %v8954_v9 }
0x1b34   : > { %6885 = vadd.xlane.f32.xlu0 %v6884_v44 }
0x1b36   : > { %8592 = vmatpush3.bf16.msra.mxu0 %v8778_v52 }
0x1b37   : > { %8593 = vmatprep.subr.bf16.mxu0 %v8954_v9 }
0x1b3a   : > { %8594 = vmatpush3.bf16.msra.mxu0 %v8779_v61 }
0x1b3b   : > { %8595 = vmatprep.subr.bf16.mxu0 %v8954_v9 }
0x1b3e   : > { %8596 = vmatpush3.bf16.msra.mxu0 %v8780_v62 }
0x1bc1   : > { %v6886_v41 = vpop.xlane.xlu0 %6885 }
0x1bc2   : > { %v6887_v40 = vmul.f32 0.03125, %v6886_v41 }
0x1bc4   : > { %v6888_v46 = vsub.f32 %v6861_v42, %v6887_v40 }
0x1bc6   : > { %v6889_v47 = vmul.f32 %v6888_v46, %v6888_v46 }
0x1bc8   : > { %v6890_v48 = vsel %vm1020_vm0, %v6889_v47, 0.0 }
0x1bc9   : > { %6891 = vadd.xlane.f32.xlu1 %v6890_v48 }
0x1c56   : > { %v6892_v53 = vpop.xlane.xlu1 %6891 }
0x1c57   : > { %v6893_v45 = vmul.f32 0.03125, %v6892_v53 }
0x1c59   : > { %v6894_v54 = vadd.f32 1e-06, %v6893_v45 }
0x1c5b   : > { %8855 = vrsqrt.f32 %v6894_v54 }
0x1c65   : > { %v8856_v55 = vpop.eup %8855 }
0x1c66   : > { %v6896_v43 = vmul.f32 %v8856_v55, %v6888_v46 }
0x1c68   : > { %v6903_v58 = vmul.f32 %v7615_v56, %v6896_v43 }
0x1c6a   : > { %v6910_v60 = vadd.f32 %v7616_v57, %v6903_v58 }
0x1c6c   : > { %v6911_v37 = vpack.c.bf16 %v6910_v60, %v6910_v60 }
0x1c6e   : > { %8586 = vmatmul.mubr.msk.bf16.vlgmr.msra.gmra.mrb[196].mxu1 %vm1020_vm0, %v6911_v37 }
0x1d41   : > { %v6967_v4 = vpop.f32.mrb[196].mxu1 }
0x1d42   : > { %v6968_v5 = vadd.f32 %v7617_v1, %v6967_v4  ;;  %v8587_v6 = vpop.f32.mrb[197].mxu1 }
0x1d43   : > { %v6970_v7 = vpop.f32.mrb[198].mxu1 }
0x1d44   : > { %v6973_v63 = vmax.f32 %v6968_v5, 0.0  ;;  %v8588_v0 = vpop.f32.mrb[199].mxu1 }
0x1d46   : > { %v6974_v59 = vpack.c.bf16 %v6973_v63, %v6973_v63 }
0x1d48   : > { %8598 = vmatmul.mubr.msk.bf16.vlgmr.msra.gmra.mrb[196].mxu0 %vm3947_vm5, %v6974_v59 }
0x1e1b   : > { %v7042_v10 = vpop.f32.mrb[196].mxu0 }
0x1e1c   : > { %v7043_v11 = vadd.f32 %v7621_v8, %v7042_v10  ;;  %v8599_v12 = vpop.f32.mrb[197].mxu0 }
0x1e1d   : > { %v7045_v13 = vpop.f32.mrb[198].mxu0 }
0x1e1e   : > { %v8600_v14 = vpop.f32.mrb[199].mxu0  ;;  %v7048_v9 = vadd.f32 %v7043_v11, %v6861_v42 }
0x1e20   : > { %v7051_v2 = vsel %vm1020_vm0, %v7048_v9, 0.0 }
0x1e21   : > { %7052 = vadd.xlane.f32.xlu0 %v7051_v2 }
0x1eae   : > { %v7053_v15 = vpop.xlane.xlu0 %7052 }
0x1eaf   : > { %v7054_v16 = vmul.f32 0.03125, %v7053_v15 }
0x1eb1   : > { %v7055_v17 = vsub.f32 %v7048_v9, %v7054_v16 }
0x1eb3   : > { %v7056_v18 = vmul.f32 %v7055_v17, %v7055_v17 }
0x1eb5   : > { %v7057_v19 = vsel %vm1020_vm0, %v7056_v18, 0.0 }
0x1eb6   : > { %7058 = vadd.xlane.f32.xlu1 %v7057_v19 }
0x1f43   : > { %v7059_v3 = vpop.xlane.xlu1 %7058 }
0x1f44   : > { %v7060_v21 = vmul.f32 0.03125, %v7059_v3 }
0x1f46   : > { %v7061_v22 = vadd.f32 1e-06, %v7060_v21 }
0x1f48   : > { %8857 = vrsqrt.f32 %v7061_v22 }
0x1f52   : > { %v8858_v23 = vpop.eup %8857 }
0x1f53   : > { %v7063_v25 = vmul.f32 %v8858_v23, %v7055_v17 }
0x1f55   : > { %v7070_v27 = vmul.f32 %v7627_v24, %v7063_v25 }
0x1f57   : > { %v7077_v28 = vadd.f32 %v7628_v26, %v7070_v27 }
0x1f59   : > { %7078 = vst.msk [vmem:[%s934_s5] sm:$0xff] %vm1020_vm0, %v7077_v28 }
0x1f5a   : > { %8873 = shalt.err (!%p8870_p3)
}
0x1f5b   : > { %s8874_s4 = scalar_lea.hbm %s10039_s7, 128  ;;  %s8878_s1 = scalar_lea.hbm %s10164_s0, 256 }
0x1f5c   : > { %p8875_p4 = scmp.ne.s32.totalorder %s10039_s7, %s8874_s4  ;;  %p8879_p9 = scmp.lt.u32.totalorder %s10039_s7, %s10164_s0 }
0x1f5d   : > { %p8880_p10 = scmp.lt.u32.totalorder %s8878_s1, %s8874_s4  ;;  %p8882_p12 = scmp.lt.u32.totalorder %s8874_s4, %s10039_s7 }
0x1f5e   : > { %p8876_p7 = pnand %p8875_p4, %p9156_p5 }
0x1f5f   : > { %p8881_p11 = por %p8880_p10, %p8879_p9 }
0x1f60   : > { %p8877_p8 = pneg %p8876_p7 }
0x1f61   : > { %p8883_p0 = por %p8882_p12, %p8881_p11 }
0x1f63   : > { %p8884_p13 = pnand %p8883_p0, %p8877_p8 }
0x1f65   : > { %8887 = shalt.err (!%p8884_p13)
}
0x1f66   : > { %8601 = dma.vmem_to_hbm [thread:$0]  (%p9156_p5), %s10041_s6, 128, %s10039_s7, %s7080_s8  }
0x1f67 PF: > { %s10166_s9 = sld [smem:[#allocation26_spill]]  ;;  %s10167_s5 = sld [smem:[#allocation24_spill]] }
0x1f6d   : > { %p8607_p1 = scmp.ge.s32.totalorder %s10166_s9, 2  ;;  %s7105_s15 = sand.u32 1, %s10167_s5  }
0x1f6e   : > { %s7106_s2 = scalar_lea.sflag [#allocation3], %s7105_s15 }
0x1f6f   : > { %p8604_p2 = pnand %p8607_p1, %p9160_p6 }
0x1f71   : > { %8905 = dma.done.wait (!%p8604_p2), %s7106_s2, 128  }
0x1f72   : > { %8907 = vsyncadd (!%p8604_p2), %s7106_s2, 4294967168  ;;  %s10169_s22 = sld [smem:[#allocation28_spill]]  ;;  %s10170_s4 = sld [smem:[#allocation25_spill]] }
0x1f73   : > { %s10171_s18 = sld [smem:[#allocation29_spill]]  ;;  %s10172_s15 = smov %s8914_s16 }
0x1f78   : > { %p71_p3 = scmp.ge.s32.totalorder %s10169_s22, 4   ;;  %s10173_s16 = smov %s10170_s4 }
0x1f7a   :  { %73 = sbr.rel (!%p71_p3) target bundleno = 63 (0x3f), region = 234 }
0x1f81   :  { %7111 = vsyncpa [#allocation3], 1 }
0x1f82   :  { %7113 = vsyncpa [#allocation3 + $0x1], 1 }

</bundles_post_ra>
